<compile_context>
chip_gen: v5e
topology: v5e:2x2
jax: 0.10.0
libtpu: 0.0.40
codegen_flags: <defaults>
</compile_context>

<pallas_src>
import functools

import jax
import jax.numpy as jnp
from jax import lax
from jax.experimental import pallas as pl
from jax.experimental.pallas import tpu as pltpu


def _round_up(x, m):
    return ((x + m - 1) // m) * m


# ----------------------------------------------------------------------------
# Pallas kernel: one grid step == TC time steps of the CRU/RKN recursion for
# one 128/256-lane batch tile.
# ----------------------------------------------------------------------------
def _cru_rkn_kernel(x_ref, init_ref, w1_ref, b1_ref, w2_ref, b2_ref,
                    amean_ref, gcov_ref, tnoise_ref,
                    out_ref, mean_scr, cov_scr,
                    *, lod, hidden, num_basis, tc, unroll, mxu_dtype):
    lsd = 2 * lod
    c3 = 3 * lod
    K = num_basis
    H = hidden

    # ---- (re-)initialize the carried belief at t == 0 of every batch tile ---
    @pl.when(pl.program_id(1) == 0)
    def _():
        mean_scr[...] = init_ref[0:lsd]            # [mu | ml]
        cov_scr[...] = init_ref[lsd:lsd + c3]      # [cu | cs | cl]

    # loop-invariant constants (small; hoisted loads)
    w1 = w1_ref[...]                               # (H, lsd)
    b1 = b1_ref[...]                               # (H, 1)
    w2 = w2_ref[...]                               # (K, H)
    b2 = b2_ref[...]                               # (K, 1)
    tnoise = tnoise_ref[...]                       # (c3, 1) = [tcu | 0 | tcl]
    odt = out_ref.dtype

    def step(tt, carry):
        mean, cov = carry                          # (lsd,BT), (c3,BT)
        x = x_ref[tt]                              # (Din_pad, BT)
        obs = x[0:lod]
        obs_var = x[lod:lsd]
        vm = x[lsd:lsd + 1] > 0.5                  # (1, BT) valid mask

        p_cu = cov[0:lod]
        p_cs = cov[lod:2 * lod]
        p_cl = cov[2 * lod:c3]

        # ---- Kalman update (observation model H = [I 0]) --------------------
        inv_d = 1.0 / (p_cu + obs_var)             # exact: keeps tolerance
        q_u = p_cu * inv_d
        q_l = p_cs * inv_d
        resid = obs - mean[0:lod]
        upd_mean = mean + jnp.concatenate([q_u * resid, q_l * resid], axis=0)
        cf = 1.0 - q_u
        upd_cov = jnp.concatenate(
            [cf * p_cu, cf * p_cs, p_cl - q_l * p_cs], axis=0)
        post_mean = jnp.where(vm, upd_mean, mean)
        post_cov = jnp.where(vm, upd_cov, cov)
        zero = jnp.zeros_like(q_u)
        kg_u = jnp.where(vm, q_u, zero)
        kg_l = jnp.where(vm, q_l, zero)

        # posterior + gains stored immediately (frees vregs before prediction)
        out_ref[tt, 0:lsd] = post_mean.astype(odt)
        out_ref[tt, lsd:lsd + c3] = post_cov.astype(odt)
        out_ref[tt, 10 * lod:11 * lod] = kg_u.astype(odt)
        out_ref[tt, 11 * lod:12 * lod] = kg_l.astype(odt)

        pm = post_mean.astype(mxu_dtype)
        pc = post_cov.astype(mxu_dtype)

        # ---- split matmuls: coeff-net / mean-transition / per-basis cov -----
        pre = jnp.dot(w1, pm, preferred_element_type=jnp.float32)      # (H,BT)
        mc = jnp.dot(amean_ref[...], pm,
                     preferred_element_type=jnp.float32)               # (K*lsd,BT)

        # coefficient net: softmax(W2 tanh(W1 m + b1) + b2); overlaps with MXU
        h = jnp.tanh(pre + b1).astype(mxu_dtype)
        logits = jnp.dot(w2, h, preferred_element_type=jnp.float32) + b2
        mx = logits[0:1]
        for k in range(1, K):                       # K-1 maximums, no XLU reduce
            mx = jnp.maximum(mx, logits[k:k + 1])
        e = jnp.exp(logits - mx)
        s = jnp.sum(e, axis=0, keepdims=True)
        inv_s = pl.reciprocal(s, approx=True)       # EUP slot
        inv_s = inv_s * (2.0 - s * inv_s)           # 1 Newton step
        coeff = e * inv_s                           # (K, BT)

        # prior mean: sum_k c_k * (Amean_k @ [mu; ml])
        new_mean = mc[0:lsd] * coeff[0:1]
        for k in range(1, K):
            new_mean = new_mean + mc[k * lsd:(k + 1) * lsd] * coeff[k:k + 1]

        # prior covariance: sum_{k,k'} c_k c_k' * (G_{k,k'} @ [cu; cs; cl])
        # one small matmul per k keeps peak live vregs bounded (no spills).
        new_cov = None
        for k in range(K):
            blk = jnp.dot(gcov_ref[k * K * c3:(k + 1) * K * c3], pc,
                          preferred_element_type=jnp.float32)          # (K*c3,BT)
            ck = coeff[k:k + 1]
            for kk in range(K):
                term = blk[kk * c3:(kk + 1) * c3] * (ck * coeff[kk:kk + 1])
                new_cov = term if new_cov is None else new_cov + term
        new_cov = new_cov + tnoise                                      # (c3,BT)

        out_ref[tt, 5 * lod:7 * lod] = new_mean.astype(odt)
        out_ref[tt, 7 * lod:10 * lod] = new_cov.astype(odt)
        return new_mean, new_cov

    mean_f, cov_f = lax.fori_loop(0, tc, step, (mean_scr[...], cov_scr[...]),
                                  unroll=unroll)
    mean_scr[...] = mean_f
    cov_scr[...] = cov_f


# ----------------------------------------------------------------------------
# Host-side precomputation of the transition operators (lod padded to 8).
# ----------------------------------------------------------------------------
def _build_transition_operators(params, lod, lod_p, mxu_dtype):
    f32 = jnp.float32
    pad1 = lod_p - lod
    K = params["A11"].shape[0]
    lsd_p = 2 * lod_p
    c3 = 3 * lod_p

    def pad_basis(A):
        return jnp.pad(A.astype(f32), ((0, 0), (0, pad1), (0, pad1)))

    A11, A12 = pad_basis(params["A11"]), pad_basis(params["A12"])
    A21, A22 = pad_basis(params["A21"]), pad_basis(params["A22"])

    # mean candidates: Amean[k] = [[A11_k, A12_k], [A21_k, A22_k]]
    top = jnp.concatenate([A11, A12], axis=2)
    bot = jnp.concatenate([A21, A22], axis=2)
    a_mean = jnp.concatenate([top, bot], axis=1).reshape(K * lsd_p, lsd_p)

    # covariance candidates acting on [cu; cs; cl]; output rows [cu'; cs'; cl']
    pair = lambda X, Y: X[:, None] * Y[None, :]            # (K, K, lod, lod)
    gu = jnp.concatenate([pair(A11, A11), 2.0 * pair(A11, A12),
                          pair(A12, A12)], axis=-1)
    gs = jnp.concatenate([pair(A21, A11),
                          pair(A22, A11) + pair(A21, A12),
                          pair(A22, A12)], axis=-1)
    gl = jnp.concatenate([pair(A21, A21), 2.0 * pair(A22, A21),
                          pair(A22, A22)], axis=-1)
    g_cov = jnp.concatenate([gu, gs, gl], axis=-2).reshape(K * K * c3, c3)

    W1 = params["W1"].astype(f32)                           # (2*lod, H)
    w1a = jnp.pad(W1[:lod], ((0, pad1), (0, 0)))
    w1b = jnp.pad(W1[lod:], ((0, pad1), (0, 0)))
    w1_fm = jnp.concatenate([w1a, w1b], axis=0).T           # (H, lsd_p)
    w2_fm = params["W2"].astype(f32).T                      # (K, H)
    b1 = params["b1"].astype(f32)[:, None]
    b2 = params["b2"].astype(f32)[:, None]

    tpad = lambda v: jnp.pad(v.astype(f32), (0, pad1))
    tnoise = jnp.concatenate([tpad(params["trans_cov_upper"]),
                              jnp.zeros((lod_p,), f32),
                              tpad(params["trans_cov_lower"])])[:, None]

    return (w1_fm.astype(mxu_dtype), b1, w2_fm.astype(mxu_dtype), b2,
            a_mean.astype(mxu_dtype), g_cov.astype(mxu_dtype), tnoise)


# ----------------------------------------------------------------------------
# Wrapper: PyTorch-convention (B, T, D) in/out, Pallas kernel does the loop.
# ----------------------------------------------------------------------------
def cru_layer_forward(latent_obs, obs_vars, initial_mean, initial_cov, params,
                      obs_valid=None, time_points=None,
                      time_chunk=32, batch_tile=256,
                      mxu_dtype=jnp.float32, out_dtype=jnp.float32):
    del time_points  # discrete-RKN cell only (see TODO above)
    f32 = jnp.float32
    B, T, lod = latent_obs.shape
    lod_p = _round_up(lod, 8)
    lsd_p = 2 * lod_p
    c3 = 3 * lod_p
    H = params["W1"].shape[1]
    K = params["A11"].shape[0]

    if obs_valid is None:
        obs_valid = jnp.ones((B, T), dtype=bool)

    # ---- balanced time chunks (amortize per-grid-step overhead) -------------
    n_t_steps = pl.cdiv(T, max(int(time_chunk), 1))
    TC = pl.cdiv(T, n_t_steps)
    Tpad = TC * n_t_steps
    unroll = min(8, TC)

    # ---- lane-dense batch tiles; leading grid axis is batch-parallel --------
    b128 = _round_up(max(B, 1), 128)
    BT = min(max(int(batch_tile) // 128, 1) * 128, b128)
    Bp = _round_up(max(B, 1), BT)
    NB = Bp // BT
    pad_b = Bp - B

    Din = lsd_p + 1
    Din_pad = _round_up(Din, 8)
    Dout = 12 * lod_p

    # ---- fused input stream, ONE transpose: rows [obs | var | valid] --------
    lo = jnp.pad(latent_obs.astype(f32),
                 ((0, pad_b), (0, Tpad - T), (0, lod_p - lod)))
    ov = jnp.pad(obs_vars.astype(f32),
                 ((0, pad_b), (0, Tpad - T), (0, lod_p - lod)),
                 constant_values=1.0)                       # 1.0 pad: NaN-safe
    vd = jnp.pad(obs_valid.astype(f32), ((0, pad_b), (0, Tpad - T)))
    core = jnp.concatenate([lo, ov, vd[..., None]], axis=-1)  # (Bp,Tpad,Din)
    xin = jnp.transpose(core, (1, 2, 0))                       # (Tpad,Din,Bp)
    xin = jnp.pad(xin, ((0, 0), (0, Din_pad - Din), (0, 0)))

    # ---- packed initial belief [mu | ml | cu | cs | cl] ----------------------
    def fm(arr, cv=0.0):
        return jnp.pad(arr.astype(f32).T, ((0, lod_p - lod), (0, pad_b)),
                       constant_values=cv)
    init_state = jnp.concatenate(
        [fm(initial_mean[:, :lod]), fm(initial_mean[:, lod:]),
         fm(initial_cov[0], 1.0), fm(initial_cov[2]), fm(initial_cov[1], 1.0)],
        axis=0)                                              # (5*lod_p, Bp)

    # ---- constants -----------------------------------------------------------
    (w1_fm, b1c, w2_fm, b2c, a_mean, g_cov, tnoise) = \
        _build_transition_operators(params, lod, lod_p, mxu_dtype)

    kernel = functools.partial(_cru_rkn_kernel, lod=lod_p, hidden=H,
                               num_basis=K, tc=TC, unroll=unroll,
                               mxu_dtype=mxu_dtype)
    const = lambda arr: pl.BlockSpec(arr.shape, lambda b, t: (0, 0))

    # explicit VMEM budget (double-buffered stream I/O dominates)
    const_bytes = (w1_fm.size * w1_fm.dtype.itemsize
                   + w2_fm.size * w2_fm.dtype.itemsize
                   + a_mean.size * a_mean.dtype.itemsize
                   + g_cov.size * g_cov.dtype.itemsize
                   + (b1c.size + b2c.size + tnoise.size) * 4)
    est_bytes = (4 * (2 * TC * (Din_pad + Dout) * BT
                      + 2 * 5 * lod_p * BT
                      + (lsd_p + c3) * BT)
                 + 2 * const_bytes)
    vmem_limit = int(min(max(2 * est_bytes, 32 * 1024 * 1024),
                         96 * 1024 * 1024))

    packed = pl.pallas_call(
        kernel,
        grid=(NB, Tpad // TC),
        in_specs=[
            pl.BlockSpec((TC, Din_pad, BT), lambda b, t: (t, 0, b)),  # stream
            pl.BlockSpec((5 * lod_p, BT), lambda b, t: (0, b)),       # init
            const(w1_fm), const(b1c), const(w2_fm), const(b2c),
            const(a_mean), const(g_cov), const(tnoise),
        ],
        out_specs=pl.BlockSpec((TC, Dout, BT), lambda b, t: (t, 0, b)),
        out_shape=jax.ShapeDtypeStruct((Tpad, Dout, Bp), out_dtype),
        scratch_shapes=[pltpu.VMEM((lsd_p, BT), f32),   # carried mean
                        pltpu.VMEM((c3, BT), f32)],     # carried covariance
        compiler_params=pltpu.CompilerParams(
            dimension_semantics=("parallel", "arbitrary"),
            vmem_limit_bytes=vmem_limit),
    )(xin, init_state, w1_fm, b1c, w2_fm, b2c, a_mean, g_cov, tnoise)

    # ---- single transpose + static slicing of the fused output ---------------
    out_btd = jnp.transpose(packed, (2, 0, 1))[:B, :T]       # (B,T,12*lod_p)
    blk = lambda i: out_btd[..., i * lod_p:i * lod_p + lod]
    post_means = jnp.concatenate([blk(0), blk(1)], axis=-1)
    post_covs = [blk(2), blk(4), blk(3)]                      # [cu, cl, cs]
    prior_means = jnp.concatenate([blk(5), blk(6)], axis=-1)
    prior_covs = [blk(7), blk(9), blk(8)]                     # [cu, cl, cs]
    kalman_gains = [blk(10), blk(11)]
    return post_means, post_covs, prior_means, prior_covs, kalman_gains


# ----------------------------------------------------------------------------
# Pure-JAX reference (batch-major, mirrors the PyTorch loop) for verification.
# ----------------------------------------------------------------------------
def cru_layer_reference(latent_obs, obs_vars, initial_mean, initial_cov,
                        params, obs_valid):
    f32 = jnp.float32
    B, T, lod = latent_obs.shape
    W1, b1, W2, b2 = params["W1"], params["b1"], params["W2"], params["b2"]
    A11, A12, A21, A22 = params["A11"], params["A12"], params["A21"], params["A22"]
    tcu, tcl = params["trans_cov_upper"], params["trans_cov_lower"]

    bmv = lambda m, v: jnp.einsum("bij,bj->bi", m, v)

    prior_mean = initial_mean.astype(f32)
    cu, cl, cs = [c.astype(f32) for c in initial_cov]

    pm_l, pcu_l, pcl_l, pcs_l = [], [], [], []
    prm_l, prcu_l, prcl_l, prcs_l = [], [], [], []
    kgu_l, kgl_l = [], []

    for i in range(T):
        obs = latent_obs[:, i].astype(f32)
        ov = obs_vars[:, i].astype(f32)
        valid = obs_valid[:, i][:, None]

        denom = cu + ov
        qu = cu / denom
        ql = cs / denom
        res = obs - prior_mean[:, :lod]
        upd_mean = prior_mean + jnp.concatenate([qu * res, ql * res], axis=-1)
        cf = 1.0 - qu
        ucu = cf * cu
        ucl = cl - ql * cs
        ucs = cf * cs

        post_mean = jnp.where(valid, upd_mean, prior_mean)
        post_cu = jnp.where(valid, ucu, cu)
        post_cl = jnp.where(valid, ucl, cl)
        post_cs = jnp.where(valid, ucs, cs)
        kg_u = jnp.where(valid, qu, 0.0)
        kg_l = jnp.where(valid, ql, 0.0)

        h = jnp.tanh(post_mean @ W1 + b1)
        coeff = jax.nn.softmax(h @ W2 + b2, axis=-1)
        tm11 = jnp.einsum("bk,kij->bij", coeff, A11)
        tm12 = jnp.einsum("bk,kij->bij", coeff, A12)
        tm21 = jnp.einsum("bk,kij->bij", coeff, A21)
        tm22 = jnp.einsum("bk,kij->bij", coeff, A22)

        mu, ml = post_mean[:, :lod], post_mean[:, lod:]
        nmu = bmv(tm11, mu) + bmv(tm12, ml)
        nml = bmv(tm21, mu) + bmv(tm22, ml)
        ncu = (bmv(tm11 * tm11, post_cu) + 2.0 * bmv(tm11 * tm12, post_cs)
               + bmv(tm12 * tm12, post_cl) + tcu)
        ncl = (bmv(tm21 * tm21, post_cu) + 2.0 * bmv(tm22 * tm21, post_cs)
               + bmv(tm22 * tm22, post_cl) + tcl)
        ncs = (bmv(tm21 * tm11, post_cu) + bmv(tm22 * tm11, post_cs)
               + bmv(tm21 * tm12, post_cs) + bmv(tm22 * tm12, post_cl))

        pm_l.append(post_mean); pcu_l.append(post_cu)
        pcl_l.append(post_cl); pcs_l.append(post_cs)
        prm_l.append(jnp.concatenate([nmu, nml], axis=-1))
        prcu_l.append(ncu); prcl_l.append(ncl); prcs_l.append(ncs)
        kgu_l.append(kg_u); kgl_l.append(kg_l)

        prior_mean = jnp.concatenate([nmu, nml], axis=-1)
        cu, cl, cs = ncu, ncl, ncs

    stack = lambda xs: jnp.stack(xs, axis=1)
    return (stack(pm_l), [stack(pcu_l), stack(pcl_l), stack(pcs_l)],
            stack(prm_l), [stack(prcu_l), stack(prcl_l), stack(prcs_l)],
            [stack(kgu_l), stack(kgl_l)])


# ----------------------------------------------------------------------------
# Deterministic parameter construction (synthetic; shapes per RKNCell.__init__)
# ----------------------------------------------------------------------------
def init_params(key, lod, num_basis=3, hidden=16, bandwidth=2):
    lsd = 2 * lod
    ks = jax.random.split(key, 7)
    idx = jnp.arange(lod)
    band = (jnp.abs(idx[:, None] - idx[None, :]) <= bandwidth).astype(jnp.float32)
    eye = jnp.eye(lod, dtype=jnp.float32)
    scale = 0.05

    def basis(k, add_eye, sign=1.0):
        m = sign * scale * band[None] * jax.random.normal(k, (num_basis, lod, lod),
                                                          jnp.float32)
        return m + eye[None] if add_eye else m

    A11 = basis(ks[0], True)
    A12 = basis(ks[1], False)
    A21 = basis(ks[2], False, sign=-1.0)
    A22 = basis(ks[3], True)

    W1 = 0.3 * jax.random.normal(ks[4], (lsd, hidden), jnp.float32)
    b1 = jnp.zeros((hidden,), jnp.float32)
    W2 = 0.3 * jax.random.normal(ks[5], (hidden, num_basis), jnp.float32)
    b2 = jnp.zeros((num_basis,), jnp.float32)

    # transition noise via elup1 activation of a raw parameter vector
    raw = 0.1 * jax.random.normal(ks[6], (lsd,), jnp.float32) - 2.0
    elup1 = jnp.where(raw < 0, jnp.exp(raw), raw + 1.0)
    return dict(W1=W1, b1=b1, W2=W2, b2=b2,
                A11=A11, A12=A12, A21=A21, A22=A22,
                trans_cov_upper=elup1[:lod], trans_cov_lower=elup1[lod:])


if __name__ == "__main__":
    B, T, lod, hidden, num_basis = 4, 6, 8, 16, 3
    lsd = 2 * lod

    key = jax.random.PRNGKey(0)
    k_obs, k_var, k_mean, k_par = jax.random.split(key, 4)

    latent_obs = 0.5 * jax.random.normal(k_obs, (B, T, lod), jnp.float32)
    obs_vars = 0.1 + jax.nn.softplus(jax.random.normal(k_var, (B, T, lod), jnp.float32))
    initial_mean = 0.1 * jax.random.normal(k_mean, (B, lsd), jnp.float32)
    initial_cov = [jnp.ones((B, lod), jnp.float32),
                   jnp.ones((B, lod), jnp.float32),
                   jnp.zeros((B, lod), jnp.float32)]
    obs_valid = ((jnp.arange(B)[:, None] + jnp.arange(T)[None, :]) % 3) != 0

    params = init_params(k_par, lod, num_basis=num_basis, hidden=hidden, bandwidth=2)

    outs = cru_layer_forward(latent_obs, obs_vars, initial_mean, initial_cov,
                             params, obs_valid=obs_valid)
    outs = jax.block_until_ready(outs)

    ref = cru_layer_reference(latent_obs, obs_vars, initial_mean, initial_cov,
                              params, obs_valid)

    def flatten(o):
        pm, pcov, prm, prcov, kg = o
        return [pm] + list(pcov) + [prm] + list(prcov) + list(kg)

    names = ["post_means", "post_cov_u", "post_cov_l", "post_cov_s",
             "prior_means", "prior_cov_u", "prior_cov_l", "prior_cov_s",
             "kalman_gain_u", "kalman_gain_l"]
    for name, a, b in zip(names, flatten(outs), flatten(ref)):
        assert a.shape == b.shape, (name, a.shape, b.shape)
        err = float(jnp.max(jnp.abs(a.astype(jnp.float32) - b)))
        assert err < 2e-3, f"{name}: max abs err {err}"

    print("KERNEL_OK")
</pallas_src>

<mosaic_0001>
module attributes {stable_mosaic.version = 11 : i64} {
  func.func @_cru_rkn_kernel(%arg0: i32, %arg1: i32, %arg2: memref<6x24x128xf32, #tpu.memory_space<vmem>>, %arg3: memref<40x128xf32, #tpu.memory_space<vmem>>, %arg4: memref<16x16xf32, #tpu.memory_space<vmem>>, %arg5: memref<16x1xf32, #tpu.memory_space<vmem>>, %arg6: memref<3x16xf32, #tpu.memory_space<vmem>>, %arg7: memref<3x1xf32, #tpu.memory_space<vmem>>, %arg8: memref<48x16xf32, #tpu.memory_space<vmem>>, %arg9: memref<216x24xf32, #tpu.memory_space<vmem>>, %arg10: memref<24x1xf32, #tpu.memory_space<vmem>>, %arg11: memref<6x96x128xf32, #tpu.memory_space<vmem>>, %arg12: memref<16x128xf32, #tpu.memory_space<vmem>>, %arg13: memref<24x128xf32, #tpu.memory_space<vmem>>) attributes {dimension_semantics = [#tpu.dimension_semantics<parallel>, #tpu.dimension_semantics<arbitrary>], iteration_bounds = array<i64: 1, 1>, scalar_prefetch = 0 : i64, scratch_operands = 2 : i64, tpu.core_type = #tpu.core_type<tc>, window_params = [{transform_indices = @transform_0, window_bounds = array<i64: 6, 24, 128>}, {transform_indices = @transform_1, window_bounds = array<i64: 40, 128>}, {pipeline_mode = #tpu.pipeline_mode<synchronous>, transform_indices = @transform_2, window_bounds = array<i64: 16, 16>}, {pipeline_mode = #tpu.pipeline_mode<synchronous>, transform_indices = @transform_3, window_bounds = array<i64: 16, 1>}, {pipeline_mode = #tpu.pipeline_mode<synchronous>, transform_indices = @transform_4, window_bounds = array<i64: 3, 16>}, {pipeline_mode = #tpu.pipeline_mode<synchronous>, transform_indices = @transform_5, window_bounds = array<i64: 3, 1>}, {pipeline_mode = #tpu.pipeline_mode<synchronous>, transform_indices = @transform_6, window_bounds = array<i64: 48, 16>}, {pipeline_mode = #tpu.pipeline_mode<synchronous>, transform_indices = @transform_7, window_bounds = array<i64: 216, 24>}, {pipeline_mode = #tpu.pipeline_mode<synchronous>, transform_indices = @transform_8, window_bounds = array<i64: 24, 1>}, {transform_indices = @transform_9, window_bounds = array<i64: 6, 96, 128>}]} {
    %c0_i32 = arith.constant 0 : i32
    %0 = arith.cmpi eq, %arg1, %c0_i32 : i32
    %1 = arith.extui %0 : i1 to i32
    %c0_i32_0 = arith.constant 0 : i32
    %2 = arith.cmpi ne, %1, %c0_i32_0 : i32
    scf.if %2 {
      %c0_215 = arith.constant 0 : index
      %c0_216 = arith.constant 0 : index
      %1032 = vector.load %arg3[%c0_215, %c0_216] : memref<40x128xf32, #tpu.memory_space<vmem>>, vector<16x128xf32>
      %c0_217 = arith.constant 0 : index
      %c0_218 = arith.constant 0 : index
      %1033 = vector.load %arg12[%c0_217, %c0_218] : memref<16x128xf32, #tpu.memory_space<vmem>>, vector<16x128xf32>
      tpu.vector_store %arg12[%c0_217, %c0_218], %1032 {strides = array<i32>} : memref<16x128xf32, #tpu.memory_space<vmem>>, vector<16x128xf32>,
      %c16_219 = arith.constant 16 : index
      %c0_220 = arith.constant 0 : index
      %1034 = vector.load %arg3[%c16_219, %c0_220] : memref<40x128xf32, #tpu.memory_space<vmem>>, vector<24x128xf32>
      %c0_221 = arith.constant 0 : index
      %c0_222 = arith.constant 0 : index
      %1035 = vector.load %arg13[%c0_221, %c0_222] : memref<24x128xf32, #tpu.memory_space<vmem>>, vector<24x128xf32>
      tpu.vector_store %arg13[%c0_221, %c0_222], %1034 {strides = array<i32>} : memref<24x128xf32, #tpu.memory_space<vmem>>, vector<24x128xf32>,
    } else {
    }
    %c0 = arith.constant 0 : index
    %c0_1 = arith.constant 0 : index
    %3 = vector.load %arg4[%c0, %c0_1] : memref<16x16xf32, #tpu.memory_space<vmem>>, vector<16x16xf32>
    %c0_2 = arith.constant 0 : index
    %c0_3 = arith.constant 0 : index
    %4 = vector.load %arg5[%c0_2, %c0_3] : memref<16x1xf32, #tpu.memory_space<vmem>>, vector<16x1xf32>
    %c0_4 = arith.constant 0 : index
    %c0_5 = arith.constant 0 : index
    %5 = vector.load %arg6[%c0_4, %c0_5] : memref<3x16xf32, #tpu.memory_space<vmem>>, vector<3x16xf32>
    %c0_6 = arith.constant 0 : index
    %c0_7 = arith.constant 0 : index
    %6 = vector.load %arg7[%c0_6, %c0_7] : memref<3x1xf32, #tpu.memory_space<vmem>>, vector<3x1xf32>
    %c0_8 = arith.constant 0 : index
    %c0_9 = arith.constant 0 : index
    %7 = vector.load %arg10[%c0_8, %c0_9] : memref<24x1xf32, #tpu.memory_space<vmem>>, vector<24x1xf32>
    %c0_10 = arith.constant 0 : index
    %c0_11 = arith.constant 0 : index
    %8 = vector.load %arg12[%c0_10, %c0_11] : memref<16x128xf32, #tpu.memory_space<vmem>>, vector<16x128xf32>
    %c0_12 = arith.constant 0 : index
    %c0_13 = arith.constant 0 : index
    %9 = vector.load %arg13[%c0_12, %c0_13] : memref<24x128xf32, #tpu.memory_space<vmem>>, vector<24x128xf32>
    %c0_i32_14 = arith.constant 0 : i32
    %10 = arith.index_cast %c0_i32_14 : i32 to index
    %c0_15 = arith.constant 0 : index
    %c0_16 = arith.constant 0 : index
    %11 = vector.load %arg2[%10, %c0_15, %c0_16] : memref<6x24x128xf32, #tpu.memory_space<vmem>>, vector<1x24x128xf32>
    %12 = vector.shape_cast %11 : vector<1x24x128xf32> to vector<24x128xf32>
    %13 = vector.extract_strided_slice %12 {offsets = [0, 0], sizes = [8, 128], strides = [1, 1]} : vector<24x128xf32> to vector<8x128xf32>
    %14 = vector.extract_strided_slice %12 {offsets = [8, 0], sizes = [8, 128], strides = [1, 1]} : vector<24x128xf32> to vector<8x128xf32>
    %15 = vector.extract_strided_slice %12 {offsets = [16, 0], sizes = [1, 128], strides = [1, 1]} : vector<24x128xf32> to vector<1x128xf32>
    %cst = arith.constant 5.000000e-01 : f32
    %16 = vector.broadcast %cst : f32 to vector<1x128xf32>
    %17 = arith.cmpf ogt, %15, %16 : vector<1x128xf32>
    %18 = vector.extract_strided_slice %9 {offsets = [0, 0], sizes = [8, 128], strides = [1, 1]} : vector<24x128xf32> to vector<8x128xf32>
    %19 = vector.extract_strided_slice %9 {offsets = [8, 0], sizes = [8, 128], strides = [1, 1]} : vector<24x128xf32> to vector<8x128xf32>
    %20 = vector.extract_strided_slice %9 {offsets = [16, 0], sizes = [8, 128], strides = [1, 1]} : vector<24x128xf32> to vector<8x128xf32>
    %21 = arith.addf %18, %14 : vector<8x128xf32>
    %cst_17 = arith.constant 1.000000e+00 : f32
    %22 = vector.broadcast %cst_17 : f32 to vector<8x128xf32>
    %23 = arith.divf %22, %21 : vector<8x128xf32>
    %24 = arith.mulf %18, %23 : vector<8x128xf32>
    %25 = arith.mulf %19, %23 : vector<8x128xf32>
    %26 = vector.extract_strided_slice %8 {offsets = [0, 0], sizes = [8, 128], strides = [1, 1]} : vector<16x128xf32> to vector<8x128xf32>
    %27 = arith.subf %13, %26 : vector<8x128xf32>
    %28 = arith.mulf %24, %27 : vector<8x128xf32>
    %29 = arith.mulf %25, %27 : vector<8x128xf32>
    %30 = tpu.concatenate %28, %29 in 0 : vector<8x128xf32>, vector<8x128xf32> -> vector<16x128xf32>
    %31 = arith.addf %8, %30 : vector<16x128xf32>
    %cst_18 = arith.constant 1.000000e+00 : f32
    %32 = vector.broadcast %cst_18 : f32 to vector<8x128xf32>
    %33 = arith.subf %32, %24 : vector<8x128xf32>
    %34 = arith.mulf %33, %18 : vector<8x128xf32>
    %35 = arith.mulf %33, %19 : vector<8x128xf32>
    %36 = arith.mulf %25, %19 : vector<8x128xf32>
    %37 = arith.subf %20, %36 : vector<8x128xf32>
    %38 = tpu.concatenate %34, %35, %37 in 0 : vector<8x128xf32>, vector<8x128xf32>, vector<8x128xf32> -> vector<24x128xf32>
    %39 = vector.shape_cast %17 : vector<1x128xi1> to vector<1x128xi1>
    %40 = vector.broadcast %39 : vector<1x128xi1> to vector<16x128xi1>
    %41 = arith.select %40, %31, %8 : vector<16x128xi1>, vector<16x128xf32>
    %42 = vector.shape_cast %17 : vector<1x128xi1> to vector<1x128xi1>
    %43 = vector.broadcast %42 : vector<1x128xi1> to vector<24x128xi1>
    %44 = arith.select %43, %38, %9 : vector<24x128xi1>, vector<24x128xf32>
    %cst_19 = arith.constant 0.000000e+00 : f32
    %45 = vector.broadcast %cst_19 : f32 to vector<8x128xf32>
    %46 = vector.shape_cast %17 : vector<1x128xi1> to vector<1x128xi1>
    %47 = vector.broadcast %46 : vector<1x128xi1> to vector<8x128xi1>
    %48 = arith.select %47, %24, %45 : vector<8x128xi1>, vector<8x128xf32>
    %49 = vector.shape_cast %17 : vector<1x128xi1> to vector<1x128xi1>
    %50 = vector.broadcast %49 : vector<1x128xi1> to vector<8x128xi1>
    %51 = arith.select %50, %25, %45 : vector<8x128xi1>, vector<8x128xf32>
    %52 = arith.index_cast %c0_i32_14 : i32 to index
    %c0_20 = arith.constant 0 : index
    %c0_21 = arith.constant 0 : index
    %53 = vector.load %arg11[%52, %c0_20, %c0_21] : memref<6x96x128xf32, #tpu.memory_space<vmem>>, vector<1x16x128xf32>
    %54 = vector.shape_cast %53 : vector<1x16x128xf32> to vector<16x128xf32>
    %55 = vector.shape_cast %41 : vector<16x128xf32> to vector<1x16x128xf32>
    tpu.vector_store %arg11[%52, %c0_20, %c0_21], %55 {strides = array<i32>} : memref<6x96x128xf32, #tpu.memory_space<vmem>>, vector<1x16x128xf32>,
    %56 = arith.index_cast %c0_i32_14 : i32 to index
    %c16 = arith.constant 16 : index
    %c0_22 = arith.constant 0 : index
    %57 = vector.load %arg11[%56, %c16, %c0_22] : memref<6x96x128xf32, #tpu.memory_space<vmem>>, vector<1x24x128xf32>
    %58 = vector.shape_cast %57 : vector<1x24x128xf32> to vector<24x128xf32>
    %59 = vector.shape_cast %44 : vector<24x128xf32> to vector<1x24x128xf32>
    tpu.vector_store %arg11[%56, %c16, %c0_22], %59 {strides = array<i32>} : memref<6x96x128xf32, #tpu.memory_space<vmem>>, vector<1x24x128xf32>,
    %60 = arith.index_cast %c0_i32_14 : i32 to index
    %c80 = arith.constant 80 : index
    %c0_23 = arith.constant 0 : index
    %61 = vector.load %arg11[%60, %c80, %c0_23] : memref<6x96x128xf32, #tpu.memory_space<vmem>>, vector<1x8x128xf32>
    %62 = vector.shape_cast %61 : vector<1x8x128xf32> to vector<8x128xf32>
    %63 = vector.shape_cast %48 : vector<8x128xf32> to vector<1x8x128xf32>
    tpu.vector_store %arg11[%60, %c80, %c0_23], %63 {strides = array<i32>} : memref<6x96x128xf32, #tpu.memory_space<vmem>>, vector<1x8x128xf32>,
    %64 = arith.index_cast %c0_i32_14 : i32 to index
    %c88 = arith.constant 88 : index
    %c0_24 = arith.constant 0 : index
    %65 = vector.load %arg11[%64, %c88, %c0_24] : memref<6x96x128xf32, #tpu.memory_space<vmem>>, vector<1x8x128xf32>
    %66 = vector.shape_cast %65 : vector<1x8x128xf32> to vector<8x128xf32>
    %67 = vector.shape_cast %51 : vector<8x128xf32> to vector<1x8x128xf32>
    tpu.vector_store %arg11[%64, %c88, %c0_24], %67 {strides = array<i32>} : memref<6x96x128xf32, #tpu.memory_space<vmem>>, vector<1x8x128xf32>,
    %cst_25 = arith.constant dense<0.000000e+00> : vector<16x128xf32>
    %68 = tpu.matmul %3, %41, %cst_25 {dimension_numbers = #tpu.dot_dimension_numbers<[1], [0], [0], [1], [0, 0, 1, 1], [], []>} : vector<16x16xf32>, vector<16x128xf32>, vector<16x128xf32> -> vector<16x128xf32>
    %c0_26 = arith.constant 0 : index
    %c0_27 = arith.constant 0 : index
    %69 = vector.load %arg8[%c0_26, %c0_27] : memref<48x16xf32, #tpu.memory_space<vmem>>, vector<48x16xf32>
    %cst_28 = arith.constant dense<0.000000e+00> : vector<48x128xf32>
    %70 = tpu.matmul %69, %41, %cst_28 {dimension_numbers = #tpu.dot_dimension_numbers<[1], [0], [0], [1], [0, 0, 1, 1], [], []>} : vector<48x16xf32>, vector<16x128xf32>, vector<48x128xf32> -> vector<48x128xf32>
    %71 = vector.broadcast %4 : vector<16x1xf32> to vector<16x128xf32>
    %72 = arith.addf %68, %71 : vector<16x128xf32>
    %73 = math.tanh %72 : vector<16x128xf32>
    %cst_29 = arith.constant dense<0.000000e+00> : vector<3x128xf32>
    %74 = tpu.matmul %5, %73, %cst_29 {dimension_numbers = #tpu.dot_dimension_numbers<[1], [0], [0], [1], [0, 0, 1, 1], [], []>} : vector<3x16xf32>, vector<16x128xf32>, vector<3x128xf32> -> vector<3x128xf32>
    %75 = vector.broadcast %6 : vector<3x1xf32> to vector<3x128xf32>
    %76 = arith.addf %74, %75 : vector<3x128xf32>
    %77 = vector.extract_strided_slice %76 {offsets = [0, 0], sizes = [1, 128], strides = [1, 1]} : vector<3x128xf32> to vector<1x128xf32>
    %78 = vector.extract_strided_slice %76 {offsets = [1, 0], sizes = [1, 128], strides = [1, 1]} : vector<3x128xf32> to vector<1x128xf32>
    %79 = arith.maximumf %77, %78 : vector<1x128xf32>
    %80 = vector.extract_strided_slice %76 {offsets = [2, 0], sizes = [1, 128], strides = [1, 1]} : vector<3x128xf32> to vector<1x128xf32>
    %81 = arith.maximumf %79, %80 : vector<1x128xf32>
    %82 = vector.broadcast %81 : vector<1x128xf32> to vector<3x128xf32>
    %83 = arith.subf %76, %82 : vector<3x128xf32>
    %84 = math.exp %83 : vector<3x128xf32>
    %cst_30 = arith.constant dense<0.000000e+00> : vector<128xf32>
    %85 = vector.multi_reduction <add>, %84, %cst_30 [0] : vector<3x128xf32> to vector<128xf32>
    %86 = vector.shape_cast %85 : vector<128xf32> to vector<1x128xf32>
    %87 = tpu.reciprocal %86 {approx = true} : vector<1x128xf32> -> vector<1x128xf32>
    %88 = arith.mulf %86, %87 : vector<1x128xf32>
    %cst_31 = arith.constant 2.000000e+00 : f32
    %89 = vector.broadcast %cst_31 : f32 to vector<1x128xf32>
    %90 = arith.subf %89, %88 : vector<1x128xf32>
    %91 = arith.mulf %87, %90 : vector<1x128xf32>
    %92 = vector.broadcast %91 : vector<1x128xf32> to vector<3x128xf32>
    %93 = arith.mulf %84, %92 : vector<3x128xf32>
    %94 = vector.extract_strided_slice %70 {offsets = [0, 0], sizes = [16, 128], strides = [1, 1]} : vector<48x128xf32> to vector<16x128xf32>
    %95 = vector.extract_strided_slice %93 {offsets = [0, 0], sizes = [1, 128], strides = [1, 1]} : vector<3x128xf32> to vector<1x128xf32>
    %96 = vector.broadcast %95 : vector<1x128xf32> to vector<16x128xf32>
    %97 = arith.mulf %94, %96 : vector<16x128xf32>
    %98 = vector.extract_strided_slice %70 {offsets = [16, 0], sizes = [16, 128], strides = [1, 1]} : vector<48x128xf32> to vector<16x128xf32>
    %99 = vector.extract_strided_slice %93 {offsets = [1, 0], sizes = [1, 128], strides = [1, 1]} : vector<3x128xf32> to vector<1x128xf32>
    %100 = vector.broadcast %99 : vector<1x128xf32> to vector<16x128xf32>
    %101 = arith.mulf %98, %100 : vector<16x128xf32>
    %102 = arith.addf %97, %101 : vector<16x128xf32>
    %103 = vector.extract_strided_slice %70 {offsets = [32, 0], sizes = [16, 128], strides = [1, 1]} : vector<48x128xf32> to vector<16x128xf32>
    %104 = vector.extract_strided_slice %93 {offsets = [2, 0], sizes = [1, 128], strides = [1, 1]} : vector<3x128xf32> to vector<1x128xf32>
    %105 = vector.broadcast %104 : vector<1x128xf32> to vector<16x128xf32>
    %106 = arith.mulf %103, %105 : vector<16x128xf32>
    %107 = arith.addf %102, %106 : vector<16x128xf32>
    %c0_32 = arith.constant 0 : index
    %c0_33 = arith.constant 0 : index
    %108 = vector.load %arg9[%c0_32, %c0_33] : memref<216x24xf32, #tpu.memory_space<vmem>>, vector<72x24xf32>
    %cst_34 = arith.constant dense<0.000000e+00> : vector<72x128xf32>
    %109 = tpu.matmul %108, %44, %cst_34 {dimension_numbers = #tpu.dot_dimension_numbers<[1], [0], [0], [1], [0, 0, 1, 1], [], []>} : vector<72x24xf32>, vector<24x128xf32>, vector<72x128xf32> -> vector<72x128xf32>
    %110 = vector.extract_strided_slice %93 {offsets = [0, 0], sizes = [1, 128], strides = [1, 1]} : vector<3x128xf32> to vector<1x128xf32>
    %111 = vector.extract_strided_slice %109 {offsets = [0, 0], sizes = [24, 128], strides = [1, 1]} : vector<72x128xf32> to vector<24x128xf32>
    %112 = vector.extract_strided_slice %93 {offsets = [0, 0], sizes = [1, 128], strides = [1, 1]} : vector<3x128xf32> to vector<1x128xf32>
    %113 = arith.mulf %110, %112 : vector<1x128xf32>
    %114 = vector.broadcast %113 : vector<1x128xf32> to vector<24x128xf32>
    %115 = arith.mulf %111, %114 : vector<24x128xf32>
    %116 = vector.extract_strided_slice %109 {offsets = [24, 0], sizes = [24, 128], strides = [1, 1]} : vector<72x128xf32> to vector<24x128xf32>
    %117 = vector.extract_strided_slice %93 {offsets = [1, 0], sizes = [1, 128], strides = [1, 1]} : vector<3x128xf32> to vector<1x128xf32>
    %118 = arith.mulf %110, %117 : vector<1x128xf32>
    %119 = vector.broadcast %118 : vector<1x128xf32> to vector<24x128xf32>
    %120 = arith.mulf %116, %119 : vector<24x128xf32>
    %121 = arith.addf %115, %120 : vector<24x128xf32>
    %122 = vector.extract_strided_slice %109 {offsets = [48, 0], sizes = [24, 128], strides = [1, 1]} : vector<72x128xf32> to vector<24x128xf32>
    %123 = vector.extract_strided_slice %93 {offsets = [2, 0], sizes = [1, 128], strides = [1, 1]} : vector<3x128xf32> to vector<1x128xf32>
    %124 = arith.mulf %110, %123 : vector<1x128xf32>
    %125 = vector.broadcast %124 : vector<1x128xf32> to vector<24x128xf32>
    %126 = arith.mulf %122, %125 : vector<24x128xf32>
    %127 = arith.addf %121, %126 : vector<24x128xf32>
    %c72 = arith.constant 72 : index
    %c0_35 = arith.constant 0 : index
    %128 = vector.load %arg9[%c72, %c0_35] : memref<216x24xf32, #tpu.memory_space<vmem>>, vector<72x24xf32>
    %cst_36 = arith.constant dense<0.000000e+00> : vector<72x128xf32>
    %129 = tpu.matmul %128, %44, %cst_36 {dimension_numbers = #tpu.dot_dimension_numbers<[1], [0], [0], [1], [0, 0, 1, 1], [], []>} : vector<72x24xf32>, vector<24x128xf32>, vector<72x128xf32> -> vector<72x128xf32>
    %130 = vector.extract_strided_slice %93 {offsets = [1, 0], sizes = [1, 128], strides = [1, 1]} : vector<3x128xf32> to vector<1x128xf32>
    %131 = vector.extract_strided_slice %129 {offsets = [0, 0], sizes = [24, 128], strides = [1, 1]} : vector<72x128xf32> to vector<24x128xf32>
    %132 = vector.extract_strided_slice %93 {offsets = [0, 0], sizes = [1, 128], strides = [1, 1]} : vector<3x128xf32> to vector<1x128xf32>
    %133 = arith.mulf %130, %132 : vector<1x128xf32>
    %134 = vector.broadcast %133 : vector<1x128xf32> to vector<24x128xf32>
    %135 = arith.mulf %131, %134 : vector<24x128xf32>
    %136 = arith.addf %127, %135 : vector<24x128xf32>
    %137 = vector.extract_strided_slice %129 {offsets = [24, 0], sizes = [24, 128], strides = [1, 1]} : vector<72x128xf32> to vector<24x128xf32>
    %138 = vector.extract_strided_slice %93 {offsets = [1, 0], sizes = [1, 128], strides = [1, 1]} : vector<3x128xf32> to vector<1x128xf32>
    %139 = arith.mulf %130, %138 : vector<1x128xf32>
    %140 = vector.broadcast %139 : vector<1x128xf32> to vector<24x128xf32>
    %141 = arith.mulf %137, %140 : vector<24x128xf32>
    %142 = arith.addf %136, %141 : vector<24x128xf32>
    %143 = vector.extract_strided_slice %129 {offsets = [48, 0], sizes = [24, 128], strides = [1, 1]} : vector<72x128xf32> to vector<24x128xf32>
    %144 = vector.extract_strided_slice %93 {offsets = [2, 0], sizes = [1, 128], strides = [1, 1]} : vector<3x128xf32> to vector<1x128xf32>
    %145 = arith.mulf %130, %144 : vector<1x128xf32>
    %146 = vector.broadcast %145 : vector<1x128xf32> to vector<24x128xf32>
    %147 = arith.mulf %143, %146 : vector<24x128xf32>
    %148 = arith.addf %142, %147 : vector<24x128xf32>
    %c144 = arith.constant 144 : index
    %c0_37 = arith.constant 0 : index
    %149 = vector.load %arg9[%c144, %c0_37] : memref<216x24xf32, #tpu.memory_space<vmem>>, vector<72x24xf32>
    %cst_38 = arith.constant dense<0.000000e+00> : vector<72x128xf32>
    %150 = tpu.matmul %149, %44, %cst_38 {dimension_numbers = #tpu.dot_dimension_numbers<[1], [0], [0], [1], [0, 0, 1, 1], [], []>} : vector<72x24xf32>, vector<24x128xf32>, vector<72x128xf32> -> vector<72x128xf32>
    %151 = vector.extract_strided_slice %93 {offsets = [2, 0], sizes = [1, 128], strides = [1, 1]} : vector<3x128xf32> to vector<1x128xf32>
    %152 = vector.extract_strided_slice %150 {offsets = [0, 0], sizes = [24, 128], strides = [1, 1]} : vector<72x128xf32> to vector<24x128xf32>
    %153 = vector.extract_strided_slice %93 {offsets = [0, 0], sizes = [1, 128], strides = [1, 1]} : vector<3x128xf32> to vector<1x128xf32>
    %154 = arith.mulf %151, %153 : vector<1x128xf32>
    %155 = vector.broadcast %154 : vector<1x128xf32> to vector<24x128xf32>
    %156 = arith.mulf %152, %155 : vector<24x128xf32>
    %157 = arith.addf %148, %156 : vector<24x128xf32>
    %158 = vector.extract_strided_slice %150 {offsets = [24, 0], sizes = [24, 128], strides = [1, 1]} : vector<72x128xf32> to vector<24x128xf32>
    %159 = vector.extract_strided_slice %93 {offsets = [1, 0], sizes = [1, 128], strides = [1, 1]} : vector<3x128xf32> to vector<1x128xf32>
    %160 = arith.mulf %151, %159 : vector<1x128xf32>
    %161 = vector.broadcast %160 : vector<1x128xf32> to vector<24x128xf32>
    %162 = arith.mulf %158, %161 : vector<24x128xf32>
    %163 = arith.addf %157, %162 : vector<24x128xf32>
    %164 = vector.extract_strided_slice %150 {offsets = [48, 0], sizes = [24, 128], strides = [1, 1]} : vector<72x128xf32> to vector<24x128xf32>
    %165 = vector.extract_strided_slice %93 {offsets = [2, 0], sizes = [1, 128], strides = [1, 1]} : vector<3x128xf32> to vector<1x128xf32>
    %166 = arith.mulf %151, %165 : vector<1x128xf32>
    %167 = vector.broadcast %166 : vector<1x128xf32> to vector<24x128xf32>
    %168 = arith.mulf %164, %167 : vector<24x128xf32>
    %169 = arith.addf %163, %168 : vector<24x128xf32>
    %170 = vector.broadcast %7 : vector<24x1xf32> to vector<24x128xf32>
    %171 = arith.addf %169, %170 : vector<24x128xf32>
    %172 = arith.index_cast %c0_i32_14 : i32 to index
    %c40 = arith.constant 40 : index
    %c0_39 = arith.constant 0 : index
    %173 = vector.load %arg11[%172, %c40, %c0_39] : memref<6x96x128xf32, #tpu.memory_space<vmem>>, vector<1x16x128xf32>
    %174 = vector.shape_cast %173 : vector<1x16x128xf32> to vector<16x128xf32>
    %175 = vector.shape_cast %107 : vector<16x128xf32> to vector<1x16x128xf32>
    tpu.vector_store %arg11[%172, %c40, %c0_39], %175 {strides = array<i32>} : memref<6x96x128xf32, #tpu.memory_space<vmem>>, vector<1x16x128xf32>,
    %176 = arith.index_cast %c0_i32_14 : i32 to index
    %c56 = arith.constant 56 : index
    %c0_40 = arith.constant 0 : index
    %177 = vector.load %arg11[%176, %c56, %c0_40] : memref<6x96x128xf32, #tpu.memory_space<vmem>>, vector<1x24x128xf32>
    %178 = vector.shape_cast %177 : vector<1x24x128xf32> to vector<24x128xf32>
    %179 = vector.shape_cast %171 : vector<24x128xf32> to vector<1x24x128xf32>
    tpu.vector_store %arg11[%176, %c56, %c0_40], %179 {strides = array<i32>} : memref<6x96x128xf32, #tpu.memory_space<vmem>>, vector<1x24x128xf32>,
    %c1_i32 = arith.constant 1 : i32
    %180 = arith.index_cast %c1_i32 : i32 to index
    %c0_41 = arith.constant 0 : index
    %c0_42 = arith.constant 0 : index
    %181 = vector.load %arg2[%180, %c0_41, %c0_42] : memref<6x24x128xf32, #tpu.memory_space<vmem>>, vector<1x24x128xf32>
    %182 = vector.shape_cast %181 : vector<1x24x128xf32> to vector<24x128xf32>
    %183 = vector.extract_strided_slice %182 {offsets = [0, 0], sizes = [8, 128], strides = [1, 1]} : vector<24x128xf32> to vector<8x128xf32>
    %184 = vector.extract_strided_slice %182 {offsets = [8, 0], sizes = [8, 128], strides = [1, 1]} : vector<24x128xf32> to vector<8x128xf32>
    %185 = vector.extract_strided_slice %182 {offsets = [16, 0], sizes = [1, 128], strides = [1, 1]} : vector<24x128xf32> to vector<1x128xf32>
    %cst_43 = arith.constant 5.000000e-01 : f32
    %186 = vector.broadcast %cst_43 : f32 to vector<1x128xf32>
    %187 = arith.cmpf ogt, %185, %186 : vector<1x128xf32>
    %188 = vector.extract_strided_slice %171 {offsets = [0, 0], sizes = [8, 128], strides = [1, 1]} : vector<24x128xf32> to vector<8x128xf32>
    %189 = vector.extract_strided_slice %171 {offsets = [8, 0], sizes = [8, 128], strides = [1, 1]} : vector<24x128xf32> to vector<8x128xf32>
    %190 = vector.extract_strided_slice %171 {offsets = [16, 0], sizes = [8, 128], strides = [1, 1]} : vector<24x128xf32> to vector<8x128xf32>
    %191 = arith.addf %188, %184 : vector<8x128xf32>
    %cst_44 = arith.constant 1.000000e+00 : f32
    %192 = vector.broadcast %cst_44 : f32 to vector<8x128xf32>
    %193 = arith.divf %192, %191 : vector<8x128xf32>
    %194 = arith.mulf %188, %193 : vector<8x128xf32>
    %195 = arith.mulf %189, %193 : vector<8x128xf32>
    %196 = vector.extract_strided_slice %107 {offsets = [0, 0], sizes = [8, 128], strides = [1, 1]} : vector<16x128xf32> to vector<8x128xf32>
    %197 = arith.subf %183, %196 : vector<8x128xf32>
    %198 = arith.mulf %194, %197 : vector<8x128xf32>
    %199 = arith.mulf %195, %197 : vector<8x128xf32>
    %200 = tpu.concatenate %198, %199 in 0 : vector<8x128xf32>, vector<8x128xf32> -> vector<16x128xf32>
    %201 = arith.addf %107, %200 : vector<16x128xf32>
    %cst_45 = arith.constant 1.000000e+00 : f32
    %202 = vector.broadcast %cst_45 : f32 to vector<8x128xf32>
    %203 = arith.subf %202, %194 : vector<8x128xf32>
    %204 = arith.mulf %203, %188 : vector<8x128xf32>
    %205 = arith.mulf %203, %189 : vector<8x128xf32>
    %206 = arith.mulf %195, %189 : vector<8x128xf32>
    %207 = arith.subf %190, %206 : vector<8x128xf32>
    %208 = tpu.concatenate %204, %205, %207 in 0 : vector<8x128xf32>, vector<8x128xf32>, vector<8x128xf32> -> vector<24x128xf32>
    %209 = vector.shape_cast %187 : vector<1x128xi1> to vector<1x128xi1>
    %210 = vector.broadcast %209 : vector<1x128xi1> to vector<16x128xi1>
    %211 = arith.select %210, %201, %107 : vector<16x128xi1>, vector<16x128xf32>
    %212 = vector.shape_cast %187 : vector<1x128xi1> to vector<1x128xi1>
    %213 = vector.broadcast %212 : vector<1x128xi1> to vector<24x128xi1>
    %214 = arith.select %213, %208, %171 : vector<24x128xi1>, vector<24x128xf32>
    %cst_46 = arith.constant 0.000000e+00 : f32
    %215 = vector.broadcast %cst_46 : f32 to vector<8x128xf32>
    %216 = vector.shape_cast %187 : vector<1x128xi1> to vector<1x128xi1>
    %217 = vector.broadcast %216 : vector<1x128xi1> to vector<8x128xi1>
    %218 = arith.select %217, %194, %215 : vector<8x128xi1>, vector<8x128xf32>
    %219 = vector.shape_cast %187 : vector<1x128xi1> to vector<1x128xi1>
    %220 = vector.broadcast %219 : vector<1x128xi1> to vector<8x128xi1>
    %221 = arith.select %220, %195, %215 : vector<8x128xi1>, vector<8x128xf32>
    %222 = arith.index_cast %c1_i32 : i32 to index
    %c0_47 = arith.constant 0 : index
    %c0_48 = arith.constant 0 : index
    %223 = vector.load %arg11[%222, %c0_47, %c0_48] : memref<6x96x128xf32, #tpu.memory_space<vmem>>, vector<1x16x128xf32>
    %224 = vector.shape_cast %223 : vector<1x16x128xf32> to vector<16x128xf32>
    %225 = vector.shape_cast %211 : vector<16x128xf32> to vector<1x16x128xf32>
    tpu.vector_store %arg11[%222, %c0_47, %c0_48], %225 {strides = array<i32>} : memref<6x96x128xf32, #tpu.memory_space<vmem>>, vector<1x16x128xf32>,
    %226 = arith.index_cast %c1_i32 : i32 to index
    %c16_49 = arith.constant 16 : index
    %c0_50 = arith.constant 0 : index
    %227 = vector.load %arg11[%226, %c16_49, %c0_50] : memref<6x96x128xf32, #tpu.memory_space<vmem>>, vector<1x24x128xf32>
    %228 = vector.shape_cast %227 : vector<1x24x128xf32> to vector<24x128xf32>
    %229 = vector.shape_cast %214 : vector<24x128xf32> to vector<1x24x128xf32>
    tpu.vector_store %arg11[%226, %c16_49, %c0_50], %229 {strides = array<i32>} : memref<6x96x128xf32, #tpu.memory_space<vmem>>, vector<1x24x128xf32>,
    %230 = arith.index_cast %c1_i32 : i32 to index
    %c80_51 = arith.constant 80 : index
    %c0_52 = arith.constant 0 : index
    %231 = vector.load %arg11[%230, %c80_51, %c0_52] : memref<6x96x128xf32, #tpu.memory_space<vmem>>, vector<1x8x128xf32>
    %232 = vector.shape_cast %231 : vector<1x8x128xf32> to vector<8x128xf32>
    %233 = vector.shape_cast %218 : vector<8x128xf32> to vector<1x8x128xf32>
    tpu.vector_store %arg11[%230, %c80_51, %c0_52], %233 {strides = array<i32>} : memref<6x96x128xf32, #tpu.memory_space<vmem>>, vector<1x8x128xf32>,
    %234 = arith.index_cast %c1_i32 : i32 to index
    %c88_53 = arith.constant 88 : index
    %c0_54 = arith.constant 0 : index
    %235 = vector.load %arg11[%234, %c88_53, %c0_54] : memref<6x96x128xf32, #tpu.memory_space<vmem>>, vector<1x8x128xf32>
    %236 = vector.shape_cast %235 : vector<1x8x128xf32> to vector<8x128xf32>
    %237 = vector.shape_cast %221 : vector<8x128xf32> to vector<1x8x128xf32>
    tpu.vector_store %arg11[%234, %c88_53, %c0_54], %237 {strides = array<i32>} : memref<6x96x128xf32, #tpu.memory_space<vmem>>, vector<1x8x128xf32>,
    %cst_55 = arith.constant dense<0.000000e+00> : vector<16x128xf32>
    %238 = tpu.matmul %3, %211, %cst_55 {dimension_numbers = #tpu.dot_dimension_numbers<[1], [0], [0], [1], [0, 0, 1, 1], [], []>} : vector<16x16xf32>, vector<16x128xf32>, vector<16x128xf32> -> vector<16x128xf32>
    %c0_56 = arith.constant 0 : index
    %c0_57 = arith.constant 0 : index
    %239 = vector.load %arg8[%c0_56, %c0_57] : memref<48x16xf32, #tpu.memory_space<vmem>>, vector<48x16xf32>
    %cst_58 = arith.constant dense<0.000000e+00> : vector<48x128xf32>
    %240 = tpu.matmul %239, %211, %cst_58 {dimension_numbers = #tpu.dot_dimension_numbers<[1], [0], [0], [1], [0, 0, 1, 1], [], []>} : vector<48x16xf32>, vector<16x128xf32>, vector<48x128xf32> -> vector<48x128xf32>
    %241 = vector.broadcast %4 : vector<16x1xf32> to vector<16x128xf32>
    %242 = arith.addf %238, %241 : vector<16x128xf32>
    %243 = math.tanh %242 : vector<16x128xf32>
    %cst_59 = arith.constant dense<0.000000e+00> : vector<3x128xf32>
    %244 = tpu.matmul %5, %243, %cst_59 {dimension_numbers = #tpu.dot_dimension_numbers<[1], [0], [0], [1], [0, 0, 1, 1], [], []>} : vector<3x16xf32>, vector<16x128xf32>, vector<3x128xf32> -> vector<3x128xf32>
    %245 = vector.broadcast %6 : vector<3x1xf32> to vector<3x128xf32>
    %246 = arith.addf %244, %245 : vector<3x128xf32>
    %247 = vector.extract_strided_slice %246 {offsets = [0, 0], sizes = [1, 128], strides = [1, 1]} : vector<3x128xf32> to vector<1x128xf32>
    %248 = vector.extract_strided_slice %246 {offsets = [1, 0], sizes = [1, 128], strides = [1, 1]} : vector<3x128xf32> to vector<1x128xf32>
    %249 = arith.maximumf %247, %248 : vector<1x128xf32>
    %250 = vector.extract_strided_slice %246 {offsets = [2, 0], sizes = [1, 128], strides = [1, 1]} : vector<3x128xf32> to vector<1x128xf32>
    %251 = arith.maximumf %249, %250 : vector<1x128xf32>
    %252 = vector.broadcast %251 : vector<1x128xf32> to vector<3x128xf32>
    %253 = arith.subf %246, %252 : vector<3x128xf32>
    %254 = math.exp %253 : vector<3x128xf32>
    %cst_60 = arith.constant dense<0.000000e+00> : vector<128xf32>
    %255 = vector.multi_reduction <add>, %254, %cst_60 [0] : vector<3x128xf32> to vector<128xf32>
    %256 = vector.shape_cast %255 : vector<128xf32> to vector<1x128xf32>
    %257 = tpu.reciprocal %256 {approx = true} : vector<1x128xf32> -> vector<1x128xf32>
    %258 = arith.mulf %256, %257 : vector<1x128xf32>
    %cst_61 = arith.constant 2.000000e+00 : f32
    %259 = vector.broadcast %cst_61 : f32 to vector<1x128xf32>
    %260 = arith.subf %259, %258 : vector<1x128xf32>
    %261 = arith.mulf %257, %260 : vector<1x128xf32>
    %262 = vector.broadcast %261 : vector<1x128xf32> to vector<3x128xf32>
    %263 = arith.mulf %254, %262 : vector<3x128xf32>
    %264 = vector.extract_strided_slice %240 {offsets = [0, 0], sizes = [16, 128], strides = [1, 1]} : vector<48x128xf32> to vector<16x128xf32>
    %265 = vector.extract_strided_slice %263 {offsets = [0, 0], sizes = [1, 128], strides = [1, 1]} : vector<3x128xf32> to vector<1x128xf32>
    %266 = vector.broadcast %265 : vector<1x128xf32> to vector<16x128xf32>
    %267 = arith.mulf %264, %266 : vector<16x128xf32>
    %268 = vector.extract_strided_slice %240 {offsets = [16, 0], sizes = [16, 128], strides = [1, 1]} : vector<48x128xf32> to vector<16x128xf32>
    %269 = vector.extract_strided_slice %263 {offsets = [1, 0], sizes = [1, 128], strides = [1, 1]} : vector<3x128xf32> to vector<1x128xf32>
    %270 = vector.broadcast %269 : vector<1x128xf32> to vector<16x128xf32>
    %271 = arith.mulf %268, %270 : vector<16x128xf32>
    %272 = arith.addf %267, %271 : vector<16x128xf32>
    %273 = vector.extract_strided_slice %240 {offsets = [32, 0], sizes = [16, 128], strides = [1, 1]} : vector<48x128xf32> to vector<16x128xf32>
    %274 = vector.extract_strided_slice %263 {offsets = [2, 0], sizes = [1, 128], strides = [1, 1]} : vector<3x128xf32> to vector<1x128xf32>
    %275 = vector.broadcast %274 : vector<1x128xf32> to vector<16x128xf32>
    %276 = arith.mulf %273, %275 : vector<16x128xf32>
    %277 = arith.addf %272, %276 : vector<16x128xf32>
    %c0_62 = arith.constant 0 : index
    %c0_63 = arith.constant 0 : index
    %278 = vector.load %arg9[%c0_62, %c0_63] : memref<216x24xf32, #tpu.memory_space<vmem>>, vector<72x24xf32>
    %cst_64 = arith.constant dense<0.000000e+00> : vector<72x128xf32>
    %279 = tpu.matmul %278, %214, %cst_64 {dimension_numbers = #tpu.dot_dimension_numbers<[1], [0], [0], [1], [0, 0, 1, 1], [], []>} : vector<72x24xf32>, vector<24x128xf32>, vector<72x128xf32> -> vector<72x128xf32>
    %280 = vector.extract_strided_slice %263 {offsets = [0, 0], sizes = [1, 128], strides = [1, 1]} : vector<3x128xf32> to vector<1x128xf32>
    %281 = vector.extract_strided_slice %279 {offsets = [0, 0], sizes = [24, 128], strides = [1, 1]} : vector<72x128xf32> to vector<24x128xf32>
    %282 = vector.extract_strided_slice %263 {offsets = [0, 0], sizes = [1, 128], strides = [1, 1]} : vector<3x128xf32> to vector<1x128xf32>
    %283 = arith.mulf %280, %282 : vector<1x128xf32>
    %284 = vector.broadcast %283 : vector<1x128xf32> to vector<24x128xf32>
    %285 = arith.mulf %281, %284 : vector<24x128xf32>
    %286 = vector.extract_strided_slice %279 {offsets = [24, 0], sizes = [24, 128], strides = [1, 1]} : vector<72x128xf32> to vector<24x128xf32>
    %287 = vector.extract_strided_slice %263 {offsets = [1, 0], sizes = [1, 128], strides = [1, 1]} : vector<3x128xf32> to vector<1x128xf32>
    %288 = arith.mulf %280, %287 : vector<1x128xf32>
    %289 = vector.broadcast %288 : vector<1x128xf32> to vector<24x128xf32>
    %290 = arith.mulf %286, %289 : vector<24x128xf32>
    %291 = arith.addf %285, %290 : vector<24x128xf32>
    %292 = vector.extract_strided_slice %279 {offsets = [48, 0], sizes = [24, 128], strides = [1, 1]} : vector<72x128xf32> to vector<24x128xf32>
    %293 = vector.extract_strided_slice %263 {offsets = [2, 0], sizes = [1, 128], strides = [1, 1]} : vector<3x128xf32> to vector<1x128xf32>
    %294 = arith.mulf %280, %293 : vector<1x128xf32>
    %295 = vector.broadcast %294 : vector<1x128xf32> to vector<24x128xf32>
    %296 = arith.mulf %292, %295 : vector<24x128xf32>
    %297 = arith.addf %291, %296 : vector<24x128xf32>
    %c72_65 = arith.constant 72 : index
    %c0_66 = arith.constant 0 : index
    %298 = vector.load %arg9[%c72_65, %c0_66] : memref<216x24xf32, #tpu.memory_space<vmem>>, vector<72x24xf32>
    %cst_67 = arith.constant dense<0.000000e+00> : vector<72x128xf32>
    %299 = tpu.matmul %298, %214, %cst_67 {dimension_numbers = #tpu.dot_dimension_numbers<[1], [0], [0], [1], [0, 0, 1, 1], [], []>} : vector<72x24xf32>, vector<24x128xf32>, vector<72x128xf32> -> vector<72x128xf32>
    %300 = vector.extract_strided_slice %263 {offsets = [1, 0], sizes = [1, 128], strides = [1, 1]} : vector<3x128xf32> to vector<1x128xf32>
    %301 = vector.extract_strided_slice %299 {offsets = [0, 0], sizes = [24, 128], strides = [1, 1]} : vector<72x128xf32> to vector<24x128xf32>
    %302 = vector.extract_strided_slice %263 {offsets = [0, 0], sizes = [1, 128], strides = [1, 1]} : vector<3x128xf32> to vector<1x128xf32>
    %303 = arith.mulf %300, %302 : vector<1x128xf32>
    %304 = vector.broadcast %303 : vector<1x128xf32> to vector<24x128xf32>
    %305 = arith.mulf %301, %304 : vector<24x128xf32>
    %306 = arith.addf %297, %305 : vector<24x128xf32>
    %307 = vector.extract_strided_slice %299 {offsets = [24, 0], sizes = [24, 128], strides = [1, 1]} : vector<72x128xf32> to vector<24x128xf32>
    %308 = vector.extract_strided_slice %263 {offsets = [1, 0], sizes = [1, 128], strides = [1, 1]} : vector<3x128xf32> to vector<1x128xf32>
    %309 = arith.mulf %300, %308 : vector<1x128xf32>
    %310 = vector.broadcast %309 : vector<1x128xf32> to vector<24x128xf32>
    %311 = arith.mulf %307, %310 : vector<24x128xf32>
    %312 = arith.addf %306, %311 : vector<24x128xf32>
    %313 = vector.extract_strided_slice %299 {offsets = [48, 0], sizes = [24, 128], strides = [1, 1]} : vector<72x128xf32> to vector<24x128xf32>
    %314 = vector.extract_strided_slice %263 {offsets = [2, 0], sizes = [1, 128], strides = [1, 1]} : vector<3x128xf32> to vector<1x128xf32>
    %315 = arith.mulf %300, %314 : vector<1x128xf32>
    %316 = vector.broadcast %315 : vector<1x128xf32> to vector<24x128xf32>
    %317 = arith.mulf %313, %316 : vector<24x128xf32>
    %318 = arith.addf %312, %317 : vector<24x128xf32>
    %c144_68 = arith.constant 144 : index
    %c0_69 = arith.constant 0 : index
    %319 = vector.load %arg9[%c144_68, %c0_69] : memref<216x24xf32, #tpu.memory_space<vmem>>, vector<72x24xf32>
    %cst_70 = arith.constant dense<0.000000e+00> : vector<72x128xf32>
    %320 = tpu.matmul %319, %214, %cst_70 {dimension_numbers = #tpu.dot_dimension_numbers<[1], [0], [0], [1], [0, 0, 1, 1], [], []>} : vector<72x24xf32>, vector<24x128xf32>, vector<72x128xf32> -> vector<72x128xf32>
    %321 = vector.extract_strided_slice %263 {offsets = [2, 0], sizes = [1, 128], strides = [1, 1]} : vector<3x128xf32> to vector<1x128xf32>
    %322 = vector.extract_strided_slice %320 {offsets = [0, 0], sizes = [24, 128], strides = [1, 1]} : vector<72x128xf32> to vector<24x128xf32>
    %323 = vector.extract_strided_slice %263 {offsets = [0, 0], sizes = [1, 128], strides = [1, 1]} : vector<3x128xf32> to vector<1x128xf32>
    %324 = arith.mulf %321, %323 : vector<1x128xf32>
    %325 = vector.broadcast %324 : vector<1x128xf32> to vector<24x128xf32>
    %326 = arith.mulf %322, %325 : vector<24x128xf32>
    %327 = arith.addf %318, %326 : vector<24x128xf32>
    %328 = vector.extract_strided_slice %320 {offsets = [24, 0], sizes = [24, 128], strides = [1, 1]} : vector<72x128xf32> to vector<24x128xf32>
    %329 = vector.extract_strided_slice %263 {offsets = [1, 0], sizes = [1, 128], strides = [1, 1]} : vector<3x128xf32> to vector<1x128xf32>
    %330 = arith.mulf %321, %329 : vector<1x128xf32>
    %331 = vector.broadcast %330 : vector<1x128xf32> to vector<24x128xf32>
    %332 = arith.mulf %328, %331 : vector<24x128xf32>
    %333 = arith.addf %327, %332 : vector<24x128xf32>
    %334 = vector.extract_strided_slice %320 {offsets = [48, 0], sizes = [24, 128], strides = [1, 1]} : vector<72x128xf32> to vector<24x128xf32>
    %335 = vector.extract_strided_slice %263 {offsets = [2, 0], sizes = [1, 128], strides = [1, 1]} : vector<3x128xf32> to vector<1x128xf32>
    %336 = arith.mulf %321, %335 : vector<1x128xf32>
    %337 = vector.broadcast %336 : vector<1x128xf32> to vector<24x128xf32>
    %338 = arith.mulf %334, %337 : vector<24x128xf32>
    %339 = arith.addf %333, %338 : vector<24x128xf32>
    %340 = vector.broadcast %7 : vector<24x1xf32> to vector<24x128xf32>
    %341 = arith.addf %339, %340 : vector<24x128xf32>
    %342 = arith.index_cast %c1_i32 : i32 to index
    %c40_71 = arith.constant 40 : index
    %c0_72 = arith.constant 0 : index
    %343 = vector.load %arg11[%342, %c40_71, %c0_72] : memref<6x96x128xf32, #tpu.memory_space<vmem>>, vector<1x16x128xf32>
    %344 = vector.shape_cast %343 : vector<1x16x128xf32> to vector<16x128xf32>
    %345 = vector.shape_cast %277 : vector<16x128xf32> to vector<1x16x128xf32>
    tpu.vector_store %arg11[%342, %c40_71, %c0_72], %345 {strides = array<i32>} : memref<6x96x128xf32, #tpu.memory_space<vmem>>, vector<1x16x128xf32>,
    %346 = arith.index_cast %c1_i32 : i32 to index
    %c56_73 = arith.constant 56 : index
    %c0_74 = arith.constant 0 : index
    %347 = vector.load %arg11[%346, %c56_73, %c0_74] : memref<6x96x128xf32, #tpu.memory_space<vmem>>, vector<1x24x128xf32>
    %348 = vector.shape_cast %347 : vector<1x24x128xf32> to vector<24x128xf32>
    %349 = vector.shape_cast %341 : vector<24x128xf32> to vector<1x24x128xf32>
    tpu.vector_store %arg11[%346, %c56_73, %c0_74], %349 {strides = array<i32>} : memref<6x96x128xf32, #tpu.memory_space<vmem>>, vector<1x24x128xf32>,
    %c2_i32 = arith.constant 2 : i32
    %350 = arith.index_cast %c2_i32 : i32 to index
    %c0_75 = arith.constant 0 : index
    %c0_76 = arith.constant 0 : index
    %351 = vector.load %arg2[%350, %c0_75, %c0_76] : memref<6x24x128xf32, #tpu.memory_space<vmem>>, vector<1x24x128xf32>
    %352 = vector.shape_cast %351 : vector<1x24x128xf32> to vector<24x128xf32>
    %353 = vector.extract_strided_slice %352 {offsets = [0, 0], sizes = [8, 128], strides = [1, 1]} : vector<24x128xf32> to vector<8x128xf32>
    %354 = vector.extract_strided_slice %352 {offsets = [8, 0], sizes = [8, 128], strides = [1, 1]} : vector<24x128xf32> to vector<8x128xf32>
    %355 = vector.extract_strided_slice %352 {offsets = [16, 0], sizes = [1, 128], strides = [1, 1]} : vector<24x128xf32> to vector<1x128xf32>
    %cst_77 = arith.constant 5.000000e-01 : f32
    %356 = vector.broadcast %cst_77 : f32 to vector<1x128xf32>
    %357 = arith.cmpf ogt, %355, %356 : vector<1x128xf32>
    %358 = vector.extract_strided_slice %341 {offsets = [0, 0], sizes = [8, 128], strides = [1, 1]} : vector<24x128xf32> to vector<8x128xf32>
    %359 = vector.extract_strided_slice %341 {offsets = [8, 0], sizes = [8, 128], strides = [1, 1]} : vector<24x128xf32> to vector<8x128xf32>
    %360 = vector.extract_strided_slice %341 {offsets = [16, 0], sizes = [8, 128], strides = [1, 1]} : vector<24x128xf32> to vector<8x128xf32>
    %361 = arith.addf %358, %354 : vector<8x128xf32>
    %cst_78 = arith.constant 1.000000e+00 : f32
    %362 = vector.broadcast %cst_78 : f32 to vector<8x128xf32>
    %363 = arith.divf %362, %361 : vector<8x128xf32>
    %364 = arith.mulf %358, %363 : vector<8x128xf32>
    %365 = arith.mulf %359, %363 : vector<8x128xf32>
    %366 = vector.extract_strided_slice %277 {offsets = [0, 0], sizes = [8, 128], strides = [1, 1]} : vector<16x128xf32> to vector<8x128xf32>
    %367 = arith.subf %353, %366 : vector<8x128xf32>
    %368 = arith.mulf %364, %367 : vector<8x128xf32>
    %369 = arith.mulf %365, %367 : vector<8x128xf32>
    %370 = tpu.concatenate %368, %369 in 0 : vector<8x128xf32>, vector<8x128xf32> -> vector<16x128xf32>
    %371 = arith.addf %277, %370 : vector<16x128xf32>
    %cst_79 = arith.constant 1.000000e+00 : f32
    %372 = vector.broadcast %cst_79 : f32 to vector<8x128xf32>
    %373 = arith.subf %372, %364 : vector<8x128xf32>
    %374 = arith.mulf %373, %358 : vector<8x128xf32>
    %375 = arith.mulf %373, %359 : vector<8x128xf32>
    %376 = arith.mulf %365, %359 : vector<8x128xf32>
    %377 = arith.subf %360, %376 : vector<8x128xf32>
    %378 = tpu.concatenate %374, %375, %377 in 0 : vector<8x128xf32>, vector<8x128xf32>, vector<8x128xf32> -> vector<24x128xf32>
    %379 = vector.shape_cast %357 : vector<1x128xi1> to vector<1x128xi1>
    %380 = vector.broadcast %379 : vector<1x128xi1> to vector<16x128xi1>
    %381 = arith.select %380, %371, %277 : vector<16x128xi1>, vector<16x128xf32>
    %382 = vector.shape_cast %357 : vector<1x128xi1> to vector<1x128xi1>
    %383 = vector.broadcast %382 : vector<1x128xi1> to vector<24x128xi1>
    %384 = arith.select %383, %378, %341 : vector<24x128xi1>, vector<24x128xf32>
    %cst_80 = arith.constant 0.000000e+00 : f32
    %385 = vector.broadcast %cst_80 : f32 to vector<8x128xf32>
    %386 = vector.shape_cast %357 : vector<1x128xi1> to vector<1x128xi1>
    %387 = vector.broadcast %386 : vector<1x128xi1> to vector<8x128xi1>
    %388 = arith.select %387, %364, %385 : vector<8x128xi1>, vector<8x128xf32>
    %389 = vector.shape_cast %357 : vector<1x128xi1> to vector<1x128xi1>
    %390 = vector.broadcast %389 : vector<1x128xi1> to vector<8x128xi1>
    %391 = arith.select %390, %365, %385 : vector<8x128xi1>, vector<8x128xf32>
    %392 = arith.index_cast %c2_i32 : i32 to index
    %c0_81 = arith.constant 0 : index
    %c0_82 = arith.constant 0 : index
    %393 = vector.load %arg11[%392, %c0_81, %c0_82] : memref<6x96x128xf32, #tpu.memory_space<vmem>>, vector<1x16x128xf32>
    %394 = vector.shape_cast %393 : vector<1x16x128xf32> to vector<16x128xf32>
    %395 = vector.shape_cast %381 : vector<16x128xf32> to vector<1x16x128xf32>
    tpu.vector_store %arg11[%392, %c0_81, %c0_82], %395 {strides = array<i32>} : memref<6x96x128xf32, #tpu.memory_space<vmem>>, vector<1x16x128xf32>,
    %396 = arith.index_cast %c2_i32 : i32 to index
    %c16_83 = arith.constant 16 : index
    %c0_84 = arith.constant 0 : index
    %397 = vector.load %arg11[%396, %c16_83, %c0_84] : memref<6x96x128xf32, #tpu.memory_space<vmem>>, vector<1x24x128xf32>
    %398 = vector.shape_cast %397 : vector<1x24x128xf32> to vector<24x128xf32>
    %399 = vector.shape_cast %384 : vector<24x128xf32> to vector<1x24x128xf32>
    tpu.vector_store %arg11[%396, %c16_83, %c0_84], %399 {strides = array<i32>} : memref<6x96x128xf32, #tpu.memory_space<vmem>>, vector<1x24x128xf32>,
    %400 = arith.index_cast %c2_i32 : i32 to index
    %c80_85 = arith.constant 80 : index
    %c0_86 = arith.constant 0 : index
    %401 = vector.load %arg11[%400, %c80_85, %c0_86] : memref<6x96x128xf32, #tpu.memory_space<vmem>>, vector<1x8x128xf32>
    %402 = vector.shape_cast %401 : vector<1x8x128xf32> to vector<8x128xf32>
    %403 = vector.shape_cast %388 : vector<8x128xf32> to vector<1x8x128xf32>
    tpu.vector_store %arg11[%400, %c80_85, %c0_86], %403 {strides = array<i32>} : memref<6x96x128xf32, #tpu.memory_space<vmem>>, vector<1x8x128xf32>,
    %404 = arith.index_cast %c2_i32 : i32 to index
    %c88_87 = arith.constant 88 : index
    %c0_88 = arith.constant 0 : index
    %405 = vector.load %arg11[%404, %c88_87, %c0_88] : memref<6x96x128xf32, #tpu.memory_space<vmem>>, vector<1x8x128xf32>
    %406 = vector.shape_cast %405 : vector<1x8x128xf32> to vector<8x128xf32>
    %407 = vector.shape_cast %391 : vector<8x128xf32> to vector<1x8x128xf32>
    tpu.vector_store %arg11[%404, %c88_87, %c0_88], %407 {strides = array<i32>} : memref<6x96x128xf32, #tpu.memory_space<vmem>>, vector<1x8x128xf32>,
    %cst_89 = arith.constant dense<0.000000e+00> : vector<16x128xf32>
    %408 = tpu.matmul %3, %381, %cst_89 {dimension_numbers = #tpu.dot_dimension_numbers<[1], [0], [0], [1], [0, 0, 1, 1], [], []>} : vector<16x16xf32>, vector<16x128xf32>, vector<16x128xf32> -> vector<16x128xf32>
    %c0_90 = arith.constant 0 : index
    %c0_91 = arith.constant 0 : index
    %409 = vector.load %arg8[%c0_90, %c0_91] : memref<48x16xf32, #tpu.memory_space<vmem>>, vector<48x16xf32>
    %cst_92 = arith.constant dense<0.000000e+00> : vector<48x128xf32>
    %410 = tpu.matmul %409, %381, %cst_92 {dimension_numbers = #tpu.dot_dimension_numbers<[1], [0], [0], [1], [0, 0, 1, 1], [], []>} : vector<48x16xf32>, vector<16x128xf32>, vector<48x128xf32> -> vector<48x128xf32>
    %411 = vector.broadcast %4 : vector<16x1xf32> to vector<16x128xf32>
    %412 = arith.addf %408, %411 : vector<16x128xf32>
    %413 = math.tanh %412 : vector<16x128xf32>
    %cst_93 = arith.constant dense<0.000000e+00> : vector<3x128xf32>
    %414 = tpu.matmul %5, %413, %cst_93 {dimension_numbers = #tpu.dot_dimension_numbers<[1], [0], [0], [1], [0, 0, 1, 1], [], []>} : vector<3x16xf32>, vector<16x128xf32>, vector<3x128xf32> -> vector<3x128xf32>
    %415 = vector.broadcast %6 : vector<3x1xf32> to vector<3x128xf32>
    %416 = arith.addf %414, %415 : vector<3x128xf32>
    %417 = vector.extract_strided_slice %416 {offsets = [0, 0], sizes = [1, 128], strides = [1, 1]} : vector<3x128xf32> to vector<1x128xf32>
    %418 = vector.extract_strided_slice %416 {offsets = [1, 0], sizes = [1, 128], strides = [1, 1]} : vector<3x128xf32> to vector<1x128xf32>
    %419 = arith.maximumf %417, %418 : vector<1x128xf32>
    %420 = vector.extract_strided_slice %416 {offsets = [2, 0], sizes = [1, 128], strides = [1, 1]} : vector<3x128xf32> to vector<1x128xf32>
    %421 = arith.maximumf %419, %420 : vector<1x128xf32>
    %422 = vector.broadcast %421 : vector<1x128xf32> to vector<3x128xf32>
    %423 = arith.subf %416, %422 : vector<3x128xf32>
    %424 = math.exp %423 : vector<3x128xf32>
    %cst_94 = arith.constant dense<0.000000e+00> : vector<128xf32>
    %425 = vector.multi_reduction <add>, %424, %cst_94 [0] : vector<3x128xf32> to vector<128xf32>
    %426 = vector.shape_cast %425 : vector<128xf32> to vector<1x128xf32>
    %427 = tpu.reciprocal %426 {approx = true} : vector<1x128xf32> -> vector<1x128xf32>
    %428 = arith.mulf %426, %427 : vector<1x128xf32>
    %cst_95 = arith.constant 2.000000e+00 : f32
    %429 = vector.broadcast %cst_95 : f32 to vector<1x128xf32>
    %430 = arith.subf %429, %428 : vector<1x128xf32>
    %431 = arith.mulf %427, %430 : vector<1x128xf32>
    %432 = vector.broadcast %431 : vector<1x128xf32> to vector<3x128xf32>
    %433 = arith.mulf %424, %432 : vector<3x128xf32>
    %434 = vector.extract_strided_slice %410 {offsets = [0, 0], sizes = [16, 128], strides = [1, 1]} : vector<48x128xf32> to vector<16x128xf32>
    %435 = vector.extract_strided_slice %433 {offsets = [0, 0], sizes = [1, 128], strides = [1, 1]} : vector<3x128xf32> to vector<1x128xf32>
    %436 = vector.broadcast %435 : vector<1x128xf32> to vector<16x128xf32>
    %437 = arith.mulf %434, %436 : vector<16x128xf32>
    %438 = vector.extract_strided_slice %410 {offsets = [16, 0], sizes = [16, 128], strides = [1, 1]} : vector<48x128xf32> to vector<16x128xf32>
    %439 = vector.extract_strided_slice %433 {offsets = [1, 0], sizes = [1, 128], strides = [1, 1]} : vector<3x128xf32> to vector<1x128xf32>
    %440 = vector.broadcast %439 : vector<1x128xf32> to vector<16x128xf32>
    %441 = arith.mulf %438, %440 : vector<16x128xf32>
    %442 = arith.addf %437, %441 : vector<16x128xf32>
    %443 = vector.extract_strided_slice %410 {offsets = [32, 0], sizes = [16, 128], strides = [1, 1]} : vector<48x128xf32> to vector<16x128xf32>
    %444 = vector.extract_strided_slice %433 {offsets = [2, 0], sizes = [1, 128], strides = [1, 1]} : vector<3x128xf32> to vector<1x128xf32>
    %445 = vector.broadcast %444 : vector<1x128xf32> to vector<16x128xf32>
    %446 = arith.mulf %443, %445 : vector<16x128xf32>
    %447 = arith.addf %442, %446 : vector<16x128xf32>
    %c0_96 = arith.constant 0 : index
    %c0_97 = arith.constant 0 : index
    %448 = vector.load %arg9[%c0_96, %c0_97] : memref<216x24xf32, #tpu.memory_space<vmem>>, vector<72x24xf32>
    %cst_98 = arith.constant dense<0.000000e+00> : vector<72x128xf32>
    %449 = tpu.matmul %448, %384, %cst_98 {dimension_numbers = #tpu.dot_dimension_numbers<[1], [0], [0], [1], [0, 0, 1, 1], [], []>} : vector<72x24xf32>, vector<24x128xf32>, vector<72x128xf32> -> vector<72x128xf32>
    %450 = vector.extract_strided_slice %433 {offsets = [0, 0], sizes = [1, 128], strides = [1, 1]} : vector<3x128xf32> to vector<1x128xf32>
    %451 = vector.extract_strided_slice %449 {offsets = [0, 0], sizes = [24, 128], strides = [1, 1]} : vector<72x128xf32> to vector<24x128xf32>
    %452 = vector.extract_strided_slice %433 {offsets = [0, 0], sizes = [1, 128], strides = [1, 1]} : vector<3x128xf32> to vector<1x128xf32>
    %453 = arith.mulf %450, %452 : vector<1x128xf32>
    %454 = vector.broadcast %453 : vector<1x128xf32> to vector<24x128xf32>
    %455 = arith.mulf %451, %454 : vector<24x128xf32>
    %456 = vector.extract_strided_slice %449 {offsets = [24, 0], sizes = [24, 128], strides = [1, 1]} : vector<72x128xf32> to vector<24x128xf32>
    %457 = vector.extract_strided_slice %433 {offsets = [1, 0], sizes = [1, 128], strides = [1, 1]} : vector<3x128xf32> to vector<1x128xf32>
    %458 = arith.mulf %450, %457 : vector<1x128xf32>
    %459 = vector.broadcast %458 : vector<1x128xf32> to vector<24x128xf32>
    %460 = arith.mulf %456, %459 : vector<24x128xf32>
    %461 = arith.addf %455, %460 : vector<24x128xf32>
    %462 = vector.extract_strided_slice %449 {offsets = [48, 0], sizes = [24, 128], strides = [1, 1]} : vector<72x128xf32> to vector<24x128xf32>
    %463 = vector.extract_strided_slice %433 {offsets = [2, 0], sizes = [1, 128], strides = [1, 1]} : vector<3x128xf32> to vector<1x128xf32>
    %464 = arith.mulf %450, %463 : vector<1x128xf32>
    %465 = vector.broadcast %464 : vector<1x128xf32> to vector<24x128xf32>
    %466 = arith.mulf %462, %465 : vector<24x128xf32>
    %467 = arith.addf %461, %466 : vector<24x128xf32>
    %c72_99 = arith.constant 72 : index
    %c0_100 = arith.constant 0 : index
    %468 = vector.load %arg9[%c72_99, %c0_100] : memref<216x24xf32, #tpu.memory_space<vmem>>, vector<72x24xf32>
    %cst_101 = arith.constant dense<0.000000e+00> : vector<72x128xf32>
    %469 = tpu.matmul %468, %384, %cst_101 {dimension_numbers = #tpu.dot_dimension_numbers<[1], [0], [0], [1], [0, 0, 1, 1], [], []>} : vector<72x24xf32>, vector<24x128xf32>, vector<72x128xf32> -> vector<72x128xf32>
    %470 = vector.extract_strided_slice %433 {offsets = [1, 0], sizes = [1, 128], strides = [1, 1]} : vector<3x128xf32> to vector<1x128xf32>
    %471 = vector.extract_strided_slice %469 {offsets = [0, 0], sizes = [24, 128], strides = [1, 1]} : vector<72x128xf32> to vector<24x128xf32>
    %472 = vector.extract_strided_slice %433 {offsets = [0, 0], sizes = [1, 128], strides = [1, 1]} : vector<3x128xf32> to vector<1x128xf32>
    %473 = arith.mulf %470, %472 : vector<1x128xf32>
    %474 = vector.broadcast %473 : vector<1x128xf32> to vector<24x128xf32>
    %475 = arith.mulf %471, %474 : vector<24x128xf32>
    %476 = arith.addf %467, %475 : vector<24x128xf32>
    %477 = vector.extract_strided_slice %469 {offsets = [24, 0], sizes = [24, 128], strides = [1, 1]} : vector<72x128xf32> to vector<24x128xf32>
    %478 = vector.extract_strided_slice %433 {offsets = [1, 0], sizes = [1, 128], strides = [1, 1]} : vector<3x128xf32> to vector<1x128xf32>
    %479 = arith.mulf %470, %478 : vector<1x128xf32>
    %480 = vector.broadcast %479 : vector<1x128xf32> to vector<24x128xf32>
    %481 = arith.mulf %477, %480 : vector<24x128xf32>
    %482 = arith.addf %476, %481 : vector<24x128xf32>
    %483 = vector.extract_strided_slice %469 {offsets = [48, 0], sizes = [24, 128], strides = [1, 1]} : vector<72x128xf32> to vector<24x128xf32>
    %484 = vector.extract_strided_slice %433 {offsets = [2, 0], sizes = [1, 128], strides = [1, 1]} : vector<3x128xf32> to vector<1x128xf32>
    %485 = arith.mulf %470, %484 : vector<1x128xf32>
    %486 = vector.broadcast %485 : vector<1x128xf32> to vector<24x128xf32>
    %487 = arith.mulf %483, %486 : vector<24x128xf32>
    %488 = arith.addf %482, %487 : vector<24x128xf32>
    %c144_102 = arith.constant 144 : index
    %c0_103 = arith.constant 0 : index
    %489 = vector.load %arg9[%c144_102, %c0_103] : memref<216x24xf32, #tpu.memory_space<vmem>>, vector<72x24xf32>
    %cst_104 = arith.constant dense<0.000000e+00> : vector<72x128xf32>
    %490 = tpu.matmul %489, %384, %cst_104 {dimension_numbers = #tpu.dot_dimension_numbers<[1], [0], [0], [1], [0, 0, 1, 1], [], []>} : vector<72x24xf32>, vector<24x128xf32>, vector<72x128xf32> -> vector<72x128xf32>
    %491 = vector.extract_strided_slice %433 {offsets = [2, 0], sizes = [1, 128], strides = [1, 1]} : vector<3x128xf32> to vector<1x128xf32>
    %492 = vector.extract_strided_slice %490 {offsets = [0, 0], sizes = [24, 128], strides = [1, 1]} : vector<72x128xf32> to vector<24x128xf32>
    %493 = vector.extract_strided_slice %433 {offsets = [0, 0], sizes = [1, 128], strides = [1, 1]} : vector<3x128xf32> to vector<1x128xf32>
    %494 = arith.mulf %491, %493 : vector<1x128xf32>
    %495 = vector.broadcast %494 : vector<1x128xf32> to vector<24x128xf32>
    %496 = arith.mulf %492, %495 : vector<24x128xf32>
    %497 = arith.addf %488, %496 : vector<24x128xf32>
    %498 = vector.extract_strided_slice %490 {offsets = [24, 0], sizes = [24, 128], strides = [1, 1]} : vector<72x128xf32> to vector<24x128xf32>
    %499 = vector.extract_strided_slice %433 {offsets = [1, 0], sizes = [1, 128], strides = [1, 1]} : vector<3x128xf32> to vector<1x128xf32>
    %500 = arith.mulf %491, %499 : vector<1x128xf32>
    %501 = vector.broadcast %500 : vector<1x128xf32> to vector<24x128xf32>
    %502 = arith.mulf %498, %501 : vector<24x128xf32>
    %503 = arith.addf %497, %502 : vector<24x128xf32>
    %504 = vector.extract_strided_slice %490 {offsets = [48, 0], sizes = [24, 128], strides = [1, 1]} : vector<72x128xf32> to vector<24x128xf32>
    %505 = vector.extract_strided_slice %433 {offsets = [2, 0], sizes = [1, 128], strides = [1, 1]} : vector<3x128xf32> to vector<1x128xf32>
    %506 = arith.mulf %491, %505 : vector<1x128xf32>
    %507 = vector.broadcast %506 : vector<1x128xf32> to vector<24x128xf32>
    %508 = arith.mulf %504, %507 : vector<24x128xf32>
    %509 = arith.addf %503, %508 : vector<24x128xf32>
    %510 = vector.broadcast %7 : vector<24x1xf32> to vector<24x128xf32>
    %511 = arith.addf %509, %510 : vector<24x128xf32>
    %512 = arith.index_cast %c2_i32 : i32 to index
    %c40_105 = arith.constant 40 : index
    %c0_106 = arith.constant 0 : index
    %513 = vector.load %arg11[%512, %c40_105, %c0_106] : memref<6x96x128xf32, #tpu.memory_space<vmem>>, vector<1x16x128xf32>
    %514 = vector.shape_cast %513 : vector<1x16x128xf32> to vector<16x128xf32>
    %515 = vector.shape_cast %447 : vector<16x128xf32> to vector<1x16x128xf32>
    tpu.vector_store %arg11[%512, %c40_105, %c0_106], %515 {strides = array<i32>} : memref<6x96x128xf32, #tpu.memory_space<vmem>>, vector<1x16x128xf32>,
    %516 = arith.index_cast %c2_i32 : i32 to index
    %c56_107 = arith.constant 56 : index
    %c0_108 = arith.constant 0 : index
    %517 = vector.load %arg11[%516, %c56_107, %c0_108] : memref<6x96x128xf32, #tpu.memory_space<vmem>>, vector<1x24x128xf32>
    %518 = vector.shape_cast %517 : vector<1x24x128xf32> to vector<24x128xf32>
    %519 = vector.shape_cast %511 : vector<24x128xf32> to vector<1x24x128xf32>
    tpu.vector_store %arg11[%516, %c56_107, %c0_108], %519 {strides = array<i32>} : memref<6x96x128xf32, #tpu.memory_space<vmem>>, vector<1x24x128xf32>,
    %c3_i32 = arith.constant 3 : i32
    %520 = arith.index_cast %c3_i32 : i32 to index
    %c0_109 = arith.constant 0 : index
    %c0_110 = arith.constant 0 : index
    %521 = vector.load %arg2[%520, %c0_109, %c0_110] : memref<6x24x128xf32, #tpu.memory_space<vmem>>, vector<1x24x128xf32>
    %522 = vector.shape_cast %521 : vector<1x24x128xf32> to vector<24x128xf32>
    %523 = vector.extract_strided_slice %522 {offsets = [0, 0], sizes = [8, 128], strides = [1, 1]} : vector<24x128xf32> to vector<8x128xf32>
    %524 = vector.extract_strided_slice %522 {offsets = [8, 0], sizes = [8, 128], strides = [1, 1]} : vector<24x128xf32> to vector<8x128xf32>
    %525 = vector.extract_strided_slice %522 {offsets = [16, 0], sizes = [1, 128], strides = [1, 1]} : vector<24x128xf32> to vector<1x128xf32>
    %cst_111 = arith.constant 5.000000e-01 : f32
    %526 = vector.broadcast %cst_111 : f32 to vector<1x128xf32>
    %527 = arith.cmpf ogt, %525, %526 : vector<1x128xf32>
    %528 = vector.extract_strided_slice %511 {offsets = [0, 0], sizes = [8, 128], strides = [1, 1]} : vector<24x128xf32> to vector<8x128xf32>
    %529 = vector.extract_strided_slice %511 {offsets = [8, 0], sizes = [8, 128], strides = [1, 1]} : vector<24x128xf32> to vector<8x128xf32>
    %530 = vector.extract_strided_slice %511 {offsets = [16, 0], sizes = [8, 128], strides = [1, 1]} : vector<24x128xf32> to vector<8x128xf32>
    %531 = arith.addf %528, %524 : vector<8x128xf32>
    %cst_112 = arith.constant 1.000000e+00 : f32
    %532 = vector.broadcast %cst_112 : f32 to vector<8x128xf32>
    %533 = arith.divf %532, %531 : vector<8x128xf32>
    %534 = arith.mulf %528, %533 : vector<8x128xf32>
    %535 = arith.mulf %529, %533 : vector<8x128xf32>
    %536 = vector.extract_strided_slice %447 {offsets = [0, 0], sizes = [8, 128], strides = [1, 1]} : vector<16x128xf32> to vector<8x128xf32>
    %537 = arith.subf %523, %536 : vector<8x128xf32>
    %538 = arith.mulf %534, %537 : vector<8x128xf32>
    %539 = arith.mulf %535, %537 : vector<8x128xf32>
    %540 = tpu.concatenate %538, %539 in 0 : vector<8x128xf32>, vector<8x128xf32> -> vector<16x128xf32>
    %541 = arith.addf %447, %540 : vector<16x128xf32>
    %cst_113 = arith.constant 1.000000e+00 : f32
    %542 = vector.broadcast %cst_113 : f32 to vector<8x128xf32>
    %543 = arith.subf %542, %534 : vector<8x128xf32>
    %544 = arith.mulf %543, %528 : vector<8x128xf32>
    %545 = arith.mulf %543, %529 : vector<8x128xf32>
    %546 = arith.mulf %535, %529 : vector<8x128xf32>
    %547 = arith.subf %530, %546 : vector<8x128xf32>
    %548 = tpu.concatenate %544, %545, %547 in 0 : vector<8x128xf32>, vector<8x128xf32>, vector<8x128xf32> -> vector<24x128xf32>
    %549 = vector.shape_cast %527 : vector<1x128xi1> to vector<1x128xi1>
    %550 = vector.broadcast %549 : vector<1x128xi1> to vector<16x128xi1>
    %551 = arith.select %550, %541, %447 : vector<16x128xi1>, vector<16x128xf32>
    %552 = vector.shape_cast %527 : vector<1x128xi1> to vector<1x128xi1>
    %553 = vector.broadcast %552 : vector<1x128xi1> to vector<24x128xi1>
    %554 = arith.select %553, %548, %511 : vector<24x128xi1>, vector<24x128xf32>
    %cst_114 = arith.constant 0.000000e+00 : f32
    %555 = vector.broadcast %cst_114 : f32 to vector<8x128xf32>
    %556 = vector.shape_cast %527 : vector<1x128xi1> to vector<1x128xi1>
    %557 = vector.broadcast %556 : vector<1x128xi1> to vector<8x128xi1>
    %558 = arith.select %557, %534, %555 : vector<8x128xi1>, vector<8x128xf32>
    %559 = vector.shape_cast %527 : vector<1x128xi1> to vector<1x128xi1>
    %560 = vector.broadcast %559 : vector<1x128xi1> to vector<8x128xi1>
    %561 = arith.select %560, %535, %555 : vector<8x128xi1>, vector<8x128xf32>
    %562 = arith.index_cast %c3_i32 : i32 to index
    %c0_115 = arith.constant 0 : index
    %c0_116 = arith.constant 0 : index
    %563 = vector.load %arg11[%562, %c0_115, %c0_116] : memref<6x96x128xf32, #tpu.memory_space<vmem>>, vector<1x16x128xf32>
    %564 = vector.shape_cast %563 : vector<1x16x128xf32> to vector<16x128xf32>
    %565 = vector.shape_cast %551 : vector<16x128xf32> to vector<1x16x128xf32>
    tpu.vector_store %arg11[%562, %c0_115, %c0_116], %565 {strides = array<i32>} : memref<6x96x128xf32, #tpu.memory_space<vmem>>, vector<1x16x128xf32>,
    %566 = arith.index_cast %c3_i32 : i32 to index
    %c16_117 = arith.constant 16 : index
    %c0_118 = arith.constant 0 : index
    %567 = vector.load %arg11[%566, %c16_117, %c0_118] : memref<6x96x128xf32, #tpu.memory_space<vmem>>, vector<1x24x128xf32>
    %568 = vector.shape_cast %567 : vector<1x24x128xf32> to vector<24x128xf32>
    %569 = vector.shape_cast %554 : vector<24x128xf32> to vector<1x24x128xf32>
    tpu.vector_store %arg11[%566, %c16_117, %c0_118], %569 {strides = array<i32>} : memref<6x96x128xf32, #tpu.memory_space<vmem>>, vector<1x24x128xf32>,
    %570 = arith.index_cast %c3_i32 : i32 to index
    %c80_119 = arith.constant 80 : index
    %c0_120 = arith.constant 0 : index
    %571 = vector.load %arg11[%570, %c80_119, %c0_120] : memref<6x96x128xf32, #tpu.memory_space<vmem>>, vector<1x8x128xf32>
    %572 = vector.shape_cast %571 : vector<1x8x128xf32> to vector<8x128xf32>
    %573 = vector.shape_cast %558 : vector<8x128xf32> to vector<1x8x128xf32>
    tpu.vector_store %arg11[%570, %c80_119, %c0_120], %573 {strides = array<i32>} : memref<6x96x128xf32, #tpu.memory_space<vmem>>, vector<1x8x128xf32>,
    %574 = arith.index_cast %c3_i32 : i32 to index
    %c88_121 = arith.constant 88 : index
    %c0_122 = arith.constant 0 : index
    %575 = vector.load %arg11[%574, %c88_121, %c0_122] : memref<6x96x128xf32, #tpu.memory_space<vmem>>, vector<1x8x128xf32>
    %576 = vector.shape_cast %575 : vector<1x8x128xf32> to vector<8x128xf32>
    %577 = vector.shape_cast %561 : vector<8x128xf32> to vector<1x8x128xf32>
    tpu.vector_store %arg11[%574, %c88_121, %c0_122], %577 {strides = array<i32>} : memref<6x96x128xf32, #tpu.memory_space<vmem>>, vector<1x8x128xf32>,
    %cst_123 = arith.constant dense<0.000000e+00> : vector<16x128xf32>
    %578 = tpu.matmul %3, %551, %cst_123 {dimension_numbers = #tpu.dot_dimension_numbers<[1], [0], [0], [1], [0, 0, 1, 1], [], []>} : vector<16x16xf32>, vector<16x128xf32>, vector<16x128xf32> -> vector<16x128xf32>
    %c0_124 = arith.constant 0 : index
    %c0_125 = arith.constant 0 : index
    %579 = vector.load %arg8[%c0_124, %c0_125] : memref<48x16xf32, #tpu.memory_space<vmem>>, vector<48x16xf32>
    %cst_126 = arith.constant dense<0.000000e+00> : vector<48x128xf32>
    %580 = tpu.matmul %579, %551, %cst_126 {dimension_numbers = #tpu.dot_dimension_numbers<[1], [0], [0], [1], [0, 0, 1, 1], [], []>} : vector<48x16xf32>, vector<16x128xf32>, vector<48x128xf32> -> vector<48x128xf32>
    %581 = vector.broadcast %4 : vector<16x1xf32> to vector<16x128xf32>
    %582 = arith.addf %578, %581 : vector<16x128xf32>
    %583 = math.tanh %582 : vector<16x128xf32>
    %cst_127 = arith.constant dense<0.000000e+00> : vector<3x128xf32>
    %584 = tpu.matmul %5, %583, %cst_127 {dimension_numbers = #tpu.dot_dimension_numbers<[1], [0], [0], [1], [0, 0, 1, 1], [], []>} : vector<3x16xf32>, vector<16x128xf32>, vector<3x128xf32> -> vector<3x128xf32>
    %585 = vector.broadcast %6 : vector<3x1xf32> to vector<3x128xf32>
    %586 = arith.addf %584, %585 : vector<3x128xf32>
    %587 = vector.extract_strided_slice %586 {offsets = [0, 0], sizes = [1, 128], strides = [1, 1]} : vector<3x128xf32> to vector<1x128xf32>
    %588 = vector.extract_strided_slice %586 {offsets = [1, 0], sizes = [1, 128], strides = [1, 1]} : vector<3x128xf32> to vector<1x128xf32>
    %589 = arith.maximumf %587, %588 : vector<1x128xf32>
    %590 = vector.extract_strided_slice %586 {offsets = [2, 0], sizes = [1, 128], strides = [1, 1]} : vector<3x128xf32> to vector<1x128xf32>
    %591 = arith.maximumf %589, %590 : vector<1x128xf32>
    %592 = vector.broadcast %591 : vector<1x128xf32> to vector<3x128xf32>
    %593 = arith.subf %586, %592 : vector<3x128xf32>
    %594 = math.exp %593 : vector<3x128xf32>
    %cst_128 = arith.constant dense<0.000000e+00> : vector<128xf32>
    %595 = vector.multi_reduction <add>, %594, %cst_128 [0] : vector<3x128xf32> to vector<128xf32>
    %596 = vector.shape_cast %595 : vector<128xf32> to vector<1x128xf32>
    %597 = tpu.reciprocal %596 {approx = true} : vector<1x128xf32> -> vector<1x128xf32>
    %598 = arith.mulf %596, %597 : vector<1x128xf32>
    %cst_129 = arith.constant 2.000000e+00 : f32
    %599 = vector.broadcast %cst_129 : f32 to vector<1x128xf32>
    %600 = arith.subf %599, %598 : vector<1x128xf32>
    %601 = arith.mulf %597, %600 : vector<1x128xf32>
    %602 = vector.broadcast %601 : vector<1x128xf32> to vector<3x128xf32>
    %603 = arith.mulf %594, %602 : vector<3x128xf32>
    %604 = vector.extract_strided_slice %580 {offsets = [0, 0], sizes = [16, 128], strides = [1, 1]} : vector<48x128xf32> to vector<16x128xf32>
    %605 = vector.extract_strided_slice %603 {offsets = [0, 0], sizes = [1, 128], strides = [1, 1]} : vector<3x128xf32> to vector<1x128xf32>
    %606 = vector.broadcast %605 : vector<1x128xf32> to vector<16x128xf32>
    %607 = arith.mulf %604, %606 : vector<16x128xf32>
    %608 = vector.extract_strided_slice %580 {offsets = [16, 0], sizes = [16, 128], strides = [1, 1]} : vector<48x128xf32> to vector<16x128xf32>
    %609 = vector.extract_strided_slice %603 {offsets = [1, 0], sizes = [1, 128], strides = [1, 1]} : vector<3x128xf32> to vector<1x128xf32>
    %610 = vector.broadcast %609 : vector<1x128xf32> to vector<16x128xf32>
    %611 = arith.mulf %608, %610 : vector<16x128xf32>
    %612 = arith.addf %607, %611 : vector<16x128xf32>
    %613 = vector.extract_strided_slice %580 {offsets = [32, 0], sizes = [16, 128], strides = [1, 1]} : vector<48x128xf32> to vector<16x128xf32>
    %614 = vector.extract_strided_slice %603 {offsets = [2, 0], sizes = [1, 128], strides = [1, 1]} : vector<3x128xf32> to vector<1x128xf32>
    %615 = vector.broadcast %614 : vector<1x128xf32> to vector<16x128xf32>
    %616 = arith.mulf %613, %615 : vector<16x128xf32>
    %617 = arith.addf %612, %616 : vector<16x128xf32>
    %c0_130 = arith.constant 0 : index
    %c0_131 = arith.constant 0 : index
    %618 = vector.load %arg9[%c0_130, %c0_131] : memref<216x24xf32, #tpu.memory_space<vmem>>, vector<72x24xf32>
    %cst_132 = arith.constant dense<0.000000e+00> : vector<72x128xf32>
    %619 = tpu.matmul %618, %554, %cst_132 {dimension_numbers = #tpu.dot_dimension_numbers<[1], [0], [0], [1], [0, 0, 1, 1], [], []>} : vector<72x24xf32>, vector<24x128xf32>, vector<72x128xf32> -> vector<72x128xf32>
    %620 = vector.extract_strided_slice %603 {offsets = [0, 0], sizes = [1, 128], strides = [1, 1]} : vector<3x128xf32> to vector<1x128xf32>
    %621 = vector.extract_strided_slice %619 {offsets = [0, 0], sizes = [24, 128], strides = [1, 1]} : vector<72x128xf32> to vector<24x128xf32>
    %622 = vector.extract_strided_slice %603 {offsets = [0, 0], sizes = [1, 128], strides = [1, 1]} : vector<3x128xf32> to vector<1x128xf32>
    %623 = arith.mulf %620, %622 : vector<1x128xf32>
    %624 = vector.broadcast %623 : vector<1x128xf32> to vector<24x128xf32>
    %625 = arith.mulf %621, %624 : vector<24x128xf32>
    %626 = vector.extract_strided_slice %619 {offsets = [24, 0], sizes = [24, 128], strides = [1, 1]} : vector<72x128xf32> to vector<24x128xf32>
    %627 = vector.extract_strided_slice %603 {offsets = [1, 0], sizes = [1, 128], strides = [1, 1]} : vector<3x128xf32> to vector<1x128xf32>
    %628 = arith.mulf %620, %627 : vector<1x128xf32>
    %629 = vector.broadcast %628 : vector<1x128xf32> to vector<24x128xf32>
    %630 = arith.mulf %626, %629 : vector<24x128xf32>
    %631 = arith.addf %625, %630 : vector<24x128xf32>
    %632 = vector.extract_strided_slice %619 {offsets = [48, 0], sizes = [24, 128], strides = [1, 1]} : vector<72x128xf32> to vector<24x128xf32>
    %633 = vector.extract_strided_slice %603 {offsets = [2, 0], sizes = [1, 128], strides = [1, 1]} : vector<3x128xf32> to vector<1x128xf32>
    %634 = arith.mulf %620, %633 : vector<1x128xf32>
    %635 = vector.broadcast %634 : vector<1x128xf32> to vector<24x128xf32>
    %636 = arith.mulf %632, %635 : vector<24x128xf32>
    %637 = arith.addf %631, %636 : vector<24x128xf32>
    %c72_133 = arith.constant 72 : index
    %c0_134 = arith.constant 0 : index
    %638 = vector.load %arg9[%c72_133, %c0_134] : memref<216x24xf32, #tpu.memory_space<vmem>>, vector<72x24xf32>
    %cst_135 = arith.constant dense<0.000000e+00> : vector<72x128xf32>
    %639 = tpu.matmul %638, %554, %cst_135 {dimension_numbers = #tpu.dot_dimension_numbers<[1], [0], [0], [1], [0, 0, 1, 1], [], []>} : vector<72x24xf32>, vector<24x128xf32>, vector<72x128xf32> -> vector<72x128xf32>
    %640 = vector.extract_strided_slice %603 {offsets = [1, 0], sizes = [1, 128], strides = [1, 1]} : vector<3x128xf32> to vector<1x128xf32>
    %641 = vector.extract_strided_slice %639 {offsets = [0, 0], sizes = [24, 128], strides = [1, 1]} : vector<72x128xf32> to vector<24x128xf32>
    %642 = vector.extract_strided_slice %603 {offsets = [0, 0], sizes = [1, 128], strides = [1, 1]} : vector<3x128xf32> to vector<1x128xf32>
    %643 = arith.mulf %640, %642 : vector<1x128xf32>
    %644 = vector.broadcast %643 : vector<1x128xf32> to vector<24x128xf32>
    %645 = arith.mulf %641, %644 : vector<24x128xf32>
    %646 = arith.addf %637, %645 : vector<24x128xf32>
    %647 = vector.extract_strided_slice %639 {offsets = [24, 0], sizes = [24, 128], strides = [1, 1]} : vector<72x128xf32> to vector<24x128xf32>
    %648 = vector.extract_strided_slice %603 {offsets = [1, 0], sizes = [1, 128], strides = [1, 1]} : vector<3x128xf32> to vector<1x128xf32>
    %649 = arith.mulf %640, %648 : vector<1x128xf32>
    %650 = vector.broadcast %649 : vector<1x128xf32> to vector<24x128xf32>
    %651 = arith.mulf %647, %650 : vector<24x128xf32>
    %652 = arith.addf %646, %651 : vector<24x128xf32>
    %653 = vector.extract_strided_slice %639 {offsets = [48, 0], sizes = [24, 128], strides = [1, 1]} : vector<72x128xf32> to vector<24x128xf32>
    %654 = vector.extract_strided_slice %603 {offsets = [2, 0], sizes = [1, 128], strides = [1, 1]} : vector<3x128xf32> to vector<1x128xf32>
    %655 = arith.mulf %640, %654 : vector<1x128xf32>
    %656 = vector.broadcast %655 : vector<1x128xf32> to vector<24x128xf32>
    %657 = arith.mulf %653, %656 : vector<24x128xf32>
    %658 = arith.addf %652, %657 : vector<24x128xf32>
    %c144_136 = arith.constant 144 : index
    %c0_137 = arith.constant 0 : index
    %659 = vector.load %arg9[%c144_136, %c0_137] : memref<216x24xf32, #tpu.memory_space<vmem>>, vector<72x24xf32>
    %cst_138 = arith.constant dense<0.000000e+00> : vector<72x128xf32>
    %660 = tpu.matmul %659, %554, %cst_138 {dimension_numbers = #tpu.dot_dimension_numbers<[1], [0], [0], [1], [0, 0, 1, 1], [], []>} : vector<72x24xf32>, vector<24x128xf32>, vector<72x128xf32> -> vector<72x128xf32>
    %661 = vector.extract_strided_slice %603 {offsets = [2, 0], sizes = [1, 128], strides = [1, 1]} : vector<3x128xf32> to vector<1x128xf32>
    %662 = vector.extract_strided_slice %660 {offsets = [0, 0], sizes = [24, 128], strides = [1, 1]} : vector<72x128xf32> to vector<24x128xf32>
    %663 = vector.extract_strided_slice %603 {offsets = [0, 0], sizes = [1, 128], strides = [1, 1]} : vector<3x128xf32> to vector<1x128xf32>
    %664 = arith.mulf %661, %663 : vector<1x128xf32>
    %665 = vector.broadcast %664 : vector<1x128xf32> to vector<24x128xf32>
    %666 = arith.mulf %662, %665 : vector<24x128xf32>
    %667 = arith.addf %658, %666 : vector<24x128xf32>
    %668 = vector.extract_strided_slice %660 {offsets = [24, 0], sizes = [24, 128], strides = [1, 1]} : vector<72x128xf32> to vector<24x128xf32>
    %669 = vector.extract_strided_slice %603 {offsets = [1, 0], sizes = [1, 128], strides = [1, 1]} : vector<3x128xf32> to vector<1x128xf32>
    %670 = arith.mulf %661, %669 : vector<1x128xf32>
    %671 = vector.broadcast %670 : vector<1x128xf32> to vector<24x128xf32>
    %672 = arith.mulf %668, %671 : vector<24x128xf32>
    %673 = arith.addf %667, %672 : vector<24x128xf32>
    %674 = vector.extract_strided_slice %660 {offsets = [48, 0], sizes = [24, 128], strides = [1, 1]} : vector<72x128xf32> to vector<24x128xf32>
    %675 = vector.extract_strided_slice %603 {offsets = [2, 0], sizes = [1, 128], strides = [1, 1]} : vector<3x128xf32> to vector<1x128xf32>
    %676 = arith.mulf %661, %675 : vector<1x128xf32>
    %677 = vector.broadcast %676 : vector<1x128xf32> to vector<24x128xf32>
    %678 = arith.mulf %674, %677 : vector<24x128xf32>
    %679 = arith.addf %673, %678 : vector<24x128xf32>
    %680 = vector.broadcast %7 : vector<24x1xf32> to vector<24x128xf32>
    %681 = arith.addf %679, %680 : vector<24x128xf32>
    %682 = arith.index_cast %c3_i32 : i32 to index
    %c40_139 = arith.constant 40 : index
    %c0_140 = arith.constant 0 : index
    %683 = vector.load %arg11[%682, %c40_139, %c0_140] : memref<6x96x128xf32, #tpu.memory_space<vmem>>, vector<1x16x128xf32>
    %684 = vector.shape_cast %683 : vector<1x16x128xf32> to vector<16x128xf32>
    %685 = vector.shape_cast %617 : vector<16x128xf32> to vector<1x16x128xf32>
    tpu.vector_store %arg11[%682, %c40_139, %c0_140], %685 {strides = array<i32>} : memref<6x96x128xf32, #tpu.memory_space<vmem>>, vector<1x16x128xf32>,
    %686 = arith.index_cast %c3_i32 : i32 to index
    %c56_141 = arith.constant 56 : index
    %c0_142 = arith.constant 0 : index
    %687 = vector.load %arg11[%686, %c56_141, %c0_142] : memref<6x96x128xf32, #tpu.memory_space<vmem>>, vector<1x24x128xf32>
    %688 = vector.shape_cast %687 : vector<1x24x128xf32> to vector<24x128xf32>
    %689 = vector.shape_cast %681 : vector<24x128xf32> to vector<1x24x128xf32>
    tpu.vector_store %arg11[%686, %c56_141, %c0_142], %689 {strides = array<i32>} : memref<6x96x128xf32, #tpu.memory_space<vmem>>, vector<1x24x128xf32>,
    %c4_i32 = arith.constant 4 : i32
    %690 = arith.index_cast %c4_i32 : i32 to index
    %c0_143 = arith.constant 0 : index
    %c0_144 = arith.constant 0 : index
    %691 = vector.load %arg2[%690, %c0_143, %c0_144] : memref<6x24x128xf32, #tpu.memory_space<vmem>>, vector<1x24x128xf32>
    %692 = vector.shape_cast %691 : vector<1x24x128xf32> to vector<24x128xf32>
    %693 = vector.extract_strided_slice %692 {offsets = [0, 0], sizes = [8, 128], strides = [1, 1]} : vector<24x128xf32> to vector<8x128xf32>
    %694 = vector.extract_strided_slice %692 {offsets = [8, 0], sizes = [8, 128], strides = [1, 1]} : vector<24x128xf32> to vector<8x128xf32>
    %695 = vector.extract_strided_slice %692 {offsets = [16, 0], sizes = [1, 128], strides = [1, 1]} : vector<24x128xf32> to vector<1x128xf32>
    %cst_145 = arith.constant 5.000000e-01 : f32
    %696 = vector.broadcast %cst_145 : f32 to vector<1x128xf32>
    %697 = arith.cmpf ogt, %695, %696 : vector<1x128xf32>
    %698 = vector.extract_strided_slice %681 {offsets = [0, 0], sizes = [8, 128], strides = [1, 1]} : vector<24x128xf32> to vector<8x128xf32>
    %699 = vector.extract_strided_slice %681 {offsets = [8, 0], sizes = [8, 128], strides = [1, 1]} : vector<24x128xf32> to vector<8x128xf32>
    %700 = vector.extract_strided_slice %681 {offsets = [16, 0], sizes = [8, 128], strides = [1, 1]} : vector<24x128xf32> to vector<8x128xf32>
    %701 = arith.addf %698, %694 : vector<8x128xf32>
    %cst_146 = arith.constant 1.000000e+00 : f32
    %702 = vector.broadcast %cst_146 : f32 to vector<8x128xf32>
    %703 = arith.divf %702, %701 : vector<8x128xf32>
    %704 = arith.mulf %698, %703 : vector<8x128xf32>
    %705 = arith.mulf %699, %703 : vector<8x128xf32>
    %706 = vector.extract_strided_slice %617 {offsets = [0, 0], sizes = [8, 128], strides = [1, 1]} : vector<16x128xf32> to vector<8x128xf32>
    %707 = arith.subf %693, %706 : vector<8x128xf32>
    %708 = arith.mulf %704, %707 : vector<8x128xf32>
    %709 = arith.mulf %705, %707 : vector<8x128xf32>
    %710 = tpu.concatenate %708, %709 in 0 : vector<8x128xf32>, vector<8x128xf32> -> vector<16x128xf32>
    %711 = arith.addf %617, %710 : vector<16x128xf32>
    %cst_147 = arith.constant 1.000000e+00 : f32
    %712 = vector.broadcast %cst_147 : f32 to vector<8x128xf32>
    %713 = arith.subf %712, %704 : vector<8x128xf32>
    %714 = arith.mulf %713, %698 : vector<8x128xf32>
    %715 = arith.mulf %713, %699 : vector<8x128xf32>
    %716 = arith.mulf %705, %699 : vector<8x128xf32>
    %717 = arith.subf %700, %716 : vector<8x128xf32>
    %718 = tpu.concatenate %714, %715, %717 in 0 : vector<8x128xf32>, vector<8x128xf32>, vector<8x128xf32> -> vector<24x128xf32>
    %719 = vector.shape_cast %697 : vector<1x128xi1> to vector<1x128xi1>
    %720 = vector.broadcast %719 : vector<1x128xi1> to vector<16x128xi1>
    %721 = arith.select %720, %711, %617 : vector<16x128xi1>, vector<16x128xf32>
    %722 = vector.shape_cast %697 : vector<1x128xi1> to vector<1x128xi1>
    %723 = vector.broadcast %722 : vector<1x128xi1> to vector<24x128xi1>
    %724 = arith.select %723, %718, %681 : vector<24x128xi1>, vector<24x128xf32>
    %cst_148 = arith.constant 0.000000e+00 : f32
    %725 = vector.broadcast %cst_148 : f32 to vector<8x128xf32>
    %726 = vector.shape_cast %697 : vector<1x128xi1> to vector<1x128xi1>
    %727 = vector.broadcast %726 : vector<1x128xi1> to vector<8x128xi1>
    %728 = arith.select %727, %704, %725 : vector<8x128xi1>, vector<8x128xf32>
    %729 = vector.shape_cast %697 : vector<1x128xi1> to vector<1x128xi1>
    %730 = vector.broadcast %729 : vector<1x128xi1> to vector<8x128xi1>
    %731 = arith.select %730, %705, %725 : vector<8x128xi1>, vector<8x128xf32>
    %732 = arith.index_cast %c4_i32 : i32 to index
    %c0_149 = arith.constant 0 : index
    %c0_150 = arith.constant 0 : index
    %733 = vector.load %arg11[%732, %c0_149, %c0_150] : memref<6x96x128xf32, #tpu.memory_space<vmem>>, vector<1x16x128xf32>
    %734 = vector.shape_cast %733 : vector<1x16x128xf32> to vector<16x128xf32>
    %735 = vector.shape_cast %721 : vector<16x128xf32> to vector<1x16x128xf32>
    tpu.vector_store %arg11[%732, %c0_149, %c0_150], %735 {strides = array<i32>} : memref<6x96x128xf32, #tpu.memory_space<vmem>>, vector<1x16x128xf32>,
    %736 = arith.index_cast %c4_i32 : i32 to index
    %c16_151 = arith.constant 16 : index
    %c0_152 = arith.constant 0 : index
    %737 = vector.load %arg11[%736, %c16_151, %c0_152] : memref<6x96x128xf32, #tpu.memory_space<vmem>>, vector<1x24x128xf32>
    %738 = vector.shape_cast %737 : vector<1x24x128xf32> to vector<24x128xf32>
    %739 = vector.shape_cast %724 : vector<24x128xf32> to vector<1x24x128xf32>
    tpu.vector_store %arg11[%736, %c16_151, %c0_152], %739 {strides = array<i32>} : memref<6x96x128xf32, #tpu.memory_space<vmem>>, vector<1x24x128xf32>,
    %740 = arith.index_cast %c4_i32 : i32 to index
    %c80_153 = arith.constant 80 : index
    %c0_154 = arith.constant 0 : index
    %741 = vector.load %arg11[%740, %c80_153, %c0_154] : memref<6x96x128xf32, #tpu.memory_space<vmem>>, vector<1x8x128xf32>
    %742 = vector.shape_cast %741 : vector<1x8x128xf32> to vector<8x128xf32>
    %743 = vector.shape_cast %728 : vector<8x128xf32> to vector<1x8x128xf32>
    tpu.vector_store %arg11[%740, %c80_153, %c0_154], %743 {strides = array<i32>} : memref<6x96x128xf32, #tpu.memory_space<vmem>>, vector<1x8x128xf32>,
    %744 = arith.index_cast %c4_i32 : i32 to index
    %c88_155 = arith.constant 88 : index
    %c0_156 = arith.constant 0 : index
    %745 = vector.load %arg11[%744, %c88_155, %c0_156] : memref<6x96x128xf32, #tpu.memory_space<vmem>>, vector<1x8x128xf32>
    %746 = vector.shape_cast %745 : vector<1x8x128xf32> to vector<8x128xf32>
    %747 = vector.shape_cast %731 : vector<8x128xf32> to vector<1x8x128xf32>
    tpu.vector_store %arg11[%744, %c88_155, %c0_156], %747 {strides = array<i32>} : memref<6x96x128xf32, #tpu.memory_space<vmem>>, vector<1x8x128xf32>,
    %cst_157 = arith.constant dense<0.000000e+00> : vector<16x128xf32>
    %748 = tpu.matmul %3, %721, %cst_157 {dimension_numbers = #tpu.dot_dimension_numbers<[1], [0], [0], [1], [0, 0, 1, 1], [], []>} : vector<16x16xf32>, vector<16x128xf32>, vector<16x128xf32> -> vector<16x128xf32>
    %c0_158 = arith.constant 0 : index
    %c0_159 = arith.constant 0 : index
    %749 = vector.load %arg8[%c0_158, %c0_159] : memref<48x16xf32, #tpu.memory_space<vmem>>, vector<48x16xf32>
    %cst_160 = arith.constant dense<0.000000e+00> : vector<48x128xf32>
    %750 = tpu.matmul %749, %721, %cst_160 {dimension_numbers = #tpu.dot_dimension_numbers<[1], [0], [0], [1], [0, 0, 1, 1], [], []>} : vector<48x16xf32>, vector<16x128xf32>, vector<48x128xf32> -> vector<48x128xf32>
    %751 = vector.broadcast %4 : vector<16x1xf32> to vector<16x128xf32>
    %752 = arith.addf %748, %751 : vector<16x128xf32>
    %753 = math.tanh %752 : vector<16x128xf32>
    %cst_161 = arith.constant dense<0.000000e+00> : vector<3x128xf32>
    %754 = tpu.matmul %5, %753, %cst_161 {dimension_numbers = #tpu.dot_dimension_numbers<[1], [0], [0], [1], [0, 0, 1, 1], [], []>} : vector<3x16xf32>, vector<16x128xf32>, vector<3x128xf32> -> vector<3x128xf32>
    %755 = vector.broadcast %6 : vector<3x1xf32> to vector<3x128xf32>
    %756 = arith.addf %754, %755 : vector<3x128xf32>
    %757 = vector.extract_strided_slice %756 {offsets = [0, 0], sizes = [1, 128], strides = [1, 1]} : vector<3x128xf32> to vector<1x128xf32>
    %758 = vector.extract_strided_slice %756 {offsets = [1, 0], sizes = [1, 128], strides = [1, 1]} : vector<3x128xf32> to vector<1x128xf32>
    %759 = arith.maximumf %757, %758 : vector<1x128xf32>
    %760 = vector.extract_strided_slice %756 {offsets = [2, 0], sizes = [1, 128], strides = [1, 1]} : vector<3x128xf32> to vector<1x128xf32>
    %761 = arith.maximumf %759, %760 : vector<1x128xf32>
    %762 = vector.broadcast %761 : vector<1x128xf32> to vector<3x128xf32>
    %763 = arith.subf %756, %762 : vector<3x128xf32>
    %764 = math.exp %763 : vector<3x128xf32>
    %cst_162 = arith.constant dense<0.000000e+00> : vector<128xf32>
    %765 = vector.multi_reduction <add>, %764, %cst_162 [0] : vector<3x128xf32> to vector<128xf32>
    %766 = vector.shape_cast %765 : vector<128xf32> to vector<1x128xf32>
    %767 = tpu.reciprocal %766 {approx = true} : vector<1x128xf32> -> vector<1x128xf32>
    %768 = arith.mulf %766, %767 : vector<1x128xf32>
    %cst_163 = arith.constant 2.000000e+00 : f32
    %769 = vector.broadcast %cst_163 : f32 to vector<1x128xf32>
    %770 = arith.subf %769, %768 : vector<1x128xf32>
    %771 = arith.mulf %767, %770 : vector<1x128xf32>
    %772 = vector.broadcast %771 : vector<1x128xf32> to vector<3x128xf32>
    %773 = arith.mulf %764, %772 : vector<3x128xf32>
    %774 = vector.extract_strided_slice %750 {offsets = [0, 0], sizes = [16, 128], strides = [1, 1]} : vector<48x128xf32> to vector<16x128xf32>
    %775 = vector.extract_strided_slice %773 {offsets = [0, 0], sizes = [1, 128], strides = [1, 1]} : vector<3x128xf32> to vector<1x128xf32>
    %776 = vector.broadcast %775 : vector<1x128xf32> to vector<16x128xf32>
    %777 = arith.mulf %774, %776 : vector<16x128xf32>
    %778 = vector.extract_strided_slice %750 {offsets = [16, 0], sizes = [16, 128], strides = [1, 1]} : vector<48x128xf32> to vector<16x128xf32>
    %779 = vector.extract_strided_slice %773 {offsets = [1, 0], sizes = [1, 128], strides = [1, 1]} : vector<3x128xf32> to vector<1x128xf32>
    %780 = vector.broadcast %779 : vector<1x128xf32> to vector<16x128xf32>
    %781 = arith.mulf %778, %780 : vector<16x128xf32>
    %782 = arith.addf %777, %781 : vector<16x128xf32>
    %783 = vector.extract_strided_slice %750 {offsets = [32, 0], sizes = [16, 128], strides = [1, 1]} : vector<48x128xf32> to vector<16x128xf32>
    %784 = vector.extract_strided_slice %773 {offsets = [2, 0], sizes = [1, 128], strides = [1, 1]} : vector<3x128xf32> to vector<1x128xf32>
    %785 = vector.broadcast %784 : vector<1x128xf32> to vector<16x128xf32>
    %786 = arith.mulf %783, %785 : vector<16x128xf32>
    %787 = arith.addf %782, %786 : vector<16x128xf32>
    %c0_164 = arith.constant 0 : index
    %c0_165 = arith.constant 0 : index
    %788 = vector.load %arg9[%c0_164, %c0_165] : memref<216x24xf32, #tpu.memory_space<vmem>>, vector<72x24xf32>
    %cst_166 = arith.constant dense<0.000000e+00> : vector<72x128xf32>
    %789 = tpu.matmul %788, %724, %cst_166 {dimension_numbers = #tpu.dot_dimension_numbers<[1], [0], [0], [1], [0, 0, 1, 1], [], []>} : vector<72x24xf32>, vector<24x128xf32>, vector<72x128xf32> -> vector<72x128xf32>
    %790 = vector.extract_strided_slice %773 {offsets = [0, 0], sizes = [1, 128], strides = [1, 1]} : vector<3x128xf32> to vector<1x128xf32>
    %791 = vector.extract_strided_slice %789 {offsets = [0, 0], sizes = [24, 128], strides = [1, 1]} : vector<72x128xf32> to vector<24x128xf32>
    %792 = vector.extract_strided_slice %773 {offsets = [0, 0], sizes = [1, 128], strides = [1, 1]} : vector<3x128xf32> to vector<1x128xf32>
    %793 = arith.mulf %790, %792 : vector<1x128xf32>
    %794 = vector.broadcast %793 : vector<1x128xf32> to vector<24x128xf32>
    %795 = arith.mulf %791, %794 : vector<24x128xf32>
    %796 = vector.extract_strided_slice %789 {offsets = [24, 0], sizes = [24, 128], strides = [1, 1]} : vector<72x128xf32> to vector<24x128xf32>
    %797 = vector.extract_strided_slice %773 {offsets = [1, 0], sizes = [1, 128], strides = [1, 1]} : vector<3x128xf32> to vector<1x128xf32>
    %798 = arith.mulf %790, %797 : vector<1x128xf32>
    %799 = vector.broadcast %798 : vector<1x128xf32> to vector<24x128xf32>
    %800 = arith.mulf %796, %799 : vector<24x128xf32>
    %801 = arith.addf %795, %800 : vector<24x128xf32>
    %802 = vector.extract_strided_slice %789 {offsets = [48, 0], sizes = [24, 128], strides = [1, 1]} : vector<72x128xf32> to vector<24x128xf32>
    %803 = vector.extract_strided_slice %773 {offsets = [2, 0], sizes = [1, 128], strides = [1, 1]} : vector<3x128xf32> to vector<1x128xf32>
    %804 = arith.mulf %790, %803 : vector<1x128xf32>
    %805 = vector.broadcast %804 : vector<1x128xf32> to vector<24x128xf32>
    %806 = arith.mulf %802, %805 : vector<24x128xf32>
    %807 = arith.addf %801, %806 : vector<24x128xf32>
    %c72_167 = arith.constant 72 : index
    %c0_168 = arith.constant 0 : index
    %808 = vector.load %arg9[%c72_167, %c0_168] : memref<216x24xf32, #tpu.memory_space<vmem>>, vector<72x24xf32>
    %cst_169 = arith.constant dense<0.000000e+00> : vector<72x128xf32>
    %809 = tpu.matmul %808, %724, %cst_169 {dimension_numbers = #tpu.dot_dimension_numbers<[1], [0], [0], [1], [0, 0, 1, 1], [], []>} : vector<72x24xf32>, vector<24x128xf32>, vector<72x128xf32> -> vector<72x128xf32>
    %810 = vector.extract_strided_slice %773 {offsets = [1, 0], sizes = [1, 128], strides = [1, 1]} : vector<3x128xf32> to vector<1x128xf32>
    %811 = vector.extract_strided_slice %809 {offsets = [0, 0], sizes = [24, 128], strides = [1, 1]} : vector<72x128xf32> to vector<24x128xf32>
    %812 = vector.extract_strided_slice %773 {offsets = [0, 0], sizes = [1, 128], strides = [1, 1]} : vector<3x128xf32> to vector<1x128xf32>
    %813 = arith.mulf %810, %812 : vector<1x128xf32>
    %814 = vector.broadcast %813 : vector<1x128xf32> to vector<24x128xf32>
    %815 = arith.mulf %811, %814 : vector<24x128xf32>
    %816 = arith.addf %807, %815 : vector<24x128xf32>
    %817 = vector.extract_strided_slice %809 {offsets = [24, 0], sizes = [24, 128], strides = [1, 1]} : vector<72x128xf32> to vector<24x128xf32>
    %818 = vector.extract_strided_slice %773 {offsets = [1, 0], sizes = [1, 128], strides = [1, 1]} : vector<3x128xf32> to vector<1x128xf32>
    %819 = arith.mulf %810, %818 : vector<1x128xf32>
    %820 = vector.broadcast %819 : vector<1x128xf32> to vector<24x128xf32>
    %821 = arith.mulf %817, %820 : vector<24x128xf32>
    %822 = arith.addf %816, %821 : vector<24x128xf32>
    %823 = vector.extract_strided_slice %809 {offsets = [48, 0], sizes = [24, 128], strides = [1, 1]} : vector<72x128xf32> to vector<24x128xf32>
    %824 = vector.extract_strided_slice %773 {offsets = [2, 0], sizes = [1, 128], strides = [1, 1]} : vector<3x128xf32> to vector<1x128xf32>
    %825 = arith.mulf %810, %824 : vector<1x128xf32>
    %826 = vector.broadcast %825 : vector<1x128xf32> to vector<24x128xf32>
    %827 = arith.mulf %823, %826 : vector<24x128xf32>
    %828 = arith.addf %822, %827 : vector<24x128xf32>
    %c144_170 = arith.constant 144 : index
    %c0_171 = arith.constant 0 : index
    %829 = vector.load %arg9[%c144_170, %c0_171] : memref<216x24xf32, #tpu.memory_space<vmem>>, vector<72x24xf32>
    %cst_172 = arith.constant dense<0.000000e+00> : vector<72x128xf32>
    %830 = tpu.matmul %829, %724, %cst_172 {dimension_numbers = #tpu.dot_dimension_numbers<[1], [0], [0], [1], [0, 0, 1, 1], [], []>} : vector<72x24xf32>, vector<24x128xf32>, vector<72x128xf32> -> vector<72x128xf32>
    %831 = vector.extract_strided_slice %773 {offsets = [2, 0], sizes = [1, 128], strides = [1, 1]} : vector<3x128xf32> to vector<1x128xf32>
    %832 = vector.extract_strided_slice %830 {offsets = [0, 0], sizes = [24, 128], strides = [1, 1]} : vector<72x128xf32> to vector<24x128xf32>
    %833 = vector.extract_strided_slice %773 {offsets = [0, 0], sizes = [1, 128], strides = [1, 1]} : vector<3x128xf32> to vector<1x128xf32>
    %834 = arith.mulf %831, %833 : vector<1x128xf32>
    %835 = vector.broadcast %834 : vector<1x128xf32> to vector<24x128xf32>
    %836 = arith.mulf %832, %835 : vector<24x128xf32>
    %837 = arith.addf %828, %836 : vector<24x128xf32>
    %838 = vector.extract_strided_slice %830 {offsets = [24, 0], sizes = [24, 128], strides = [1, 1]} : vector<72x128xf32> to vector<24x128xf32>
    %839 = vector.extract_strided_slice %773 {offsets = [1, 0], sizes = [1, 128], strides = [1, 1]} : vector<3x128xf32> to vector<1x128xf32>
    %840 = arith.mulf %831, %839 : vector<1x128xf32>
    %841 = vector.broadcast %840 : vector<1x128xf32> to vector<24x128xf32>
    %842 = arith.mulf %838, %841 : vector<24x128xf32>
    %843 = arith.addf %837, %842 : vector<24x128xf32>
    %844 = vector.extract_strided_slice %830 {offsets = [48, 0], sizes = [24, 128], strides = [1, 1]} : vector<72x128xf32> to vector<24x128xf32>
    %845 = vector.extract_strided_slice %773 {offsets = [2, 0], sizes = [1, 128], strides = [1, 1]} : vector<3x128xf32> to vector<1x128xf32>
    %846 = arith.mulf %831, %845 : vector<1x128xf32>
    %847 = vector.broadcast %846 : vector<1x128xf32> to vector<24x128xf32>
    %848 = arith.mulf %844, %847 : vector<24x128xf32>
    %849 = arith.addf %843, %848 : vector<24x128xf32>
    %850 = vector.broadcast %7 : vector<24x1xf32> to vector<24x128xf32>
    %851 = arith.addf %849, %850 : vector<24x128xf32>
    %852 = arith.index_cast %c4_i32 : i32 to index
    %c40_173 = arith.constant 40 : index
    %c0_174 = arith.constant 0 : index
    %853 = vector.load %arg11[%852, %c40_173, %c0_174] : memref<6x96x128xf32, #tpu.memory_space<vmem>>, vector<1x16x128xf32>
    %854 = vector.shape_cast %853 : vector<1x16x128xf32> to vector<16x128xf32>
    %855 = vector.shape_cast %787 : vector<16x128xf32> to vector<1x16x128xf32>
    tpu.vector_store %arg11[%852, %c40_173, %c0_174], %855 {strides = array<i32>} : memref<6x96x128xf32, #tpu.memory_space<vmem>>, vector<1x16x128xf32>,
    %856 = arith.index_cast %c4_i32 : i32 to index
    %c56_175 = arith.constant 56 : index
    %c0_176 = arith.constant 0 : index
    %857 = vector.load %arg11[%856, %c56_175, %c0_176] : memref<6x96x128xf32, #tpu.memory_space<vmem>>, vector<1x24x128xf32>
    %858 = vector.shape_cast %857 : vector<1x24x128xf32> to vector<24x128xf32>
    %859 = vector.shape_cast %851 : vector<24x128xf32> to vector<1x24x128xf32>
    tpu.vector_store %arg11[%856, %c56_175, %c0_176], %859 {strides = array<i32>} : memref<6x96x128xf32, #tpu.memory_space<vmem>>, vector<1x24x128xf32>,
    %c5_i32 = arith.constant 5 : i32
    %860 = arith.index_cast %c5_i32 : i32 to index
    %c0_177 = arith.constant 0 : index
    %c0_178 = arith.constant 0 : index
    %861 = vector.load %arg2[%860, %c0_177, %c0_178] : memref<6x24x128xf32, #tpu.memory_space<vmem>>, vector<1x24x128xf32>
    %862 = vector.shape_cast %861 : vector<1x24x128xf32> to vector<24x128xf32>
    %863 = vector.extract_strided_slice %862 {offsets = [0, 0], sizes = [8, 128], strides = [1, 1]} : vector<24x128xf32> to vector<8x128xf32>
    %864 = vector.extract_strided_slice %862 {offsets = [8, 0], sizes = [8, 128], strides = [1, 1]} : vector<24x128xf32> to vector<8x128xf32>
    %865 = vector.extract_strided_slice %862 {offsets = [16, 0], sizes = [1, 128], strides = [1, 1]} : vector<24x128xf32> to vector<1x128xf32>
    %cst_179 = arith.constant 5.000000e-01 : f32
    %866 = vector.broadcast %cst_179 : f32 to vector<1x128xf32>
    %867 = arith.cmpf ogt, %865, %866 : vector<1x128xf32>
    %868 = vector.extract_strided_slice %851 {offsets = [0, 0], sizes = [8, 128], strides = [1, 1]} : vector<24x128xf32> to vector<8x128xf32>
    %869 = vector.extract_strided_slice %851 {offsets = [8, 0], sizes = [8, 128], strides = [1, 1]} : vector<24x128xf32> to vector<8x128xf32>
    %870 = vector.extract_strided_slice %851 {offsets = [16, 0], sizes = [8, 128], strides = [1, 1]} : vector<24x128xf32> to vector<8x128xf32>
    %871 = arith.addf %868, %864 : vector<8x128xf32>
    %cst_180 = arith.constant 1.000000e+00 : f32
    %872 = vector.broadcast %cst_180 : f32 to vector<8x128xf32>
    %873 = arith.divf %872, %871 : vector<8x128xf32>
    %874 = arith.mulf %868, %873 : vector<8x128xf32>
    %875 = arith.mulf %869, %873 : vector<8x128xf32>
    %876 = vector.extract_strided_slice %787 {offsets = [0, 0], sizes = [8, 128], strides = [1, 1]} : vector<16x128xf32> to vector<8x128xf32>
    %877 = arith.subf %863, %876 : vector<8x128xf32>
    %878 = arith.mulf %874, %877 : vector<8x128xf32>
    %879 = arith.mulf %875, %877 : vector<8x128xf32>
    %880 = tpu.concatenate %878, %879 in 0 : vector<8x128xf32>, vector<8x128xf32> -> vector<16x128xf32>
    %881 = arith.addf %787, %880 : vector<16x128xf32>
    %cst_181 = arith.constant 1.000000e+00 : f32
    %882 = vector.broadcast %cst_181 : f32 to vector<8x128xf32>
    %883 = arith.subf %882, %874 : vector<8x128xf32>
    %884 = arith.mulf %883, %868 : vector<8x128xf32>
    %885 = arith.mulf %883, %869 : vector<8x128xf32>
    %886 = arith.mulf %875, %869 : vector<8x128xf32>
    %887 = arith.subf %870, %886 : vector<8x128xf32>
    %888 = tpu.concatenate %884, %885, %887 in 0 : vector<8x128xf32>, vector<8x128xf32>, vector<8x128xf32> -> vector<24x128xf32>
    %889 = vector.shape_cast %867 : vector<1x128xi1> to vector<1x128xi1>
    %890 = vector.broadcast %889 : vector<1x128xi1> to vector<16x128xi1>
    %891 = arith.select %890, %881, %787 : vector<16x128xi1>, vector<16x128xf32>
    %892 = vector.shape_cast %867 : vector<1x128xi1> to vector<1x128xi1>
    %893 = vector.broadcast %892 : vector<1x128xi1> to vector<24x128xi1>
    %894 = arith.select %893, %888, %851 : vector<24x128xi1>, vector<24x128xf32>
    %cst_182 = arith.constant 0.000000e+00 : f32
    %895 = vector.broadcast %cst_182 : f32 to vector<8x128xf32>
    %896 = vector.shape_cast %867 : vector<1x128xi1> to vector<1x128xi1>
    %897 = vector.broadcast %896 : vector<1x128xi1> to vector<8x128xi1>
    %898 = arith.select %897, %874, %895 : vector<8x128xi1>, vector<8x128xf32>
    %899 = vector.shape_cast %867 : vector<1x128xi1> to vector<1x128xi1>
    %900 = vector.broadcast %899 : vector<1x128xi1> to vector<8x128xi1>
    %901 = arith.select %900, %875, %895 : vector<8x128xi1>, vector<8x128xf32>
    %902 = arith.index_cast %c5_i32 : i32 to index
    %c0_183 = arith.constant 0 : index
    %c0_184 = arith.constant 0 : index
    %903 = vector.load %arg11[%902, %c0_183, %c0_184] : memref<6x96x128xf32, #tpu.memory_space<vmem>>, vector<1x16x128xf32>
    %904 = vector.shape_cast %903 : vector<1x16x128xf32> to vector<16x128xf32>
    %905 = vector.shape_cast %891 : vector<16x128xf32> to vector<1x16x128xf32>
    tpu.vector_store %arg11[%902, %c0_183, %c0_184], %905 {strides = array<i32>} : memref<6x96x128xf32, #tpu.memory_space<vmem>>, vector<1x16x128xf32>,
    %906 = arith.index_cast %c5_i32 : i32 to index
    %c16_185 = arith.constant 16 : index
    %c0_186 = arith.constant 0 : index
    %907 = vector.load %arg11[%906, %c16_185, %c0_186] : memref<6x96x128xf32, #tpu.memory_space<vmem>>, vector<1x24x128xf32>
    %908 = vector.shape_cast %907 : vector<1x24x128xf32> to vector<24x128xf32>
    %909 = vector.shape_cast %894 : vector<24x128xf32> to vector<1x24x128xf32>
    tpu.vector_store %arg11[%906, %c16_185, %c0_186], %909 {strides = array<i32>} : memref<6x96x128xf32, #tpu.memory_space<vmem>>, vector<1x24x128xf32>,
    %910 = arith.index_cast %c5_i32 : i32 to index
    %c80_187 = arith.constant 80 : index
    %c0_188 = arith.constant 0 : index
    %911 = vector.load %arg11[%910, %c80_187, %c0_188] : memref<6x96x128xf32, #tpu.memory_space<vmem>>, vector<1x8x128xf32>
    %912 = vector.shape_cast %911 : vector<1x8x128xf32> to vector<8x128xf32>
    %913 = vector.shape_cast %898 : vector<8x128xf32> to vector<1x8x128xf32>
    tpu.vector_store %arg11[%910, %c80_187, %c0_188], %913 {strides = array<i32>} : memref<6x96x128xf32, #tpu.memory_space<vmem>>, vector<1x8x128xf32>,
    %914 = arith.index_cast %c5_i32 : i32 to index
    %c88_189 = arith.constant 88 : index
    %c0_190 = arith.constant 0 : index
    %915 = vector.load %arg11[%914, %c88_189, %c0_190] : memref<6x96x128xf32, #tpu.memory_space<vmem>>, vector<1x8x128xf32>
    %916 = vector.shape_cast %915 : vector<1x8x128xf32> to vector<8x128xf32>
    %917 = vector.shape_cast %901 : vector<8x128xf32> to vector<1x8x128xf32>
    tpu.vector_store %arg11[%914, %c88_189, %c0_190], %917 {strides = array<i32>} : memref<6x96x128xf32, #tpu.memory_space<vmem>>, vector<1x8x128xf32>,
    %cst_191 = arith.constant dense<0.000000e+00> : vector<16x128xf32>
    %918 = tpu.matmul %3, %891, %cst_191 {dimension_numbers = #tpu.dot_dimension_numbers<[1], [0], [0], [1], [0, 0, 1, 1], [], []>} : vector<16x16xf32>, vector<16x128xf32>, vector<16x128xf32> -> vector<16x128xf32>
    %c0_192 = arith.constant 0 : index
    %c0_193 = arith.constant 0 : index
    %919 = vector.load %arg8[%c0_192, %c0_193] : memref<48x16xf32, #tpu.memory_space<vmem>>, vector<48x16xf32>
    %cst_194 = arith.constant dense<0.000000e+00> : vector<48x128xf32>
    %920 = tpu.matmul %919, %891, %cst_194 {dimension_numbers = #tpu.dot_dimension_numbers<[1], [0], [0], [1], [0, 0, 1, 1], [], []>} : vector<48x16xf32>, vector<16x128xf32>, vector<48x128xf32> -> vector<48x128xf32>
    %921 = vector.broadcast %4 : vector<16x1xf32> to vector<16x128xf32>
    %922 = arith.addf %918, %921 : vector<16x128xf32>
    %923 = math.tanh %922 : vector<16x128xf32>
    %cst_195 = arith.constant dense<0.000000e+00> : vector<3x128xf32>
    %924 = tpu.matmul %5, %923, %cst_195 {dimension_numbers = #tpu.dot_dimension_numbers<[1], [0], [0], [1], [0, 0, 1, 1], [], []>} : vector<3x16xf32>, vector<16x128xf32>, vector<3x128xf32> -> vector<3x128xf32>
    %925 = vector.broadcast %6 : vector<3x1xf32> to vector<3x128xf32>
    %926 = arith.addf %924, %925 : vector<3x128xf32>
    %927 = vector.extract_strided_slice %926 {offsets = [0, 0], sizes = [1, 128], strides = [1, 1]} : vector<3x128xf32> to vector<1x128xf32>
    %928 = vector.extract_strided_slice %926 {offsets = [1, 0], sizes = [1, 128], strides = [1, 1]} : vector<3x128xf32> to vector<1x128xf32>
    %929 = arith.maximumf %927, %928 : vector<1x128xf32>
    %930 = vector.extract_strided_slice %926 {offsets = [2, 0], sizes = [1, 128], strides = [1, 1]} : vector<3x128xf32> to vector<1x128xf32>
    %931 = arith.maximumf %929, %930 : vector<1x128xf32>
    %932 = vector.broadcast %931 : vector<1x128xf32> to vector<3x128xf32>
    %933 = arith.subf %926, %932 : vector<3x128xf32>
    %934 = math.exp %933 : vector<3x128xf32>
    %cst_196 = arith.constant dense<0.000000e+00> : vector<128xf32>
    %935 = vector.multi_reduction <add>, %934, %cst_196 [0] : vector<3x128xf32> to vector<128xf32>
    %936 = vector.shape_cast %935 : vector<128xf32> to vector<1x128xf32>
    %937 = tpu.reciprocal %936 {approx = true} : vector<1x128xf32> -> vector<1x128xf32>
    %938 = arith.mulf %936, %937 : vector<1x128xf32>
    %cst_197 = arith.constant 2.000000e+00 : f32
    %939 = vector.broadcast %cst_197 : f32 to vector<1x128xf32>
    %940 = arith.subf %939, %938 : vector<1x128xf32>
    %941 = arith.mulf %937, %940 : vector<1x128xf32>
    %942 = vector.broadcast %941 : vector<1x128xf32> to vector<3x128xf32>
    %943 = arith.mulf %934, %942 : vector<3x128xf32>
    %944 = vector.extract_strided_slice %920 {offsets = [0, 0], sizes = [16, 128], strides = [1, 1]} : vector<48x128xf32> to vector<16x128xf32>
    %945 = vector.extract_strided_slice %943 {offsets = [0, 0], sizes = [1, 128], strides = [1, 1]} : vector<3x128xf32> to vector<1x128xf32>
    %946 = vector.broadcast %945 : vector<1x128xf32> to vector<16x128xf32>
    %947 = arith.mulf %944, %946 : vector<16x128xf32>
    %948 = vector.extract_strided_slice %920 {offsets = [16, 0], sizes = [16, 128], strides = [1, 1]} : vector<48x128xf32> to vector<16x128xf32>
    %949 = vector.extract_strided_slice %943 {offsets = [1, 0], sizes = [1, 128], strides = [1, 1]} : vector<3x128xf32> to vector<1x128xf32>
    %950 = vector.broadcast %949 : vector<1x128xf32> to vector<16x128xf32>
    %951 = arith.mulf %948, %950 : vector<16x128xf32>
    %952 = arith.addf %947, %951 : vector<16x128xf32>
    %953 = vector.extract_strided_slice %920 {offsets = [32, 0], sizes = [16, 128], strides = [1, 1]} : vector<48x128xf32> to vector<16x128xf32>
    %954 = vector.extract_strided_slice %943 {offsets = [2, 0], sizes = [1, 128], strides = [1, 1]} : vector<3x128xf32> to vector<1x128xf32>
    %955 = vector.broadcast %954 : vector<1x128xf32> to vector<16x128xf32>
    %956 = arith.mulf %953, %955 : vector<16x128xf32>
    %957 = arith.addf %952, %956 : vector<16x128xf32>
    %c0_198 = arith.constant 0 : index
    %c0_199 = arith.constant 0 : index
    %958 = vector.load %arg9[%c0_198, %c0_199] : memref<216x24xf32, #tpu.memory_space<vmem>>, vector<72x24xf32>
    %cst_200 = arith.constant dense<0.000000e+00> : vector<72x128xf32>
    %959 = tpu.matmul %958, %894, %cst_200 {dimension_numbers = #tpu.dot_dimension_numbers<[1], [0], [0], [1], [0, 0, 1, 1], [], []>} : vector<72x24xf32>, vector<24x128xf32>, vector<72x128xf32> -> vector<72x128xf32>
    %960 = vector.extract_strided_slice %943 {offsets = [0, 0], sizes = [1, 128], strides = [1, 1]} : vector<3x128xf32> to vector<1x128xf32>
    %961 = vector.extract_strided_slice %959 {offsets = [0, 0], sizes = [24, 128], strides = [1, 1]} : vector<72x128xf32> to vector<24x128xf32>
    %962 = vector.extract_strided_slice %943 {offsets = [0, 0], sizes = [1, 128], strides = [1, 1]} : vector<3x128xf32> to vector<1x128xf32>
    %963 = arith.mulf %960, %962 : vector<1x128xf32>
    %964 = vector.broadcast %963 : vector<1x128xf32> to vector<24x128xf32>
    %965 = arith.mulf %961, %964 : vector<24x128xf32>
    %966 = vector.extract_strided_slice %959 {offsets = [24, 0], sizes = [24, 128], strides = [1, 1]} : vector<72x128xf32> to vector<24x128xf32>
    %967 = vector.extract_strided_slice %943 {offsets = [1, 0], sizes = [1, 128], strides = [1, 1]} : vector<3x128xf32> to vector<1x128xf32>
    %968 = arith.mulf %960, %967 : vector<1x128xf32>
    %969 = vector.broadcast %968 : vector<1x128xf32> to vector<24x128xf32>
    %970 = arith.mulf %966, %969 : vector<24x128xf32>
    %971 = arith.addf %965, %970 : vector<24x128xf32>
    %972 = vector.extract_strided_slice %959 {offsets = [48, 0], sizes = [24, 128], strides = [1, 1]} : vector<72x128xf32> to vector<24x128xf32>
    %973 = vector.extract_strided_slice %943 {offsets = [2, 0], sizes = [1, 128], strides = [1, 1]} : vector<3x128xf32> to vector<1x128xf32>
    %974 = arith.mulf %960, %973 : vector<1x128xf32>
    %975 = vector.broadcast %974 : vector<1x128xf32> to vector<24x128xf32>
    %976 = arith.mulf %972, %975 : vector<24x128xf32>
    %977 = arith.addf %971, %976 : vector<24x128xf32>
    %c72_201 = arith.constant 72 : index
    %c0_202 = arith.constant 0 : index
    %978 = vector.load %arg9[%c72_201, %c0_202] : memref<216x24xf32, #tpu.memory_space<vmem>>, vector<72x24xf32>
    %cst_203 = arith.constant dense<0.000000e+00> : vector<72x128xf32>
    %979 = tpu.matmul %978, %894, %cst_203 {dimension_numbers = #tpu.dot_dimension_numbers<[1], [0], [0], [1], [0, 0, 1, 1], [], []>} : vector<72x24xf32>, vector<24x128xf32>, vector<72x128xf32> -> vector<72x128xf32>
    %980 = vector.extract_strided_slice %943 {offsets = [1, 0], sizes = [1, 128], strides = [1, 1]} : vector<3x128xf32> to vector<1x128xf32>
    %981 = vector.extract_strided_slice %979 {offsets = [0, 0], sizes = [24, 128], strides = [1, 1]} : vector<72x128xf32> to vector<24x128xf32>
    %982 = vector.extract_strided_slice %943 {offsets = [0, 0], sizes = [1, 128], strides = [1, 1]} : vector<3x128xf32> to vector<1x128xf32>
    %983 = arith.mulf %980, %982 : vector<1x128xf32>
    %984 = vector.broadcast %983 : vector<1x128xf32> to vector<24x128xf32>
    %985 = arith.mulf %981, %984 : vector<24x128xf32>
    %986 = arith.addf %977, %985 : vector<24x128xf32>
    %987 = vector.extract_strided_slice %979 {offsets = [24, 0], sizes = [24, 128], strides = [1, 1]} : vector<72x128xf32> to vector<24x128xf32>
    %988 = vector.extract_strided_slice %943 {offsets = [1, 0], sizes = [1, 128], strides = [1, 1]} : vector<3x128xf32> to vector<1x128xf32>
    %989 = arith.mulf %980, %988 : vector<1x128xf32>
    %990 = vector.broadcast %989 : vector<1x128xf32> to vector<24x128xf32>
    %991 = arith.mulf %987, %990 : vector<24x128xf32>
    %992 = arith.addf %986, %991 : vector<24x128xf32>
    %993 = vector.extract_strided_slice %979 {offsets = [48, 0], sizes = [24, 128], strides = [1, 1]} : vector<72x128xf32> to vector<24x128xf32>
    %994 = vector.extract_strided_slice %943 {offsets = [2, 0], sizes = [1, 128], strides = [1, 1]} : vector<3x128xf32> to vector<1x128xf32>
    %995 = arith.mulf %980, %994 : vector<1x128xf32>
    %996 = vector.broadcast %995 : vector<1x128xf32> to vector<24x128xf32>
    %997 = arith.mulf %993, %996 : vector<24x128xf32>
    %998 = arith.addf %992, %997 : vector<24x128xf32>
    %c144_204 = arith.constant 144 : index
    %c0_205 = arith.constant 0 : index
    %999 = vector.load %arg9[%c144_204, %c0_205] : memref<216x24xf32, #tpu.memory_space<vmem>>, vector<72x24xf32>
    %cst_206 = arith.constant dense<0.000000e+00> : vector<72x128xf32>
    %1000 = tpu.matmul %999, %894, %cst_206 {dimension_numbers = #tpu.dot_dimension_numbers<[1], [0], [0], [1], [0, 0, 1, 1], [], []>} : vector<72x24xf32>, vector<24x128xf32>, vector<72x128xf32> -> vector<72x128xf32>
    %1001 = vector.extract_strided_slice %943 {offsets = [2, 0], sizes = [1, 128], strides = [1, 1]} : vector<3x128xf32> to vector<1x128xf32>
    %1002 = vector.extract_strided_slice %1000 {offsets = [0, 0], sizes = [24, 128], strides = [1, 1]} : vector<72x128xf32> to vector<24x128xf32>
    %1003 = vector.extract_strided_slice %943 {offsets = [0, 0], sizes = [1, 128], strides = [1, 1]} : vector<3x128xf32> to vector<1x128xf32>
    %1004 = arith.mulf %1001, %1003 : vector<1x128xf32>
    %1005 = vector.broadcast %1004 : vector<1x128xf32> to vector<24x128xf32>
    %1006 = arith.mulf %1002, %1005 : vector<24x128xf32>
    %1007 = arith.addf %998, %1006 : vector<24x128xf32>
    %1008 = vector.extract_strided_slice %1000 {offsets = [24, 0], sizes = [24, 128], strides = [1, 1]} : vector<72x128xf32> to vector<24x128xf32>
    %1009 = vector.extract_strided_slice %943 {offsets = [1, 0], sizes = [1, 128], strides = [1, 1]} : vector<3x128xf32> to vector<1x128xf32>
    %1010 = arith.mulf %1001, %1009 : vector<1x128xf32>
    %1011 = vector.broadcast %1010 : vector<1x128xf32> to vector<24x128xf32>
    %1012 = arith.mulf %1008, %1011 : vector<24x128xf32>
    %1013 = arith.addf %1007, %1012 : vector<24x128xf32>
    %1014 = vector.extract_strided_slice %1000 {offsets = [48, 0], sizes = [24, 128], strides = [1, 1]} : vector<72x128xf32> to vector<24x128xf32>
    %1015 = vector.extract_strided_slice %943 {offsets = [2, 0], sizes = [1, 128], strides = [1, 1]} : vector<3x128xf32> to vector<1x128xf32>
    %1016 = arith.mulf %1001, %1015 : vector<1x128xf32>
    %1017 = vector.broadcast %1016 : vector<1x128xf32> to vector<24x128xf32>
    %1018 = arith.mulf %1014, %1017 : vector<24x128xf32>
    %1019 = arith.addf %1013, %1018 : vector<24x128xf32>
    %1020 = vector.broadcast %7 : vector<24x1xf32> to vector<24x128xf32>
    %1021 = arith.addf %1019, %1020 : vector<24x128xf32>
    %1022 = arith.index_cast %c5_i32 : i32 to index
    %c40_207 = arith.constant 40 : index
    %c0_208 = arith.constant 0 : index
    %1023 = vector.load %arg11[%1022, %c40_207, %c0_208] : memref<6x96x128xf32, #tpu.memory_space<vmem>>, vector<1x16x128xf32>
    %1024 = vector.shape_cast %1023 : vector<1x16x128xf32> to vector<16x128xf32>
    %1025 = vector.shape_cast %957 : vector<16x128xf32> to vector<1x16x128xf32>
    tpu.vector_store %arg11[%1022, %c40_207, %c0_208], %1025 {strides = array<i32>} : memref<6x96x128xf32, #tpu.memory_space<vmem>>, vector<1x16x128xf32>,
    %1026 = arith.index_cast %c5_i32 : i32 to index
    %c56_209 = arith.constant 56 : index
    %c0_210 = arith.constant 0 : index
    %1027 = vector.load %arg11[%1026, %c56_209, %c0_210] : memref<6x96x128xf32, #tpu.memory_space<vmem>>, vector<1x24x128xf32>
    %1028 = vector.shape_cast %1027 : vector<1x24x128xf32> to vector<24x128xf32>
    %1029 = vector.shape_cast %1021 : vector<24x128xf32> to vector<1x24x128xf32>
    tpu.vector_store %arg11[%1026, %c56_209, %c0_210], %1029 {strides = array<i32>} : memref<6x96x128xf32, #tpu.memory_space<vmem>>, vector<1x24x128xf32>,
    %c6_i32 = arith.constant 6 : i32
    %c0_211 = arith.constant 0 : index
    %c0_212 = arith.constant 0 : index
    %1030 = vector.load %arg12[%c0_211, %c0_212] : memref<16x128xf32, #tpu.memory_space<vmem>>, vector<16x128xf32>
    tpu.vector_store %arg12[%c0_211, %c0_212], %957 {strides = array<i32>} : memref<16x128xf32, #tpu.memory_space<vmem>>, vector<16x128xf32>,
    %c0_213 = arith.constant 0 : index
    %c0_214 = arith.constant 0 : index
    %1031 = vector.load %arg13[%c0_213, %c0_214] : memref<24x128xf32, #tpu.memory_space<vmem>>, vector<24x128xf32>
    tpu.vector_store %arg13[%c0_213, %c0_214], %1021 {strides = array<i32>} : memref<24x128xf32, #tpu.memory_space<vmem>>, vector<24x128xf32>,
    return
  }
  func.func @transform_0(%arg0: i32, %arg1: i32) -> (i32, i32, i32) {
    %c0_i32 = arith.constant 0 : i32
    %c0_i32_0 = arith.constant 0 : i32
    return %arg1, %c0_i32, %arg0 : i32, i32, i32
  }
  func.func @transform_1(%arg0: i32, %arg1: i32) -> (i32, i32) {
    %c0_i32 = arith.constant 0 : i32
    %c0_i32_0 = arith.constant 0 : i32
    return %c0_i32, %arg0 : i32, i32
  }
  func.func @transform_2(%arg0: i32, %arg1: i32) -> (i32, i32) {
    %c0_i32 = arith.constant 0 : i32
    %c0_i32_0 = arith.constant 0 : i32
    %c0_i32_1 = arith.constant 0 : i32
    return %c0_i32, %c0_i32_0 : i32, i32
  }
  func.func @transform_3(%arg0: i32, %arg1: i32) -> (i32, i32) {
    %c0_i32 = arith.constant 0 : i32
    %c0_i32_0 = arith.constant 0 : i32
    %c0_i32_1 = arith.constant 0 : i32
    return %c0_i32, %c0_i32_0 : i32, i32
  }
  func.func @transform_4(%arg0: i32, %arg1: i32) -> (i32, i32) {
    %c0_i32 = arith.constant 0 : i32
    %c0_i32_0 = arith.constant 0 : i32
    %c0_i32_1 = arith.constant 0 : i32
    return %c0_i32, %c0_i32_0 : i32, i32
  }
  func.func @transform_5(%arg0: i32, %arg1: i32) -> (i32, i32) {
    %c0_i32 = arith.constant 0 : i32
    %c0_i32_0 = arith.constant 0 : i32
    %c0_i32_1 = arith.constant 0 : i32
    return %c0_i32, %c0_i32_0 : i32, i32
  }
  func.func @transform_6(%arg0: i32, %arg1: i32) -> (i32, i32) {
    %c0_i32 = arith.constant 0 : i32
    %c0_i32_0 = arith.constant 0 : i32
    %c0_i32_1 = arith.constant 0 : i32
    return %c0_i32, %c0_i32_0 : i32, i32
  }
  func.func @transform_7(%arg0: i32, %arg1: i32) -> (i32, i32) {
    %c0_i32 = arith.constant 0 : i32
    %c0_i32_0 = arith.constant 0 : i32
    %c0_i32_1 = arith.constant 0 : i32
    return %c0_i32, %c0_i32_0 : i32, i32
  }
  func.func @transform_8(%arg0: i32, %arg1: i32) -> (i32, i32) {
    %c0_i32 = arith.constant 0 : i32
    %c0_i32_0 = arith.constant 0 : i32
    %c0_i32_1 = arith.constant 0 : i32
    return %c0_i32, %c0_i32_0 : i32, i32
  }
  func.func @transform_9(%arg0: i32, %arg1: i32) -> (i32, i32, i32) {
    %c0_i32 = arith.constant 0 : i32
    %c0_i32_0 = arith.constant 0 : i32
    return %arg1, %c0_i32, %arg0 : i32, i32, i32
  }
}

</mosaic_0001>

<bundles_post_ra>
// kernel: tpu_custom_call.1
= control target key start
LH: loop header
LB: loop body
LE: loop exit
PB: predicated region body
PF: predicated region fallthrough
CT: control target
= control target key end

     0   :  { %v5145_v2 = vmov 0   ;;  %s5135_s0 = inlined_call_operand.vmem [shape: f32[6,24,128], index: 0, kind: input, shape index: {}]   ;;  %s5136_s1 = inlined_call_operand.vmem [shape: f32[40,128], index: 1, kind: input, shape index: {}]   ;;  %s5137_s2 = inlined_call_operand.vmem [shape: f32[16,16], index: 2, kind: input, shape index: {}]   ;;  %s5138_s3 = inlined_call_operand.vmem [shape: f32[16,1], index: 3, kind: input, shape index: {}]   ;;  %s5139_s4 = inlined_call_operand.vmem [shape: f32[3,16], index: 4, kind: input, shape index: {}]   ;;  %s5140_s5 = inlined_call_operand.vmem [shape: f32[3,1], index: 5, kind: input, shape index: {}]   ;;  %s5141_s6 = inlined_call_operand.vmem [shape: f32[48,16], index: 6, kind: input, shape index: {}]   ;;  %s5142_s7 = inlined_call_operand.vmem [shape: f32[216,24], index: 7, kind: input, shape index: {}]   ;;  %s5143_s8 = inlined_call_operand.vmem [shape: f32[24,1], index: 8, kind: input, shape index: {}]   ;;  %s5144_s9 = inlined_call_operand.hbm [shape: f32[6,96,128], index: 9, kind: output, shape index: {}]  }
   0x1   :  { %v3544_v0 = vld [vmem:[%s5136_s1 + $0x10] sm:$0xff]  ;;  %v62_v1 = vld [vmem:[%s5135_s0 + $0x8] sm:$0xff]  ;;  %3392 = vset.pattern.permute.xlu0 %v5145_v2  ;;  %3393 = vset.pattern.permute.xlu1 %v5145_v2 }
   0x2   :  { %v65_v3 = vadd.f32 %v62_v1, %v3544_v0  ;;  %v50_v4 = vld [vmem:[%s5138_s3 + $0x8] sm:$0xff]  ;;  %3394 = vset.pattern.permute.xlu2 %v5145_v2 }
   0x3   :  { %177 = vperm.xlu0 %3392, %v50_v4  }
   0x4   :  { %14 = vsyncpa [#allocation5], 0  ;;  %3395 = vrcp.f32 %v65_v3  ;;  %v49_v5 = vld [vmem:[%s5138_s3] sm:$0xff]  ;;  %v63_v6 = vld [vmem:[%s5135_s0 + $0x10] sm:$0xff]  ;;  %v77_v9 = vand.u32 2147483648, %v65_v3  ;;  %vm71_vm1 = vweird.f32 %v65_v3  ;;  %vm116_vm6 = vcmask 130048  }
   0x5   :  { %vm64_vm0 = vcmp.gt.f32.partialorder %v63_v6, 0.5  ;;  %v75_v11 = vand.u32 2147483647, %v65_v3  ;;  %v37_v14 = vld [vmem:[%s5136_s1] sm:$0xff]  ;;  %v42_v18 = vld [vmem:[%s5136_s1 + $0x18] sm:$0xff]  ;;  %v38_v25 = vld [vmem:[%s5136_s1 + $0x8] sm:$0xff] }
   0x6   :  { %v93_v13 = vsel %vm64_vm0, 1, %v5145_v2  ;;  %v61_v15 = vld [vmem:[%s5135_s0] sm:$0xff]  ;;  %v78_v16 = vor.u32 1.1754944e-38, %v77_v9  ;;  %v3598_v36 = vld [vmem:[%s5137_s2 + $0x8] sm:$0xff]  ;;  %v3619_v39 = vld [vmem:[%s5141_s6 + $0x10] sm:$0xff]  ;;  %vm285_vm7 = vcmask 195584  }
   0x7   :  { %vm76_vm4 = vcmp.eq.f32.partialorder %v75_v11, 8.507059e+37  ;;  %v94_v19 = vperm.slane %v93_v13, 0  ;;  %v83_v21 = vsub.f32 %v61_v15, %v37_v14  ;;  %v3591_v35 = vld [vmem:[%s5137_s2] sm:$0xff]  ;;  %v3612_v38 = vld [vmem:[%s5141_s6 + $0x8] sm:$0xff]  ;;  %v3626_v40 = vld [vmem:[%s5141_s6 + $0x18] sm:$0xff]  ;;  %vm250_vm8 = vcmask 1042432  }
   0x8   :  { %v3605_v37 = vld [vmem:[%s5141_s6] sm:$0xff]  ;;  %v3652_v50 = vld [vmem:[%s5142_s7 + $0x10] sm:$0xff]  ;;  %v3676_v55 = vld [vmem:[%s5141_s6 + $0x28] sm:$0xff]  ;;  %s3136_s30 = sshll.u32 %s5144_s9, 4  ;;  %s3489_s10 = smov 128   ;;  %s3137_s30 = int_to_ptr.hbm [resolvable:$true] %s3136_s30 }
   0x9   :  { %vm3576_vm5 = vcmp.eq.s32.totalorder %v94_v19, 1  ;;  %v43_v43 = vld [vmem:[%s5136_s1 + $0x20] sm:$0xff]  ;;  %5246 = vst [vmem:[#allocation8_spill] sm:$0xff] %v3676_v55  ;;  %v3682_v57 = vld [vmem:[%s5142_s7 + $0x18] sm:$0xff]  ;;  %v3694_v59 = vld [vmem:[%s5142_s7 + $0xa8] sm:$0xff]  ;;  %s3490_s11 = smov 8  }
   0xa   :  { %v3396_v7 = vpop.eup %3395  ;;  %v3642_v47 = vld [vmem:[%s5141_s6 + $0x20] sm:$0xff]  ;;  %5247 = vst [vmem:[#allocation9_spill] sm:$0xff] %v3694_v59  ;;  %v3727_v4 = vld [vmem:[%s5142_s7 + $0x8] sm:$0xff]  ;;  %v3748_v9 = vld [vmem:[%s5142_s7 + $0xb8] sm:$0xff] }
   0xb   :  { %v67_v8 = vmul.f32 %v3396_v7, %v65_v3  ;;  %172 = vperm.xlu0 %3392, %v49_v5   ;;  %vm72_vm2 = vweird.f32 %v3396_v7  ;;  %v52_v53 = vld [vmem:[%s5140_s5] sm:$0x7]  ;;  %v3720_v3 = vld [vmem:[%s5142_s7 + $0xb0] sm:$0xff]  ;;  %v3732_v6 = vld [vmem:[%s5142_s7 + $0x28] sm:$0xff]  ;;  %5253 = vst [vmem:[#allocation15_spill] sm:$0xff] %v3748_v9 }
   0xc   :  { %vm73_vm3 = vmor %vm71_vm1, %vm72_vm2  ;;  %v3669_v54 = vld [vmem:[%s5142_s7 + $0xa0] sm:$0xff]  ;;  %213 = vperm.xlu1 %3393, %v52_v53   ;;  %5250 = vst [vmem:[#allocation12_spill] sm:$0xff] %v3720_v3  ;;  %v3761_v11 = vld [vmem:[%s5142_s7 + $0x30] sm:$0xff] }
   0xd   :  { %v68_v10 = vsub.f32 1.0, %v67_v8  ;;  %v53_v58 = vld [vmem:[%s5143_s8] sm:$0xff]  ;;  %5251 = vst [vmem:[#allocation13_spill] sm:$0xff] %v3732_v6  ;;  %v3789_v15 = vld [vmem:[%s5142_s7 + $0x38] sm:$0xff]  ;;  %v55_v26 = vld [vmem:[%s5143_s8 + $0x10] sm:$0xff] }
   0xe   :  { %v3703_v61 = vld [vmem:[%s5142_s7] sm:$0xff]  ;;  %5255 = vst [vmem:[#allocation17_spill] sm:$0xff] %v3761_v11 }
   0xf   :  { %v69_v12 = vmul.f32 %v3396_v7, %v68_v10  ;;  %v3710_v1 = vld [vmem:[%s5142_s7 + $0x20] sm:$0xff]  ;;  %v3756_v10 = vld [vmem:[%s5142_s7 + $0x48] sm:$0xff]  ;;  %5259 = vst [vmem:[#allocation21_spill] sm:$0xff] %v3789_v15 }
  0x10   :  { %5249 = vst [vmem:[#allocation11_spill] sm:$0xff] %v3710_v1  ;;  %v3777_v13 = vld [vmem:[%s5142_s7 + $0xc0] sm:$0xff] }
  0x11   :  { %v70_v17 = vadd.f32 %v3396_v7, %v69_v12  ;;  %5254 = vst [vmem:[#allocation16_spill] sm:$0xff] %v3756_v10  ;;  %v3766_v12 = vld [vmem:[%s5142_s7 + $0x58] sm:$0xff]  ;;  %v3817_v19 = vld [vmem:[%s5142_s7 + $0x40] sm:$0xff] }
  0x12   :  { %5256 = vst [vmem:[#allocation18_spill] sm:$0xff] %v3766_v12 }
  0x13   :  { %v74_v20 = vsel %vm73_vm3, %v3396_v7, %v70_v17  ;;  %v3737_v7 = vld [vmem:[%s5139_s4] sm:$0x7]  ;;  %5257 = vst [vmem:[#allocation19_spill] sm:$0xff] %v3777_v13  ;;  %v3805_v17 = vld [vmem:[%s5142_s7 + $0xc8] sm:$0xff] }
  0x14   :  { %v79_v22 = vsel %vm76_vm4, %v78_v16, %v74_v20  ;;  %584 = vperm.xlu1 %3393, %v53_v58   ;;  %5252 = vst [vmem:[#allocation14_spill] sm:$0xff] %v3737_v7  ;;  %v3794_v16 = vld [vmem:[%s5142_s7 + $0x60] sm:$0xff]  ;;  %v3822_v20 = vld [vmem:[%s5142_s7 + $0x68] sm:$0xff] }
  0x15   :  { %v82_v23 = vmul.f32 %v79_v22, %v42_v18  ;;  %v81_v24 = vmul.f32 %v79_v22, %v3544_v0  ;;  %5260 = vst [vmem:[#allocation22_spill] sm:$0xff] %v3794_v16  ;;  %v54_v22 = vld [vmem:[%s5143_s8 + $0x8] sm:$0xff] }
  0x16   :  { %5261 = vst [vmem:[#allocation23_spill] sm:$0xff] %v3805_v17  ;;  %589 = vperm.xlu2 %3394, %v54_v22  }
  0x17   :  { %v85_v27 = vmul.f32 %v83_v21, %v82_v23  ;;  %v102_v28 = vsel %vm3576_vm5, %v82_v23, 0.0  ;;  %v84_v29 = vmul.f32 %v83_v21, %v81_v24  ;;  %v101_v30 = vsel %vm3576_vm5, %v81_v24, 0.0  ;;  %5262 = vst [vmem:[#allocation24_spill] sm:$0xff] %v3817_v19  ;;  %v3833_v21 = vld [vmem:[%s5142_s7 + $0xd0] sm:$0xff] }
  0x18   :  { %109 = vst [vmem:[#allocation4 + $0x58] sm:$0xff] %v102_v28  ;;  %v91_v41 = vmul.f32 %v82_v23, %v42_v18  ;;  %v88_v42 = vsub.f32 1.0, %v81_v24  ;;  %v3843_v23 = vld [vmem:[%s5142_s7 + $0x98] sm:$0xff]  ;;  %v3848_v24 = vld [vmem:[%s5142_s7 + $0x70] sm:$0xff]  ;;  %v3874_v28 = vld [vmem:[%s5142_s7 + $0x88] sm:$0xff] }
  0x19   :  { %v87_v31 = vadd.f32 %v85_v27, %v38_v25  ;;  %v86_v32 = vadd.f32 %v84_v29, %v37_v14  ;;  %108 = vst [vmem:[#allocation4 + $0x50] sm:$0xff] %v101_v30  ;;  %v3867_v27 = vld [vmem:[%s5142_s7 + $0x80] sm:$0xff] }
  0x1a   :  { %v92_v44 = vsub.f32 %v43_v43, %v91_v41  ;;  %v90_v46 = vmul.f32 %v88_v42, %v42_v18  ;;  %v89_v49 = vmul.f32 %v88_v42, %v3544_v0  ;;  %5263 = vst [vmem:[#allocation25_spill] sm:$0xff] %v3822_v20 }
  0x1b   :  { %v97_v33 = vsel %vm3576_vm5, %v87_v31, %v38_v25  ;;  %v96_v34 = vsel %vm3576_vm5, %v86_v32, %v37_v14  ;;  %v3784_v14 = vld [vmem:[%s5142_s7 + $0x50] sm:$0xff]  ;;  %5264 = vst [vmem:[#allocation26_spill] sm:$0xff] %v3833_v21  ;;  %v3857_v25 = vld [vmem:[%s5142_s7 + $0x78] sm:$0xff] }
  0x1c   :  { %104 = vst [vmem:[#allocation4 + $0x8] sm:$0xff] %v97_v33  ;;  %200 = vmatpush.msra.mxu1 %v97_v33  ;;  %149 = vmatpush.msra.mxu0 %v97_v33  ;;  %v3635_v45 = vsel %vm3576_vm5, %v92_v44, %v43_v43  ;;  %v99_v48 = vsel %vm3576_vm5, %v90_v46, %v42_v18  ;;  %v3812_v18 = vld [vmem:[%s5142_s7 + $0x90] sm:$0xff] }
  0x1d   :  { %103 = vst [vmem:[#allocation4] sm:$0xff] %v96_v34  ;;  %3379 = vmatpush.msra.mxu3 %v3635_v45  ;;  %v98_v51 = vsel %vm3576_vm5, %v89_v49, %v3544_v0 }
  0x1e   :  { %201 = vmatpush.msra.mxu1 %v96_v34  ;;  %150 = vmatpush.msra.mxu0 %v96_v34  ;;  %107 = vst [vmem:[#allocation4 + $0x20] sm:$0xff] %v3635_v45 }
  0x1f   :  { %3154 = vmatmul.msk.f32.vlgmr.msra.gmra.mxu1 %vm116_vm6, %v3591_v35  ;;  %3148 = vmatmul.msk.f32.vlgmr.msra.gmra.mxu0 %vm116_vm6, %v3605_v37  ;;  %106 = vst [vmem:[#allocation4 + $0x18] sm:$0xff] %v99_v48 }
  0x20   :  { %3385 = vmatpush.msrb.mxu1 %v3635_v45  ;;  %326 = vmatpush.msrb.mxu0 %v3635_v45  ;;  %105 = vst [vmem:[#allocation4 + $0x10] sm:$0xff] %v98_v51 }
  0x21   :  { %3380 = vmatpush.msra.mxu3 %v99_v48  ;;  %5258 = vst [vmem:[#allocation20_spill] sm:$0xff] %v3784_v14  ;;  %594 = vperm.xlu2 %3394, %v55_v26  }
  0x22   :  { %3386 = vmatpush.msrb.mxu1 %v99_v48  ;;  %327 = vmatpush.msrb.mxu0 %v99_v48  ;;  %5265 = vst [vmem:[#allocation27_spill] sm:$0xff] %v3848_v24 }
  0x23   :  { %3381 = vmatpush.msra.mxu3 %v98_v51  ;;  %5266 = vst [vmem:[#allocation28_spill] sm:$0xff] %v3857_v25 }
  0x24   :  { %3387 = vmatpush.msrb.mxu1 %v98_v51  ;;  %3159 = vmatmul.msk.f32.vlgmr.msra.gmra.mxu3 %vm285_vm7, %v3652_v50  ;;  %5267 = vst [vmem:[#allocation29_spill] sm:$0xff] %v3867_v27 }
  0x25   :  { %328 = vmatpush.msrb.mxu0 %v98_v51  ;;  %5268 = vst [vmem:[#allocation30_spill] sm:$0xff] %v3874_v28 }
  0x27   :  { %3155 = vmatmul.msk.f32.gmra.mxu1 %vm116_vm6, %v3598_v36  ;;  %3149 = vmatmul.msk.f32.gmra.mxu0 %vm116_vm6, %v3612_v38 }
  0x28   :  { %432 = vmatpush.msra.mxu0 %v3635_v45 }
  0x2a   :  { %433 = vmatpush.msra.mxu0 %v99_v48 }
  0x2c   :  { %3160 = vmatmul.msk.f32.gmra.mxu3 %vm285_vm7, %v3682_v57  ;;  %434 = vmatpush.msra.mxu0 %v98_v51 }
  0x2f   :  { %3150 = vmatmul.msk.f32.gmra.mxu0 %vm116_vm6, %v3619_v39  ;;  %3177 = vmatmul.msk.f32.vlgmr.msrb.gmra.mxu1 %vm285_vm7, %v3669_v54 }
  0x34   :  { %3161 = vmatmul.msk.f32.gmra.mxu3 %vm285_vm7, %v3710_v1 }
  0x37   :  { %3151 = vmatmul.msk.f32.gmra.mxu0 %vm116_vm6, %v3626_v40  ;;  %3178 = vmatmul.msk.f32.gmra.mxu1 %vm285_vm7, %v3694_v59 }
  0x3c   :  { %3162 = vmatmul.msk.f32.gmra.mxu3 %vm285_vm7, %v3732_v6 }
  0x3f   :  { %3152 = vmatmul.msk.f32.gmra.mxu0 %vm116_vm6, %v3642_v47  ;;  %3179 = vmatmul.msk.f32.gmra.mxu1 %vm285_vm7, %v3720_v3 }
  0x44   :  { %3163 = vmatmul.msk.f32.gmra.mxu3 %vm285_vm7, %v3761_v11 }
  0x47   :  { %3153 = vmatmul.msk.f32.gmra.mxu0 %vm116_vm6, %v3676_v55  ;;  %3180 = vmatmul.msk.f32.gmra.mxu1 %vm285_vm7, %v3748_v9 }
  0x4c   :  { %3164 = vmatmul.msk.f32.gmra.mxu3 %vm285_vm7, %v3789_v15 }
  0x4f   :  { %3157 = vmatmul.msk.f32.vlgmr.msrb.gmra.mxu0 %vm285_vm7, %v3703_v61  ;;  %3181 = vmatmul.msk.f32.gmra.mxu1 %vm285_vm7, %v3777_v13 }
  0x50   :  { %532 = vmatpush.msrb.mxu0 %v3635_v45 }
  0x52   :  { %533 = vmatpush.msrb.mxu0 %v99_v48 }
  0x54   :  { %534 = vmatpush.msrb.mxu0 %v98_v51  ;;  %3165 = vmatmul.msk.f32.gmra.mxu3 %vm285_vm7, %v3817_v19 }
  0x57   :  { %3158 = vmatmul.msk.f32.gmra.mxu0 %vm285_vm7, %v3727_v4  ;;  %3182 = vmatmul.msk.f32.gmra.mxu1 %vm285_vm7, %v3805_v17 }
  0x5f   :  { %3166 = vmatmul.msk.f32.vlgmr.msra.gmra.mxu0 %vm285_vm7, %v3756_v10  ;;  %3183 = vmatmul.msk.f32.gmra.mxu1 %vm285_vm7, %v3833_v21 }
  0x67   :  { %3167 = vmatmul.msk.f32.gmra.mxu0 %vm285_vm7, %v3784_v14 }
  0x6f   :  { %3175 = vmatmul.msk.f32.vlgmr.msrb.gmra.mxu0 %vm285_vm7, %v3812_v18 }
  0x75   :  { %v3659_v52 = vpop.permute.xlu0 %177 }
  0x76   :  { %5245 = vst [vmem:[#allocation7_spill] sm:$0xff] %v3659_v52 }
  0x77   :  { %3176 = vmatmul.msk.f32.gmra.mxu0 %vm285_vm7, %v3843_v23 }
  0x7d   :  { %v3696_v60 = vpop.permute.xlu0 %172 }
  0x7e   :  { %5248 = vst [vmem:[#allocation10_spill] sm:$0xff] %v3696_v60  ;;  %v3878_v34 = vpop.permute.xlu1 %213 }
  0x7f   :  { %5269 = vst [vmem:[#allocation31_spill] sm:$0xff] %v3878_v34 }
  0x9c   :  { %v203_v56 = vpop.f32.mrf.mxu1  ;;  %v152_v29 = vpop.f32.mrf.mxu0 }
  0x9d   :  { %v204_v63 = vadd.f32 %v203_v56, %v3696_v60 }
  0xa4   :  { %v206_v62 = vpop.f32.mrf.mxu1  ;;  %v155_v30 = vpop.f32.mrf.mxu0 }
  0xa5   :  { %v207_v0 = vadd.f32 %v206_v62, %v3659_v52 }
  0xa7   :  { %3397 = vtanh.f32 %v207_v0  ;;  %v3880_v42 = vpop.f32.mrf.mxu3 }
  0xa8   :  { %3399 = vtanh.f32 %v204_v63 }
  0xac   :  { %v158_v31 = vpop.f32.mrf.mxu0  ;;  %v3885_v62 = vpop.f32.mrf.mxu1 }
  0xad   :  { %v3398_v5 = vpop.eup %3397 }
  0xae   :  { %233 = vmatpush.msra.mxu2 %v3398_v5  ;;  %v3400_v8 = vpop.eup %3399 }
  0xaf   :  { %v339_v56 = vpop.f32.mrf.mxu3 }
  0xb0   :  { %234 = vmatpush.msra.mxu2 %v3400_v8 }
  0xb1   :  { %3156 = vmatmul.msk.f32.vlgmr.msra.gmra.mxu2 %vm116_vm6, %v3737_v7 }
  0xb2   :  { %3382 = vmatpush.msrb.mxu2 %v3635_v45 }
  0xb4   :  { %3383 = vmatpush.msrb.mxu2 %v99_v48  ;;  %v161_v32 = vpop.f32.mrf.mxu0 }
  0xb6   :  { %3384 = vmatpush.msrb.mxu2 %v98_v51 }
  0xb7   :  { %v342_v8 = vpop.f32.mrf.mxu3 }
  0xb9   :  { %3168 = vmatmul.msk.f32.vlgmr.msrb.gmra.mxu2 %vm285_vm7, %v3766_v12 }
  0xbc   :  { %v164_v33 = vpop.f32.mrf.mxu0 }
  0xbf   :  { %v345_v2 = vpop.f32.mrf.mxu3 }
  0xc1   :  { %3169 = vmatmul.msk.f32.gmra.mxu2 %vm285_vm7, %v3794_v16 }
  0xc4   :  { %v167_v48 = vpop.f32.mrf.mxu0 }
  0xc9   :  { %3170 = vmatmul.msk.f32.gmra.mxu2 %vm285_vm7, %v3822_v20 }
  0xcc   :  { %v330_v0 = vpop.f32.mrf.mxu0 }
  0xd1   :  { %3171 = vmatmul.msk.f32.gmra.mxu2 %vm285_vm7, %v3848_v24 }
  0xd9   :  { %3172 = vmatmul.msk.f32.gmra.mxu2 %vm285_vm7, %v3857_v25  ;;  %v348_v25 = vpop.f32.mrf.mxu3 }
  0xe1   :  { %3173 = vmatmul.msk.f32.gmra.mxu2 %vm285_vm7, %v3867_v27  ;;  %v351_v60 = vpop.f32.mrf.mxu3 }
  0xe9   :  { %3174 = vmatmul.msk.f32.gmra.mxu2 %vm285_vm7, %v3874_v28 }
 0x134   :  { %v236_v41 = vpop.f32.mrf.mxu2 }
 0x135   :  { %v237_v43 = vadd.f32 %v236_v41, %v3878_v34  ;;  %v3890_v41 = vpop.f32.mrf.mxu1 }
 0x137   :  { %v240_v44 = vrot.slane %v237_v43, 1  ;;  %v243_v46 = vrot.slane %v237_v43, 2 }
 0x139   :  { %v242_v45 = vmax.f32 %v237_v43, %v240_v44 }
 0x13b   :  { %v245_v49 = vmax.f32 %v242_v45, %v243_v46  ;;  %v333_v46 = vpop.f32.mrf.mxu0 }
 0x13c   :  { %v3883_v51 = vpop.f32.mrf.mxu2 }
 0x13d   :  { %v246_v53 = vperm.slane %v245_v49, 0 }
 0x13f   :  { %v247_v58 = vsub.f32 %v237_v43, %v246_v53 }
 0x141   :  { %v248_v63 = vmul.f32 1.442695, %v247_v58 }
 0x143   :  { %3401 = vpow2.f32 %v248_v63  ;;  %v3894_v63 = vpop.f32.mrf.mxu1  ;;  %v436_v28 = vpop.f32.mrf.mxu0 }
 0x144   :  { %v3887_v5 = vpop.f32.mrf.mxu2 }
 0x149   :  { %v3402_v22 = vpop.eup %3401 }
 0x14a   :  { %v251_v26 = vsel %vm250_vm8, %v3402_v22, 0.0 }
 0x14b   :  { %v252_v44 = vrot.slane %v251_v26, 4  ;;  %v3898_v16 = vpop.f32.mrf.mxu1 }
 0x14c   :  { %v3892_v49 = vpop.f32.mrf.mxu2 }
 0x14d   :  { %v253_v45 = vadd.f32 %v252_v44, %v251_v26  ;;  %v439_v44 = vpop.f32.mrf.mxu0 }
 0x14f   :  { %v254_v43 = vrot.slane %v253_v45, 2 }
 0x151   :  { %v255_v53 = vadd.f32 %v254_v43, %v253_v45 }
 0x153   :  { %v256_v58 = vrot.slane %v255_v53, 1  ;;  %v3900_v15 = vpop.f32.mrf.mxu1 }
 0x154   :  { %v3896_v27 = vpop.f32.mrf.mxu2 }
 0x155   :  { %v257_v34 = vadd.f32 %v256_v58, %v255_v53 }
 0x157   :  { %3403 = vrcp.f32 %v257_v34 }
 0x15c   :  { %v454_v14 = vpop.f32.mrf.mxu2 }
 0x15d   :  { %v3404_v24 = vpop.eup %3403 }
 0x15e   :  { %v259_v20 = vmul.f32 %v3404_v24, %v257_v34 }
 0x160   :  { %v260_v26 = vsub.f32 2.0, %v259_v20 }
 0x162   :  { %v261_v12 = vmul.f32 %v3404_v24, %v260_v26 }
 0x164   :  { %v262_v10 = vmul.f32 %v3402_v22, %v261_v12  ;;  %v536_v22 = vpop.f32.mrf.mxu0  ;;  %v457_v59 = vpop.f32.mrf.mxu2 }
 0x166   :  { %v373_v45 = vrot.slane %v262_v10, 2  ;;  %v263_v43 = vperm.slane %v262_v10, 0  ;;  %v266_v7 = vperm.slane %v262_v10, 1  ;;  %v271_v52 = vperm.slane %v262_v10, 2 }
 0x167   :  { %v357_v53 = vmul.f32 %v262_v10, %v262_v10  ;;  %v363_v58 = vrot.slane %v262_v10, 1 }
 0x168   :  { %v375_v21 = vmul.f32 %v373_v45, %v262_v10  ;;  %v264_v17 = vmul.f32 %v263_v43, %v152_v29  ;;  %v265_v19 = vmul.f32 %v263_v43, %v155_v30  ;;  %v267_v13 = vmul.f32 %v266_v7, %v158_v31 }
 0x169   :  { %v268_v34 = vmul.f32 %v266_v7, %v161_v32  ;;  %v272_v20 = vmul.f32 %v271_v52, %v164_v33  ;;  %v358_v11 = vperm.slane %v357_v53, 0  ;;  %v365_v24 = vmul.f32 %v363_v58, %v262_v10  ;;  %v557_v58 = vpop.f32.mrf.mxu1 }
 0x16a   :  { %v269_v9 = vadd.f32 %v267_v13, %v264_v17  ;;  %v273_v12 = vmul.f32 %v271_v52, %v167_v48  ;;  %v376_v3 = vperm.slane %v375_v21, 0 }
 0x16b   :  { %v270_v26 = vadd.f32 %v268_v34, %v265_v19  ;;  %v366_v55 = vperm.slane %v365_v24, 0  ;;  %v359_v29 = vmul.f32 %v358_v11, %v330_v0  ;;  %v361_v7 = vmul.f32 %v358_v11, %v3880_v42 }
 0x16c   :  { %v3902_v6 = vadd.f32 %v272_v20, %v269_v9  ;;  %v360_v13 = vmul.f32 %v358_v11, %v333_v46  ;;  %v469_v19 = vperm.slane %v357_v53, 1  ;;  %v377_v21 = vmul.f32 %v376_v3, %v348_v25  ;;  %v354_v9 = vpop.f32.mrf.mxu3  ;;  %v539_v46 = vpop.f32.mrf.mxu0 }
 0x16d   :  { %v3904_v1 = vadd.f32 %v273_v12, %v270_v26  ;;  %v367_v30 = vmul.f32 %v366_v55, %v339_v56  ;;  %v368_v10 = vmul.f32 %v366_v55, %v342_v8  ;;  %v369_v17 = vmul.f32 %v366_v55, %v345_v2 }
 0x16e   :  { %600 = vst [vmem:[#allocation4 + $0x28] sm:$0xff] %v3902_v6  ;;  %v378_v33 = vmul.f32 %v376_v3, %v351_v60  ;;  %v476_v48 = vperm.slane %v365_v24, 1  ;;  %v463_v45 = vmul.f32 %v436_v28, %v366_v55  ;;  %v464_v0 = vmul.f32 %v439_v44, %v366_v55  ;;  %v460_v60 = vpop.f32.mrf.mxu2  ;;  %v3912_v24 = vpop.permute.xlu2 %589 }
 0x16f   :  { %601 = vst [vmem:[#allocation4 + $0x30] sm:$0xff] %v3904_v1  ;;  %v370_v52 = vadd.f32 %v367_v30, %v359_v29  ;;  %v371_v31 = vadd.f32 %v368_v10, %v360_v13  ;;  %v372_v32 = vadd.f32 %v369_v17, %v361_v7  ;;  %v379_v34 = vmul.f32 %v376_v3, %v354_v9 }
 0x170   :  { %v470_v20 = vmul.f32 %v469_v19, %v3887_v5  ;;  %v465_v11 = vmul.f32 %v3883_v51, %v366_v55  ;;  %v471_v2 = vmul.f32 %v469_v19, %v3892_v49  ;;  %v477_v12 = vmul.f32 %v476_v48, %v454_v14 }
 0x171   :  { %v380_v43 = vadd.f32 %v377_v21, %v370_v52  ;;  %v381_v56 = vadd.f32 %v378_v33, %v371_v31  ;;  %v382_v25 = vadd.f32 %v379_v34, %v372_v32  ;;  %v472_v28 = vmul.f32 %v469_v19, %v3896_v27  ;;  %v560_v19 = vpop.f32.mrf.mxu1  ;;  %v3186_v34 = vld [vmem:[%s5135_s0 + $0x28] sm:$0xff] }
 0x172   :  { %v478_v29 = vmul.f32 %v476_v48, %v457_v59  ;;  %v575_v7 = vperm.slane %v357_v53, 2  ;;  %v563_v13 = vmul.f32 %v536_v22, %v376_v3  ;;  %v564_v55 = vmul.f32 %v539_v46, %v376_v3 }
 0x173   :  { %v466_v42 = vadd.f32 %v463_v45, %v380_v43  ;;  %v467_v8 = vadd.f32 %v464_v0, %v381_v56  ;;  %v468_v30 = vadd.f32 %v465_v11, %v382_v25  ;;  %v479_v49 = vmul.f32 %v476_v48, %v460_v60  ;;  %v3920_v43 = vpop.permute.xlu1 %584 }
 0x174   :  { %v569_v17 = vmul.f32 %v3890_v41, %v476_v48  ;;  %v565_v14 = vmul.f32 %v3885_v62, %v376_v3  ;;  %v570_v21 = vmul.f32 %v3894_v63, %v476_v48  ;;  %v576_v27 = vmul.f32 %v575_v7, %v3900_v15  ;;  %v3185_v3 = vld [vmem:[%s5135_s0 + $0x20] sm:$0xff] }
 0x175   :  { %v473_v26 = vadd.f32 %v470_v20, %v466_v42  ;;  %v474_v44 = vadd.f32 %v471_v2, %v467_v8  ;;  %v475_v51 = vadd.f32 %v472_v28, %v468_v30  ;;  %v571_v53 = vmul.f32 %v3898_v16, %v476_v48  ;;  %v3184_v28 = vld [vmem:[%s5135_s0 + $0x18] sm:$0xff] }
 0x176   :  { %v577_v22 = vmul.f32 %v575_v7, %v557_v58  ;;  %v578_v62 = vmul.f32 %v575_v7, %v560_v19  ;;  %v3926_v15 = vpop.permute.xlu2 %594  ;;  %vm609_vm9 = vcmp.gt.f32.partialorder %v3186_v34, 0.5  ;;  %v5270_v2 = vmov 0   ;;  %v5293_v34 = vld [vmem:[#allocation27_spill] sm:$0xff] }
 0x177   :  { %v480_v5 = vadd.f32 %v477_v12, %v473_v26  ;;  %v481_v10 = vadd.f32 %v478_v29, %v474_v44  ;;  %v482_v31 = vadd.f32 %v479_v49, %v475_v51  ;;  %v638_v8 = vsel %vm609_vm9, 1, %v5270_v2 }
 0x178   :  { %v639_v12 = vperm.slane %v638_v8, 0 }
 0x179   :  { %v566_v52 = vadd.f32 %v563_v13, %v480_v5  ;;  %v567_v9 = vadd.f32 %v564_v55, %v481_v10  ;;  %v568_v33 = vadd.f32 %v565_v14, %v482_v31  ;;  %v628_v13 = vsub.f32 %v3184_v28, %v3902_v6 }
 0x17a   :  { %vm3937_vm14 = vcmp.eq.s32.totalorder %v639_v12, 1 }
 0x17b   :  { %v572_v59 = vadd.f32 %v569_v17, %v566_v52  ;;  %v573_v32 = vadd.f32 %v570_v21, %v567_v9  ;;  %v574_v63 = vadd.f32 %v571_v53, %v568_v33 }
 0x17d   :  { %v579_v45 = vadd.f32 %v576_v27, %v572_v59  ;;  %v580_v41 = vadd.f32 %v577_v22, %v573_v32  ;;  %v581_v56 = vadd.f32 %v578_v62, %v574_v63  ;;  %v5287_v63 = vld [vmem:[#allocation14_spill] sm:$0xff] }
 0x17f   :  { %v597_v0 = vadd.f32 %v3920_v43, %v579_v45  ;;  %v598_v16 = vadd.f32 %v3912_v24, %v580_v41  ;;  %v599_v58 = vadd.f32 %v3926_v15, %v581_v56  ;;  %v5286_v45 = vld [vmem:[#allocation7_spill] sm:$0xff]  ;;  %v5289_v56 = vld [vmem:[#allocation20_spill] sm:$0xff] }
 0x181   :  { %602 = vst [vmem:[#allocation4 + $0x38] sm:$0xff] %v597_v0  ;;  %v610_v48 = vadd.f32 %v3185_v3, %v597_v0 }
 0x182   :  { %603 = vst [vmem:[#allocation4 + $0x40] sm:$0xff] %v598_v16 }
 0x183   :  { %3405 = vrcp.f32 %v610_v48  ;;  %604 = vst [vmem:[#allocation4 + $0x48] sm:$0xff] %v599_v58  ;;  %v622_v25 = vand.u32 2147483648, %v610_v48  ;;  %v620_v26 = vand.u32 2147483647, %v610_v48  ;;  %vm616_vm11 = vweird.f32 %v610_v48 }
 0x185   :  { %v623_v44 = vor.u32 1.1754944e-38, %v622_v25  ;;  %vm621_vm13 = vcmp.eq.f32.partialorder %v620_v26, 8.507059e+37 }
 0x189   :  { %v3406_v20 = vpop.eup %3405 }
 0x18a   :  { %v612_v42 = vmul.f32 %v3406_v20, %v610_v48  ;;  %vm617_vm10 = vweird.f32 %v3406_v20  ;;  %v5291_v48 = vld [vmem:[#allocation22_spill] sm:$0xff] }
 0x18b   :  { %vm618_vm12 = vmor %vm616_vm11, %vm617_vm10 }
 0x18c   :  { %v613_v11 = vsub.f32 1.0, %v612_v42  ;;  %v5295_v42 = vld [vmem:[#allocation29_spill] sm:$0xff] }
 0x18e   :  { %v614_v46 = vmul.f32 %v3406_v20, %v613_v11  ;;  %v5296_v11 = vld [vmem:[#allocation30_spill] sm:$0xff] }
 0x190   :  { %v615_v60 = vadd.f32 %v3406_v20, %v614_v46 }
 0x192   :  { %v619_v29 = vsel %vm618_vm12, %v3406_v20, %v615_v60  ;;  %v5294_v20 = vld [vmem:[#allocation28_spill] sm:$0xff]  ;;  %v5297_v60 = vld [vmem:[#allocation31_spill] sm:$0xff] }
 0x193   :  { %v624_v30 = vsel %vm621_vm13, %v623_v44, %v619_v29 }
 0x194   :  { %v627_v5 = vmul.f32 %v624_v30, %v598_v16  ;;  %v626_v10 = vmul.f32 %v624_v30, %v597_v0 }
 0x196   :  { %v630_v55 = vmul.f32 %v628_v13, %v627_v5  ;;  %v647_v51 = vsel %vm3937_vm14, %v627_v5, 0.0  ;;  %v636_v49 = vmul.f32 %v627_v5, %v598_v16  ;;  %v629_v17 = vmul.f32 %v628_v13, %v626_v10 }
 0x197   :  { %655 = vst [vmem:[#allocation4 + $0xb8] sm:$0xff] %v647_v51  ;;  %v646_v52 = vsel %vm3937_vm14, %v626_v10, 0.0  ;;  %v633_v14 = vsub.f32 1.0, %v626_v10 }
 0x198   :  { %v632_v21 = vadd.f32 %v630_v55, %v3904_v1  ;;  %v637_v9 = vsub.f32 %v599_v58, %v636_v49  ;;  %v631_v31 = vadd.f32 %v629_v17, %v3902_v6  ;;  %654 = vst [vmem:[#allocation4 + $0xb0] sm:$0xff] %v646_v52 }
 0x199   :  { %v635_v27 = vmul.f32 %v633_v14, %v598_v16  ;;  %v634_v59 = vmul.f32 %v633_v14, %v597_v0 }
 0x19a   :  { %v642_v19 = vsel %vm3937_vm14, %v632_v21, %v3904_v1  ;;  %v645_v53 = vsel %vm3937_vm14, %v637_v9, %v599_v58  ;;  %v641_v22 = vsel %vm3937_vm14, %v631_v31, %v3902_v6  ;;  %v5284_v1 = vld [vmem:[#allocation26_spill] sm:$0xff]  ;;  %v5292_v58 = vld [vmem:[#allocation25_spill] sm:$0xff] }
 0x19b   :  { %650 = vst [vmem:[#allocation4 + $0x68] sm:$0xff] %v642_v19  ;;  %694 = vmatpush.msra.mxu0 %v642_v19  ;;  %729 = vmatpush.msrb.mxu3 %v642_v19  ;;  %v644_v32 = vsel %vm3937_vm14, %v635_v27, %v598_v16  ;;  %v643_v33 = vsel %vm3937_vm14, %v634_v59, %v597_v0  ;;  %v5288_v0 = vld [vmem:[#allocation16_spill] sm:$0xff]  ;;  %v5290_v16 = vld [vmem:[#allocation18_spill] sm:$0xff] }
 0x19c   :  { %653 = vst [vmem:[#allocation4 + $0x80] sm:$0xff] %v645_v53  ;;  %845 = vmatpush.msra.mxu1 %v645_v53 }
 0x19d   :  { %649 = vst [vmem:[#allocation4 + $0x60] sm:$0xff] %v641_v22  ;;  %695 = vmatpush.msra.mxu0 %v641_v22  ;;  %730 = vmatpush.msrb.mxu3 %v641_v22 }
 0x19e   :  { %652 = vst [vmem:[#allocation4 + $0x78] sm:$0xff] %v644_v32  ;;  %846 = vmatpush.msra.mxu1 %v644_v32  ;;  %3193 = vmatmul.msk.f32.vlgmr.msrb.gmra.mxu3 %vm116_vm6, %v3591_v35  ;;  %v5273_v35 = vld [vmem:[#allocation11_spill] sm:$0xff] }
 0x19f   :  { %1051 = vmatpush.msra.mxu3 %v645_v53  ;;  %651 = vst [vmem:[#allocation4 + $0x70] sm:$0xff] %v643_v33  ;;  %3187 = vmatmul.msk.f32.vlgmr.msra.gmra.mxu0 %vm116_vm6, %v3605_v37  ;;  %v5275_v37 = vld [vmem:[#allocation8_spill] sm:$0xff] }
 0x1a0   :  { %847 = vmatpush.msra.mxu1 %v643_v33 }
 0x1a1   :  { %1052 = vmatpush.msra.mxu3 %v644_v32  ;;  %3196 = vmatmul.msk.f32.vlgmr.msra.gmra.mxu1 %vm285_vm7, %v3703_v61  ;;  %v5283_v61 = vld [vmem:[#allocation23_spill] sm:$0xff] }
 0x1a3   :  { %1053 = vmatpush.msra.mxu3 %v643_v33 }
 0x1a6   :  { %3194 = vmatmul.msk.f32.gmra.mxu3 %vm116_vm6, %v3598_v36  ;;  %v5274_v36 = vld [vmem:[#allocation9_spill] sm:$0xff] }
 0x1a7   :  { %3188 = vmatmul.msk.f32.gmra.mxu0 %vm116_vm6, %v3612_v38  ;;  %v5276_v38 = vld [vmem:[#allocation13_spill] sm:$0xff] }
 0x1a9   :  { %3197 = vmatmul.msk.f32.gmra.mxu1 %vm285_vm7, %v3727_v4 }
 0x1ae   :  { %3214 = vmatmul.msk.f32.vlgmr.msra.gmra.mxu3 %vm285_vm7, %v3812_v18  ;;  %v5285_v18 = vld [vmem:[#allocation10_spill] sm:$0xff] }
 0x1af   :  { %3189 = vmatmul.msk.f32.gmra.mxu0 %vm116_vm6, %v3619_v39  ;;  %v5277_v39 = vld [vmem:[#allocation12_spill] sm:$0xff] }
 0x1b1   :  { %3198 = vmatmul.msk.f32.gmra.mxu1 %vm285_vm7, %v3652_v50  ;;  %v5279_v50 = vld [vmem:[#allocation15_spill] sm:$0xff] }
 0x1b6   :  { %3215 = vmatmul.msk.f32.gmra.mxu3 %vm285_vm7, %v3843_v23 }
 0x1b7   :  { %3190 = vmatmul.msk.f32.gmra.mxu0 %vm116_vm6, %v3626_v40  ;;  %v5278_v40 = vld [vmem:[#allocation17_spill] sm:$0xff] }
 0x1b9   :  { %3199 = vmatmul.msk.f32.gmra.mxu1 %vm285_vm7, %v3682_v57  ;;  %v5282_v57 = vld [vmem:[#allocation24_spill] sm:$0xff] }
 0x1be   :  { %3216 = vmatmul.msk.f32.gmra.mxu3 %vm285_vm7, %v3669_v54  ;;  %v5281_v54 = vld [vmem:[#allocation19_spill] sm:$0xff] }
 0x1bf   :  { %3191 = vmatmul.msk.f32.gmra.mxu0 %vm116_vm6, %v3642_v47  ;;  %v5280_v47 = vld [vmem:[#allocation21_spill] sm:$0xff] }
 0x1c1   :  { %3200 = vmatmul.msk.f32.gmra.mxu1 %vm285_vm7, %v5273_v35 }
 0x1c6   :  { %3217 = vmatmul.msk.f32.gmra.mxu3 %vm285_vm7, %v5274_v36 }
 0x1c7   :  { %3192 = vmatmul.msk.f32.gmra.mxu0 %vm116_vm6, %v5275_v37 }
 0x1c9   :  { %3201 = vmatmul.msk.f32.gmra.mxu1 %vm285_vm7, %v5276_v38 }
 0x1ce   :  { %3218 = vmatmul.msk.f32.gmra.mxu3 %vm285_vm7, %v5277_v39 }
 0x1d1   :  { %3202 = vmatmul.msk.f32.gmra.mxu1 %vm285_vm7, %v5278_v40 }
 0x1d6   :  { %3219 = vmatmul.msk.f32.gmra.mxu3 %vm285_vm7, %v5279_v50 }
 0x1d9   :  { %3203 = vmatmul.msk.f32.gmra.mxu1 %vm285_vm7, %v5280_v47 }
 0x1de   :  { %3220 = vmatmul.msk.f32.gmra.mxu3 %vm285_vm7, %v5281_v54 }
 0x1e1   :  { %3204 = vmatmul.msk.f32.gmra.mxu1 %vm285_vm7, %v5282_v57 }
 0x1e6   :  { %3221 = vmatmul.msk.f32.gmra.mxu3 %vm285_vm7, %v5283_v61 }
 0x1ee   :  { %3222 = vmatmul.msk.f32.gmra.mxu3 %vm285_vm7, %v5284_v1 }
 0x21c   :  { %v697_v10 = vpop.f32.mrf.mxu0 }
 0x21e   :  { %v4034_v8 = vpop.f32.mrf.mxu1 }
 0x221   :  { %v732_v4 = vpop.f32.mrf.mxu3 }
 0x222   :  { %v733_v23 = vadd.f32 %v732_v4, %v5285_v18 }
 0x224   :  { %v700_v21 = vpop.f32.mrf.mxu0 }
 0x226   :  { %v4036_v25 = vpop.f32.mrf.mxu1 }
 0x229   :  { %v735_v6 = vpop.f32.mrf.mxu3 }
 0x22a   :  { %v736_v3 = vadd.f32 %v735_v6, %v5286_v45 }
 0x22c   :  { %3407 = vtanh.f32 %v736_v3 }
 0x22d   :  { %3409 = vtanh.f32 %v733_v23 }
 0x22e   :  { %v4040_v12 = vpop.f32.mrf.mxu1 }
 0x231   :  { %v4038_v46 = vpop.f32.mrf.mxu3 }
 0x232   :  { %v3408_v62 = vpop.eup %3407 }
 0x233   :  { %754 = vmatpush.msra.mxu2 %v3408_v62  ;;  %v3410_v41 = vpop.eup %3409 }
 0x235   :  { %755 = vmatpush.msra.mxu2 %v3410_v41 }
 0x236   :  { %3195 = vmatmul.msk.f32.vlgmr.msra.gmra.mxu2 %vm116_vm6, %v5287_v63  ;;  %v858_v51 = vpop.f32.mrf.mxu1 }
 0x237   :  { %951 = vmatpush.msrb.mxu2 %v645_v53 }
 0x239   :  { %952 = vmatpush.msrb.mxu2 %v644_v32  ;;  %v4043_v7 = vpop.f32.mrf.mxu3 }
 0x23b   :  { %953 = vmatpush.msrb.mxu2 %v643_v33  ;;  %v703_v33 = vpop.f32.mrf.mxu0 }
 0x23e   :  { %3205 = vmatmul.msk.f32.vlgmr.msrb.gmra.mxu2 %vm285_vm7, %v5288_v0  ;;  %v861_v9 = vpop.f32.mrf.mxu1 }
 0x241   :  { %v4047_v52 = vpop.f32.mrf.mxu3 }
 0x243   :  { %v706_v50 = vpop.f32.mrf.mxu0 }
 0x246   :  { %3206 = vmatmul.msk.f32.gmra.mxu2 %vm285_vm7, %v5289_v56  ;;  %v864_v36 = vpop.f32.mrf.mxu1 }
 0x249   :  { %v4054_v22 = vpop.f32.mrf.mxu3 }
 0x24b   :  { %v709_v3 = vpop.f32.mrf.mxu0 }
 0x24e   :  { %3207 = vmatmul.msk.f32.gmra.mxu2 %vm285_vm7, %v5290_v16  ;;  %v867_v47 = vpop.f32.mrf.mxu1 }
 0x251   :  { %v4056_v40 = vpop.f32.mrf.mxu3 }
 0x256   :  { %3208 = vmatmul.msk.f32.gmra.mxu2 %vm285_vm7, %v5291_v48  ;;  %v870_v16 = vpop.f32.mrf.mxu1 }
 0x259   :  { %v4058_v6 = vpop.f32.mrf.mxu3 }
 0x25e   :  { %3209 = vmatmul.msk.f32.gmra.mxu2 %vm285_vm7, %v5292_v58 }
 0x266   :  { %3210 = vmatmul.msk.f32.gmra.mxu2 %vm285_vm7, %v5293_v34 }
 0x26e   :  { %3211 = vmatmul.msk.f32.gmra.mxu2 %vm285_vm7, %v5294_v20 }
 0x276   :  { %3212 = vmatmul.msk.f32.gmra.mxu2 %vm285_vm7, %v5295_v42 }
 0x27e   :  { %3213 = vmatmul.msk.f32.gmra.mxu2 %vm285_vm7, %v5296_v11 }
 0x2b9   :  { %v757_v26 = vpop.f32.mrf.mxu2 }
 0x2ba   :  { %v758_v28 = vadd.f32 %v757_v26, %v5297_v60 }
 0x2bc   :  { %v761_v44 = vrot.slane %v758_v28, 1  ;;  %v764_v30 = vrot.slane %v758_v28, 2 }
 0x2be   :  { %v763_v29 = vmax.f32 %v758_v28, %v761_v44 }
 0x2c0   :  { %v766_v5 = vmax.f32 %v763_v29, %v764_v30 }
 0x2c1   :  { %v4045_v13 = vpop.f32.mrf.mxu2 }
 0x2c2   :  { %v767_v55 = vperm.slane %v766_v5, 0 }
 0x2c4   :  { %v768_v49 = vsub.f32 %v758_v28, %v767_v55  ;;  %v1073_v55 = vpop.f32.mrf.mxu3 }
 0x2c6   :  { %v769_v17 = vmul.f32 1.442695, %v768_v49 }
 0x2c8   :  { %3411 = vpow2.f32 %v769_v17 }
 0x2c9   :  { %v4049_v14 = vpop.f32.mrf.mxu2 }
 0x2ce   :  { %v3412_v31 = vpop.eup %3411 }
 0x2cf   :  { %v771_v27 = vsel %vm250_vm8, %v3412_v31, 0.0 }
 0x2d0   :  { %v772_v59 = vrot.slane %v771_v27, 4 }
 0x2d1   :  { %v4052_v19 = vpop.f32.mrf.mxu2 }
 0x2d2   :  { %v773_v53 = vadd.f32 %v772_v59, %v771_v27 }
 0x2d4   :  { %v774_v32 = vrot.slane %v773_v53, 2 }
 0x2d6   :  { %v775_v35 = vadd.f32 %v774_v32, %v773_v53 }
 0x2d8   :  { %v776_v37 = vrot.slane %v775_v35, 1 }
 0x2d9   :  { %v964_v38 = vpop.f32.mrf.mxu2 }
 0x2da   :  { %v777_v39 = vadd.f32 %v776_v37, %v775_v35  ;;  %v712_v37 = vpop.f32.mrf.mxu0 }
 0x2dc   :  { %3413 = vrcp.f32 %v777_v39 }
 0x2e1   :  { %v967_v54 = vpop.f32.mrf.mxu2 }
 0x2e2   :  { %v3414_v57 = vpop.eup %3413 }
 0x2e3   :  { %v779_v61 = vmul.f32 %v3414_v57, %v777_v39 }
 0x2e5   :  { %v780_v1 = vsub.f32 2.0, %v779_v61 }
 0x2e7   :  { %v781_v4 = vmul.f32 %v3414_v57, %v780_v1  ;;  %v873_v57 = vpop.f32.mrf.mxu1 }
 0x2e9   :  { %v782_v23 = vmul.f32 %v3412_v31, %v781_v4  ;;  %v4060_v62 = vpop.f32.mrf.mxu2 }
 0x2eb   :  { %v892_v41 = vrot.slane %v782_v23, 2  ;;  %v876_v63 = vmul.f32 %v782_v23, %v782_v23  ;;  %v882_v0 = vrot.slane %v782_v23, 1  ;;  %v783_v56 = vperm.slane %v782_v23, 0 }
 0x2ec   :  { %v786_v48 = vperm.slane %v782_v23, 1  ;;  %v791_v49 = vperm.slane %v782_v23, 2 }
 0x2ed   :  { %v894_v58 = vmul.f32 %v892_v41, %v782_v23  ;;  %v877_v34 = vperm.slane %v876_v63, 0  ;;  %v884_v20 = vmul.f32 %v882_v0, %v782_v23  ;;  %v784_v11 = vmul.f32 %v783_v56, %v697_v10 }
 0x2ee   :  { %v787_v26 = vmul.f32 %v786_v48, %v703_v33  ;;  %v785_v44 = vmul.f32 %v783_v56, %v700_v21  ;;  %v788_v29 = vmul.f32 %v786_v48, %v706_v50  ;;  %v988_v35 = vperm.slane %v876_v63, 1 }
 0x2ef   :  { %v885_v42 = vperm.slane %v884_v20, 0  ;;  %v4062_v28 = vperm.slane %v894_v58, 0  ;;  %v878_v30 = vmul.f32 %v877_v34, %v4034_v8  ;;  %v879_v31 = vmul.f32 %v877_v34, %v4036_v25 }
 0x2f0   :  { %v789_v53 = vadd.f32 %v787_v26, %v784_v11  ;;  %v880_v10 = vmul.f32 %v877_v34, %v4040_v12  ;;  %v790_v39 = vadd.f32 %v788_v29, %v785_v44  ;;  %v995_v50 = vperm.slane %v884_v20, 1  ;;  %v1076_v34 = vpop.f32.mrf.mxu3 }
 0x2f1   :  { %v886_v5 = vmul.f32 %v885_v42, %v858_v51  ;;  %v973_v17 = vpop.f32.mrf.mxu2  ;;  %v887_v27 = vmul.f32 %v885_v42, %v861_v9  ;;  %v888_v32 = vmul.f32 %v885_v42, %v864_v36  ;;  %v896_v21 = vmul.f32 %v4062_v28, %v867_v47 }
 0x2f2   :  { %v792_v8 = vmul.f32 %v791_v49, %v709_v3  ;;  %v897_v51 = vmul.f32 %v4062_v28, %v870_v16  ;;  %v982_v61 = vmul.f32 %v4045_v13, %v885_v42  ;;  %v793_v1 = vmul.f32 %v791_v49, %v712_v37 }
 0x2f3   :  { %v889_v59 = vadd.f32 %v886_v5, %v878_v30  ;;  %v890_v33 = vadd.f32 %v887_v27, %v879_v31  ;;  %v891_v25 = vadd.f32 %v888_v32, %v880_v10  ;;  %v983_v36 = vmul.f32 %v4049_v14, %v885_v42 }
 0x2f4   :  { %v4071_v4 = vadd.f32 %v792_v8, %v789_v53  ;;  %v989_v12 = vmul.f32 %v988_v35, %v964_v38  ;;  %v4073_v0 = vadd.f32 %v793_v1, %v790_v39  ;;  %v898_v47 = vmul.f32 %v4062_v28, %v873_v57 }
 0x2f5   :  { %v899_v9 = vadd.f32 %v896_v21, %v889_v59  ;;  %v900_v23 = vadd.f32 %v897_v51, %v890_v33  ;;  %v990_v3 = vmul.f32 %v988_v35, %v967_v54  ;;  %v996_v58 = vmul.f32 %v995_v50, %v973_v17 }
 0x2f6   :  { %1104 = vst [vmem:[#allocation4 + $0x88] sm:$0xff] %v4071_v4  ;;  %v901_v13 = vadd.f32 %v898_v47, %v891_v25  ;;  %v984_v38 = vmul.f32 %v4052_v19, %v885_v42  ;;  %v1094_v11 = vperm.slane %v876_v63, 2  ;;  %v1082_v44 = vmul.f32 %v4038_v46, %v4062_v28 }
 0x2f7   :  { %v985_v41 = vadd.f32 %v982_v61, %v899_v9  ;;  %v986_v56 = vadd.f32 %v983_v36, %v900_v23  ;;  %1105 = vst [vmem:[#allocation4 + $0x90] sm:$0xff] %v4073_v0  ;;  %v1083_v29 = vmul.f32 %v4043_v7, %v4062_v28  ;;  %v1088_v30 = vmul.f32 %v4054_v22, %v995_v50  ;;  %v3224_v7 = vld [vmem:[%s5135_s0 + $0x38] sm:$0xff] }
 0x2f8   :  { %v987_v5 = vadd.f32 %v984_v38, %v901_v13  ;;  %v1089_v17 = vmul.f32 %v4056_v40, %v995_v50  ;;  %v1095_v27 = vmul.f32 %v1094_v11, %v1073_v55  ;;  %v991_v59 = vmul.f32 %v988_v35, %v4060_v62  ;;  %v1079_v62 = vpop.f32.mrf.mxu3 }
 0x2f9   :  { %v976_v16 = vpop.f32.mrf.mxu2  ;;  %v992_v48 = vadd.f32 %v989_v12, %v985_v41  ;;  %v993_v20 = vadd.f32 %v990_v3, %v986_v56  ;;  %v1096_v63 = vmul.f32 %v1094_v11, %v1076_v34  ;;  %v1084_v10 = vmul.f32 %v4047_v52, %v4062_v28  ;;  %v3225_v52 = vld [vmem:[%s5135_s0 + $0x40] sm:$0xff]  ;;  %v3223_v41 = vld [vmem:[%s5135_s0 + $0x30] sm:$0xff] }
 0x2fa   :  { %v997_v14 = vmul.f32 %v995_v50, %v976_v16  ;;  %v994_v46 = vadd.f32 %v991_v59, %v987_v5  ;;  %v1090_v33 = vmul.f32 %v4058_v6, %v995_v50  ;;  %v1097_v8 = vmul.f32 %v1094_v11, %v1079_v62  ;;  %v4213_v62 = vld [vmem:[%s5142_s7] sm:$0xff] }
 0x2fb   :  { %v999_v26 = vadd.f32 %v996_v58, %v992_v48  ;;  %vm1113_vm15 = vcmp.gt.f32.partialorder %v3225_v52, 0.5  ;;  %v1132_v13 = vsub.f32 %v3223_v41, %v4071_v4  ;;  %v4259_v52 = vld [vmem:[%s5142_s7 + $0x10] sm:$0xff]  ;;  %v4308_v41 = vld [vmem:[%s5142_s7 + $0xb8] sm:$0xff] }
 0x2fc   :  { %v1000_v54 = vadd.f32 %v997_v14, %v993_v20  ;;  %v1142_v25 = vsel %vm1113_vm15, 1, %v5270_v2  ;;  %5311 = vst [vmem:[#allocation26_spill] sm:$0xff] %v4259_v52 }
 0x2fd   :  { %v1085_v49 = vadd.f32 %v1082_v44, %v999_v26  ;;  %v1143_v23 = vperm.slane %v1142_v25, 0  ;;  %v4285_v25 = vld [vmem:[%s5142_s7 + $0xb0] sm:$0xff]  ;;  %5318 = vst [vmem:[#allocation27_spill] sm:$0xff] %v4308_v41 }
 0x2fe   :  { %v1086_v31 = vadd.f32 %v1083_v29, %v1000_v54  ;;  %5315 = vst [vmem:[#allocation18_spill] sm:$0xff] %v4285_v25 }
 0x2ff   :  { %v1091_v19 = vadd.f32 %v1088_v30, %v1085_v49  ;;  %vm4106_vm4 = vcmp.eq.s32.totalorder %v1143_v23, 1 }
 0x300   :  { %v1092_v42 = vadd.f32 %v1089_v17, %v1086_v31 }
 0x301   :  { %v979_v53 = vpop.f32.mrf.mxu2  ;;  %v1098_v32 = vadd.f32 %v1095_v27, %v1091_v19  ;;  %v4149_v19 = vld [vmem:[%s5141_s6 + $0x10] sm:$0xff] }
 0x302   :  { %v998_v37 = vmul.f32 %v995_v50, %v979_v53  ;;  %v1099_v22 = vadd.f32 %v1096_v63, %v1092_v42  ;;  %5300 = vst [vmem:[#allocation11_spill] sm:$0xff] %v4149_v19  ;;  %v4156_v63 = vld [vmem:[%s5141_s6 + $0x18] sm:$0xff]  ;;  %v4163_v42 = vld [vmem:[%s5141_s6 + $0x20] sm:$0xff]  ;;  %v4170_v53 = vld [vmem:[%s5141_s6 + $0x28] sm:$0xff] }
 0x303   :  { %v4092_v40 = vadd.f32 %v1098_v32, %v3920_v43  ;;  %5301 = vst [vmem:[#allocation9_spill] sm:$0xff] %v4156_v63  ;;  %v4177_v32 = vld [vmem:[%s5137_s2] sm:$0xff] }
 0x304   :  { %v1001_v55 = vadd.f32 %v998_v37, %v994_v46  ;;  %v1102_v35 = vadd.f32 %v1099_v22, %v3912_v24  ;;  %5302 = vst [vmem:[#allocation8_spill] sm:$0xff] %v4163_v42  ;;  %v4184_v46 = vld [vmem:[%s5137_s2 + $0x8] sm:$0xff] }
 0x305   :  { %1106 = vst [vmem:[#allocation4 + $0x98] sm:$0xff] %v4092_v40  ;;  %v1114_v39 = vadd.f32 %v3224_v7, %v4092_v40 }
 0x306   :  { %v1087_v21 = vadd.f32 %v1084_v10, %v1001_v55  ;;  %1107 = vst [vmem:[#allocation4 + $0xa0] sm:$0xff] %v1102_v35  ;;  %v4197_v10 = vld [vmem:[%s5142_s7 + $0x90] sm:$0xff] }
 0x307   :  { %3415 = vrcp.f32 %v1114_v39  ;;  %v1126_v9 = vand.u32 2147483648, %v1114_v39  ;;  %v1124_v36 = vand.u32 2147483647, %v1114_v39  ;;  %vm1120_vm1 = vweird.f32 %v1114_v39  ;;  %5303 = vst [vmem:[#allocation13_spill] sm:$0xff] %v4170_v53 }
 0x308   :  { %v1093_v51 = vadd.f32 %v1090_v33, %v1087_v21  ;;  %5304 = vst [vmem:[#allocation12_spill] sm:$0xff] %v4177_v32  ;;  %v4223_v33 = vld [vmem:[%s5142_s7 + $0x50] sm:$0xff]  ;;  %v4236_v21 = vld [vmem:[%s5142_s7 + $0x8] sm:$0xff] }
 0x309   :  { %v1127_v47 = vor.u32 1.1754944e-38, %v1126_v9  ;;  %vm1125_vm3 = vcmp.eq.f32.partialorder %v1124_v36, 8.507059e+37  ;;  %5305 = vst [vmem:[#allocation17_spill] sm:$0xff] %v4184_v46  ;;  %v4290_v9 = vld [vmem:[%s5142_s7 + $0x68] sm:$0xff] }
 0x30a   :  { %v1100_v57 = vadd.f32 %v1097_v8, %v1093_v51  ;;  %5307 = vst [vmem:[#allocation21_spill] sm:$0xff] %v4223_v33  ;;  %v4241_v8 = vld [vmem:[%s5142_s7 + $0xa0] sm:$0xff]  ;;  %v4250_v51 = vld [vmem:[%s5142_s7 + $0x58] sm:$0xff] }
 0x30b   :  { %5308 = vst [vmem:[#allocation19_spill] sm:$0xff] %v4236_v21 }
 0x30c   :  { %v1103_v28 = vadd.f32 %v1100_v57, %v3926_v15  ;;  %5309 = vst [vmem:[#allocation24_spill] sm:$0xff] %v4241_v8 }
 0x30d   :  { %v3416_v61 = vpop.eup %3415  ;;  %5310 = vst [vmem:[#allocation23_spill] sm:$0xff] %v4250_v51 }
 0x30e   :  { %1108 = vst [vmem:[#allocation4 + $0xa8] sm:$0xff] %v1103_v28  ;;  %v1116_v6 = vmul.f32 %v3416_v61, %v1114_v39  ;;  %vm1121_vm0 = vweird.f32 %v3416_v61 }
 0x30f   :  { %vm1122_vm2 = vmor %vm1120_vm1, %vm1121_vm0  ;;  %5316 = vst [vmem:[#allocation22_spill] sm:$0xff] %v4290_v9 }
 0x310   :  { %v1117_v50 = vsub.f32 1.0, %v1116_v6 }
 0x312   :  { %v1118_v1 = vmul.f32 %v3416_v61, %v1117_v50  ;;  %v4280_v50 = vld [vmem:[%s5142_s7 + $0x18] sm:$0xff] }
 0x313   :  { %5314 = vst [vmem:[#allocation20_spill] sm:$0xff] %v4280_v50 }
 0x314   :  { %v1119_v12 = vadd.f32 %v3416_v61, %v1118_v1 }
 0x316   :  { %v1123_v3 = vsel %vm1122_vm2, %v3416_v61, %v1119_v12  ;;  %v4269_v61 = vld [vmem:[%s5142_s7 + $0x60] sm:$0xff] }
 0x317   :  { %v1128_v56 = vsel %vm1125_vm3, %v1127_v47, %v1123_v3  ;;  %5313 = vst [vmem:[#allocation16_spill] sm:$0xff] %v4269_v61  ;;  %v4303_v12 = vld [vmem:[%s5142_s7 + $0x20] sm:$0xff]  ;;  %v4313_v47 = vld [vmem:[%s5142_s7 + $0x70] sm:$0xff] }
 0x318   :  { %v1131_v48 = vmul.f32 %v1128_v56, %v1102_v35  ;;  %v1130_v58 = vmul.f32 %v1128_v56, %v4092_v40  ;;  %5317 = vst [vmem:[#allocation25_spill] sm:$0xff] %v4303_v12  ;;  %v4324_v56 = vld [vmem:[%s5142_s7 + $0x28] sm:$0xff] }
 0x319   :  { %5319 = vst [vmem:[#allocation28_spill] sm:$0xff] %v4313_v47 }
 0x31a   :  { %v1134_v14 = vmul.f32 %v1132_v13, %v1131_v48  ;;  %v1151_v34 = vsel %vm4106_vm4, %v1131_v48, 0.0  ;;  %v1140_v20 = vmul.f32 %v1131_v48, %v1102_v35  ;;  %v1133_v38 = vmul.f32 %v1132_v13, %v1130_v58  ;;  %5320 = vst [vmem:[#allocation29_spill] sm:$0xff] %v4324_v56  ;;  %v4329_v13 = vld [vmem:[%s5142_s7 + $0xc0] sm:$0xff]  ;;  %v4334_v48 = vld [vmem:[%s5142_s7 + $0x78] sm:$0xff] }
 0x31b   :  { %1159 = vst [vmem:[#allocation4 + $0x118] sm:$0xff] %v1151_v34  ;;  %v1150_v11 = vsel %vm4106_vm4, %v1130_v58, 0.0  ;;  %v1137_v26 = vsub.f32 1.0, %v1130_v58  ;;  %v4339_v58 = vld [vmem:[%s5139_s4] sm:$0x7]  ;;  %v4357_v34 = vld [vmem:[%s5142_s7 + $0xc8] sm:$0xff] }
 0x31c   :  { %v1136_v44 = vadd.f32 %v1134_v14, %v4073_v0  ;;  %v1141_v54 = vsub.f32 %v1103_v28, %v1140_v20  ;;  %v1135_v29 = vadd.f32 %v1133_v38, %v4071_v4  ;;  %1158 = vst [vmem:[#allocation4 + $0x110] sm:$0xff] %v1150_v11  ;;  %v4352_v14 = vld [vmem:[%s5142_s7 + $0x30] sm:$0xff]  ;;  %v4362_v20 = vld [vmem:[%s5142_s7 + $0x80] sm:$0xff]  ;;  %v4373_v38 = vld [vmem:[%s5142_s7 + $0x38] sm:$0xff] }
 0x31d   :  { %v1139_v30 = vmul.f32 %v1137_v26, %v1102_v35  ;;  %v1138_v5 = vmul.f32 %v1137_v26, %v4092_v40  ;;  %5321 = vst [vmem:[#allocation30_spill] sm:$0xff] %v4329_v13  ;;  %v4378_v11 = vld [vmem:[%s5142_s7 + $0xd0] sm:$0xff]  ;;  %v4383_v26 = vld [vmem:[%s5142_s7 + $0x88] sm:$0xff] }
 0x31e   :  { %v1146_v49 = vsel %vm4106_vm4, %v1136_v44, %v4073_v0  ;;  %v1149_v17 = vsel %vm4106_vm4, %v1141_v54, %v1103_v28  ;;  %v1145_v31 = vsel %vm4106_vm4, %v1135_v29, %v4071_v4  ;;  %v4132_v0 = vld [vmem:[%s5141_s6] sm:$0xff]  ;;  %v4142_v4 = vld [vmem:[%s5141_s6 + $0x8] sm:$0xff]  ;;  %5322 = vst [vmem:[#allocation32_spill] sm:$0xff] %v4334_v48 }
 0x31f   :  { %1154 = vst [vmem:[#allocation4 + $0xc8] sm:$0xff] %v1146_v49  ;;  %1198 = vmatpush.msrb.mxu0 %v1146_v49  ;;  %1349 = vmatpush.msrb.mxu1 %v1149_v17  ;;  %v1148_v27 = vsel %vm4106_vm4, %v1139_v30, %v1102_v35  ;;  %v1147_v59 = vsel %vm4106_vm4, %v1138_v5, %v4092_v40  ;;  %v4202_v40 = vld [vmem:[%s5142_s7 + $0x48] sm:$0xff]  ;;  %v4218_v35 = vld [vmem:[%s5142_s7 + $0x98] sm:$0xff]  ;;  %v4394_v44 = vld [vmem:[%s5142_s7 + $0x40] sm:$0xff] }
 0x320   :  { %1157 = vst [vmem:[#allocation4 + $0xe0] sm:$0xff] %v1149_v17  ;;  %1455 = vmatpush.msra.mxu2 %v1149_v17  ;;  %1555 = vmatpush.msrb.mxu3 %v1149_v17  ;;  %v4264_v28 = vld [vmem:[%s5142_s7 + $0xa8] sm:$0xff] }
 0x321   :  { %1153 = vst [vmem:[#allocation4 + $0xc0] sm:$0xff] %v1145_v31  ;;  %1199 = vmatpush.msrb.mxu0 %v1145_v31  ;;  %1350 = vmatpush.msrb.mxu1 %v1148_v27 }
 0x322   :  { %1156 = vst [vmem:[#allocation4 + $0xd8] sm:$0xff] %v1148_v27  ;;  %1456 = vmatpush.msra.mxu2 %v1148_v27  ;;  %1556 = vmatpush.msrb.mxu3 %v1148_v27 }
 0x323   :  { %3226 = vmatmul.msk.f32.vlgmr.msrb.gmra.mxu0 %vm116_vm6, %v4132_v0  ;;  %1155 = vst [vmem:[#allocation4 + $0xd0] sm:$0xff] %v1147_v59  ;;  %1351 = vmatpush.msrb.mxu1 %v1147_v59 }
 0x324   :  { %1233 = vmatpush.msra.mxu0 %v1146_v49  ;;  %1457 = vmatpush.msra.mxu2 %v1147_v59  ;;  %5306 = vst [vmem:[#allocation15_spill] sm:$0xff] %v4218_v35 }
 0x325   :  { %1557 = vmatpush.msrb.mxu3 %v1147_v59  ;;  %3244 = vmatmul.msk.f32.vlgmr.msra.gmra.mxu2 %vm285_vm7, %v4202_v40  ;;  %5312 = vst [vmem:[#allocation14_spill] sm:$0xff] %v4264_v28 }
 0x326   :  { %1234 = vmatpush.msra.mxu0 %v1145_v31  ;;  %3253 = vmatmul.msk.f32.vlgmr.msrb.gmra.mxu3 %vm285_vm7, %v4197_v10  ;;  %5323 = vst [vmem:[#allocation33_spill] sm:$0xff] %v4339_v58 }
 0x327   :  { %3235 = vmatmul.msk.f32.vlgmr.msrb.gmra.mxu1 %vm285_vm7, %v4213_v62  ;;  %5324 = vst [vmem:[#allocation34_spill] sm:$0xff] %v4352_v14 }
 0x328   :  { %5325 = vst [vmem:[#allocation35_spill] sm:$0xff] %v4357_v34 }
 0x329   :  { %5326 = vst [vmem:[#allocation36_spill] sm:$0xff] %v4362_v20 }
 0x32a   :  { %5327 = vst [vmem:[#allocation37_spill] sm:$0xff] %v4373_v38 }
 0x32b   :  { %3227 = vmatmul.msk.f32.gmra.mxu0 %vm116_vm6, %v4142_v4  ;;  %5328 = vst [vmem:[#allocation38_spill] sm:$0xff] %v4378_v11 }
 0x32c   :  { %5329 = vst [vmem:[#allocation39_spill] sm:$0xff] %v4383_v26 }
 0x32d   :  { %3245 = vmatmul.msk.f32.gmra.mxu2 %vm285_vm7, %v4223_v33  ;;  %5330 = vst [vmem:[#allocation40_spill] sm:$0xff] %v4394_v44 }
 0x32e   :  { %3254 = vmatmul.msk.f32.gmra.mxu3 %vm285_vm7, %v4218_v35 }
 0x32f   :  { %3236 = vmatmul.msk.f32.gmra.mxu1 %vm285_vm7, %v4236_v21 }
 0x333   :  { %3228 = vmatmul.msk.f32.gmra.mxu0 %vm116_vm6, %v4149_v19 }
 0x335   :  { %3246 = vmatmul.msk.f32.gmra.mxu2 %vm285_vm7, %v4250_v51 }
 0x336   :  { %3255 = vmatmul.msk.f32.gmra.mxu3 %vm285_vm7, %v4241_v8 }
 0x337   :  { %3237 = vmatmul.msk.f32.gmra.mxu1 %vm285_vm7, %v4259_v52 }
 0x33b   :  { %3229 = vmatmul.msk.f32.gmra.mxu0 %vm116_vm6, %v4156_v63 }
 0x33d   :  { %3247 = vmatmul.msk.f32.gmra.mxu2 %vm285_vm7, %v4269_v61 }
 0x33e   :  { %3256 = vmatmul.msk.f32.gmra.mxu3 %vm285_vm7, %v4264_v28 }
 0x33f   :  { %3238 = vmatmul.msk.f32.gmra.mxu1 %vm285_vm7, %v4280_v50 }
 0x343   :  { %3230 = vmatmul.msk.f32.gmra.mxu0 %vm116_vm6, %v4163_v42 }
 0x345   :  { %3248 = vmatmul.msk.f32.gmra.mxu2 %vm285_vm7, %v4290_v9 }
 0x346   :  { %3257 = vmatmul.msk.f32.gmra.mxu3 %vm285_vm7, %v4285_v25 }
 0x347   :  { %3239 = vmatmul.msk.f32.gmra.mxu1 %vm285_vm7, %v4303_v12 }
 0x34b   :  { %3231 = vmatmul.msk.f32.gmra.mxu0 %vm116_vm6, %v4170_v53 }
 0x34d   :  { %3249 = vmatmul.msk.f32.gmra.mxu2 %vm285_vm7, %v4313_v47 }
 0x34e   :  { %3258 = vmatmul.msk.f32.gmra.mxu3 %vm285_vm7, %v4308_v41 }
 0x34f   :  { %3240 = vmatmul.msk.f32.gmra.mxu1 %vm285_vm7, %v4324_v56 }
 0x353   :  { %3232 = vmatmul.msk.f32.vlgmr.msra.gmra.mxu0 %vm116_vm6, %v4177_v32 }
 0x355   :  { %3250 = vmatmul.msk.f32.gmra.mxu2 %vm285_vm7, %v4334_v48 }
 0x356   :  { %3259 = vmatmul.msk.f32.gmra.mxu3 %vm285_vm7, %v4329_v13 }
 0x357   :  { %3241 = vmatmul.msk.f32.gmra.mxu1 %vm285_vm7, %v4352_v14 }
 0x35b   :  { %3233 = vmatmul.msk.f32.gmra.mxu0 %vm116_vm6, %v4184_v46 }
 0x35d   :  { %3251 = vmatmul.msk.f32.gmra.mxu2 %vm285_vm7, %v4362_v20 }
 0x35e   :  { %3260 = vmatmul.msk.f32.gmra.mxu3 %vm285_vm7, %v4357_v34 }
 0x35f   :  { %3242 = vmatmul.msk.f32.gmra.mxu1 %vm285_vm7, %v4373_v38 }
 0x365   :  { %3252 = vmatmul.msk.f32.gmra.mxu2 %vm285_vm7, %v4383_v26 }
 0x366   :  { %3261 = vmatmul.msk.f32.gmra.mxu3 %vm285_vm7, %v4378_v11 }
 0x367   :  { %3243 = vmatmul.msk.f32.gmra.mxu1 %vm285_vm7, %v4394_v44 }
 0x3a0   :  { %v4188_v37 = vpop.f32.mrf.mxu0 }
 0x3a4   :  { %v1353_v54 = vpop.f32.mrf.mxu1 }
 0x3a8   :  { %v4190_v7 = vpop.f32.mrf.mxu0  ;;  %v4398_v29 = vpop.f32.mrf.mxu2 }
 0x3a9   :  { %v4400_v5 = vpop.f32.mrf.mxu3 }
 0x3ac   :  { %v1356_v30 = vpop.f32.mrf.mxu1 }
 0x3b0   :  { %v4192_v22 = vpop.f32.mrf.mxu0  ;;  %v4402_v49 = vpop.f32.mrf.mxu2 }
 0x3b1   :  { %v4404_v27 = vpop.f32.mrf.mxu3 }
 0x3b4   :  { %v1359_v17 = vpop.f32.mrf.mxu1 }
 0x3b8   :  { %v4208_v55 = vpop.f32.mrf.mxu0 }
 0x3c0   :  { %v4231_v39 = vpop.f32.mrf.mxu0 }
 0x3c8   :  { %v4254_v57 = vpop.f32.mrf.mxu0 }
 0x3d0   :  { %v1236_v6 = vpop.f32.mrf.mxu0 }
 0x3d1   :  { %v1237_v36 = vadd.f32 %v1236_v6, %v5285_v18  ;;  %v4409_v18 = vpop.f32.mrf.mxu3 }
 0x3d8   :  { %v1239_v1 = vpop.f32.mrf.mxu0 }
 0x3d9   :  { %v1240_v23 = vadd.f32 %v1239_v1, %v5286_v45  ;;  %v4411_v34 = vpop.f32.mrf.mxu3 }
 0x3db   :  { %3417 = vtanh.f32 %v1240_v23  ;;  %v4407_v23 = vpop.f32.mrf.mxu2 }
 0x3dc   :  { %3419 = vtanh.f32 %v1237_v36 }
 0x3e1   :  { %v3418_v3 = vpop.eup %3417 }
 0x3e2   :  { %1258 = vmatpush.msrb.mxu0 %v3418_v3  ;;  %v3420_v16 = vpop.eup %3419 }
 0x3e3   :  { %v1468_v11 = vpop.f32.mrf.mxu2 }
 0x3e4   :  { %1259 = vmatpush.msrb.mxu0 %v3420_v16 }
 0x3e5   :  { %3234 = vmatmul.msk.f32.vlgmr.msrb.gmra.mxu0 %vm116_vm6, %v4339_v58  ;;  %v1362_v58 = vpop.f32.mrf.mxu1 }
 0x3eb   :  { %v1471_v20 = vpop.f32.mrf.mxu2 }
 0x3ed   :  { %v1365_v26 = vpop.f32.mrf.mxu1 }
 0x462   :  { %v1261_v31 = vpop.f32.mrf.mxu0 }
 0x463   :  { %v1262_v59 = vadd.f32 %v1261_v31, %v5297_v60 }
 0x465   :  { %v1265_v6 = vrot.slane %v1262_v59, 1  ;;  %v1268_v36 = vrot.slane %v1262_v59, 2 }
 0x467   :  { %v1267_v1 = vmax.f32 %v1262_v59, %v1265_v6 }
 0x469   :  { %v1270_v3 = vmax.f32 %v1267_v1, %v1268_v36  ;;  %v1368_v1 = vpop.f32.mrf.mxu1 }
 0x46b   :  { %v1271_v16 = vperm.slane %v1270_v3, 0  ;;  %v4414_v3 = vpop.f32.mrf.mxu3 }
 0x46d   :  { %v1272_v45 = vsub.f32 %v1262_v59, %v1271_v16 }
 0x46f   :  { %v1273_v44 = vmul.f32 1.442695, %v1272_v45  ;;  %v1474_v45 = vpop.f32.mrf.mxu2 }
 0x471   :  { %3421 = vpow2.f32 %v1273_v44  ;;  %v1371_v44 = vpop.f32.mrf.mxu1 }
 0x473   :  { %v4416_v13 = vpop.f32.mrf.mxu3 }
 0x477   :  { %v3422_v38 = vpop.eup %3421  ;;  %v1477_v56 = vpop.f32.mrf.mxu2 }
 0x478   :  { %v1275_v31 = vsel %vm250_vm8, %v3422_v38, 0.0 }
 0x479   :  { %v1276_v60 = vrot.slane %v1275_v31, 4 }
 0x47b   :  { %v1277_v6 = vadd.f32 %v1276_v60, %v1275_v31  ;;  %v1374_v60 = vpop.f32.mrf.mxu1 }
 0x47d   :  { %v1278_v46 = vrot.slane %v1277_v6, 2 }
 0x47f   :  { %v1279_v14 = vadd.f32 %v1278_v46, %v1277_v6  ;;  %v4418_v6 = vpop.f32.mrf.mxu3  ;;  %v1480_v42 = vpop.f32.mrf.mxu2 }
 0x481   :  { %v1280_v36 = vrot.slane %v1279_v14, 1 }
 0x483   :  { %v1281_v59 = vadd.f32 %v1280_v36, %v1279_v14  ;;  %v1377_v21 = vpop.f32.mrf.mxu1 }
 0x485   :  { %3423 = vrcp.f32 %v1281_v59 }
 0x48b   :  { %v3424_v16 = vpop.eup %3423 }
 0x48c   :  { %v1283_v48 = vmul.f32 %v3424_v16, %v1281_v59 }
 0x48e   :  { %v1284_v32 = vsub.f32 2.0, %v1283_v48 }
 0x490   :  { %v1285_v41 = vmul.f32 %v3424_v16, %v1284_v32 }
 0x492   :  { %v1286_v47 = vmul.f32 %v3422_v38, %v1285_v41 }
 0x494   :  { %v1396_v31 = vrot.slane %v1286_v47, 2  ;;  %v1380_v53 = vmul.f32 %v1286_v47, %v1286_v47  ;;  %v1386_v46 = vrot.slane %v1286_v47, 1  ;;  %v1287_v50 = vperm.slane %v1286_v47, 0 }
 0x495   :  { %v1290_v28 = vperm.slane %v1286_v47, 1  ;;  %v1295_v48 = vperm.slane %v1286_v47, 2 }
 0x496   :  { %v1398_v12 = vmul.f32 %v1396_v31, %v1286_v47  ;;  %v1381_v25 = vperm.slane %v1380_v53, 0  ;;  %v1388_v14 = vmul.f32 %v1386_v46, %v1286_v47  ;;  %v1492_v63 = vperm.slane %v1380_v53, 1 }
 0x497   :  { %v1598_v8 = vperm.slane %v1380_v53, 2  ;;  %v1291_v46 = vmul.f32 %v1290_v28, %v4192_v22  ;;  %v1289_v53 = vmul.f32 %v1287_v50, %v4190_v7  ;;  %v1292_v22 = vmul.f32 %v1290_v28, %v4208_v55 }
 0x498   :  { %v1399_v36 = vperm.slane %v1398_v12, 0  ;;  %v1389_v9 = vperm.slane %v1388_v14, 0  ;;  %v1382_v61 = vmul.f32 %v1381_v25, %v1353_v54  ;;  %v1383_v32 = vmul.f32 %v1381_v25, %v1356_v30 }
 0x499   :  { %v1384_v16 = vmul.f32 %v1381_v25, %v1359_v17  ;;  %v1499_v19 = vperm.slane %v1388_v14, 1  ;;  %v1288_v12 = vmul.f32 %v1287_v50, %v4188_v37  ;;  %v1494_v30 = vmul.f32 %v1492_v63, %v1471_v20  ;;  %v1580_v25 = vpop.f32.mrf.mxu3 }
 0x49a   :  { %v1390_v59 = vmul.f32 %v1389_v9, %v1362_v58  ;;  %v1391_v41 = vmul.f32 %v1389_v9, %v1365_v26  ;;  %v1392_v38 = vmul.f32 %v1389_v9, %v1368_v1  ;;  %v1400_v51 = vmul.f32 %v1399_v36, %v1371_v44 }
 0x49b   :  { %v1486_v58 = vmul.f32 %v4398_v29, %v1389_v9  ;;  %v1401_v47 = vmul.f32 %v1399_v36, %v1374_v60  ;;  %v1488_v54 = vmul.f32 %v4407_v23, %v1389_v9  ;;  %v1493_v26 = vmul.f32 %v1492_v63, %v1468_v11  ;;  %v1483_v11 = vpop.f32.mrf.mxu2 }
 0x49c   :  { %v1393_v52 = vadd.f32 %v1390_v59, %v1382_v61  ;;  %v1394_v31 = vadd.f32 %v1391_v41, %v1383_v32  ;;  %v1395_v35 = vadd.f32 %v1392_v38, %v1384_v16  ;;  %v1487_v1 = vmul.f32 %v4402_v49, %v1389_v9 }
 0x49d   :  { %v1402_v44 = vmul.f32 %v1399_v36, %v1377_v21  ;;  %v1495_v37 = vmul.f32 %v1492_v63, %v1474_v45  ;;  %v1293_v14 = vadd.f32 %v1291_v46, %v1288_v12  ;;  %v1500_v29 = vmul.f32 %v1499_v19, %v1477_v56 }
 0x49e   :  { %v1403_v33 = vadd.f32 %v1400_v51, %v1393_v52  ;;  %v1404_v17 = vadd.f32 %v1401_v47, %v1394_v31  ;;  %v1296_v51 = vmul.f32 %v1295_v48, %v4231_v39  ;;  %v1586_v20 = vmul.f32 %v4400_v5, %v1399_v36 }
 0x49f   :  { %v1405_v23 = vadd.f32 %v1402_v44, %v1395_v35  ;;  %v1294_v59 = vadd.f32 %v1292_v22, %v1289_v53  ;;  %v1297_v7 = vmul.f32 %v1295_v48, %v4254_v57  ;;  %v1501_v63 = vmul.f32 %v1499_v19, %v1480_v42 }
 0x4a0   :  { %v1489_v61 = vadd.f32 %v1486_v58, %v1403_v33  ;;  %v1490_v60 = vadd.f32 %v1487_v1, %v1404_v17  ;;  %v4430_v33 = vadd.f32 %v1296_v51, %v1293_v14  ;;  %v1592_v55 = vmul.f32 %v4411_v34, %v1499_v19 }
 0x4a1   :  { %v1491_v9 = vadd.f32 %v1488_v54, %v1405_v23  ;;  %v1587_v39 = vmul.f32 %v4404_v27, %v1399_v36  ;;  %v4434_v28 = vadd.f32 %v1297_v7, %v1294_v59  ;;  %v1502_v49 = vmul.f32 %v1499_v19, %v1483_v11  ;;  %v1583_v41 = vpop.f32.mrf.mxu3 }
 0x4a2   :  { %v1496_v52 = vadd.f32 %v1493_v26, %v1489_v61  ;;  %v1497_v21 = vadd.f32 %v1494_v30, %v1490_v60  ;;  %1608 = vst [vmem:[#allocation4 + $0xe8] sm:$0xff] %v4430_v33  ;;  %v1588_v57 = vmul.f32 %v4409_v18, %v1399_v36  ;;  %v1593_v45 = vmul.f32 %v4414_v3, %v1499_v19  ;;  %v3263_v18 = vld [vmem:[%s5135_s0 + $0x50] sm:$0xff] }
 0x4a3   :  { %v1498_v5 = vadd.f32 %v1495_v37, %v1491_v9  ;;  %1609 = vst [vmem:[#allocation4 + $0xf0] sm:$0xff] %v4434_v28  ;;  %v1599_v42 = vmul.f32 %v1598_v8, %v4418_v6  ;;  %v1594_v27 = vmul.f32 %v4416_v13, %v1499_v19  ;;  %v1600_v16 = vmul.f32 %v1598_v8, %v1580_v25  ;;  %v3264_v13 = vld [vmem:[%s5135_s0 + $0x58] sm:$0xff]  ;;  %v3262_v37 = vld [vmem:[%s5135_s0 + $0x48] sm:$0xff] }
 0x4a4   :  { %v1503_v50 = vadd.f32 %v1500_v29, %v1496_v52  ;;  %v1504_v56 = vadd.f32 %v1501_v63, %v1497_v21  ;;  %v1601_v46 = vmul.f32 %v1598_v8, %v1583_v41  ;;  %vm1617_vm5 = vcmp.gt.f32.partialorder %v3264_v13, 0.5  ;;  %v5345_v41 = vld [vmem:[#allocation22_spill] sm:$0xff]  ;;  %v5359_v13 = vld [vmem:[#allocation37_spill] sm:$0xff]  ;;  %v5364_v52 = vld [vmem:[#allocation7_spill] sm:$0xff] }
 0x4a5   :  { %v1505_v32 = vadd.f32 %v1502_v49, %v1498_v5  ;;  %v1646_v8 = vsel %vm1617_vm5, 1, %v5270_v2  ;;  %v1636_v60 = vsub.f32 %v3262_v37, %v4430_v33 }
 0x4a6   :  { %v1589_v35 = vadd.f32 %v1586_v20, %v1503_v50  ;;  %v1590_v34 = vadd.f32 %v1587_v39, %v1504_v56  ;;  %v1647_v1 = vperm.slane %v1646_v8, 0 }
 0x4a7   :  { %v1591_v12 = vadd.f32 %v1588_v57, %v1505_v32  ;;  %v5343_v32 = vld [vmem:[#allocation20_spill] sm:$0xff] }
 0x4a8   :  { %v1595_v48 = vadd.f32 %v1592_v55, %v1589_v35  ;;  %v1596_v31 = vadd.f32 %v1593_v45, %v1590_v34  ;;  %vm4455_vm13 = vcmp.eq.s32.totalorder %v1647_v1, 1  ;;  %v5342_v34 = vld [vmem:[#allocation14_spill] sm:$0xff] }
 0x4a9   :  { %v1597_v58 = vadd.f32 %v1594_v27, %v1591_v12  ;;  %v5344_v27 = vld [vmem:[#allocation8_spill] sm:$0xff] }
 0x4aa   :  { %v1602_v38 = vadd.f32 %v1599_v42, %v1595_v48  ;;  %v1603_v36 = vadd.f32 %v1600_v16, %v1596_v31  ;;  %v5337_v42 = vld [vmem:[#allocation23_spill] sm:$0xff]  ;;  %v5341_v48 = vld [vmem:[#allocation16_spill] sm:$0xff]  ;;  %v5347_v16 = vld [vmem:[#allocation25_spill] sm:$0xff] }
 0x4ab   :  { %v1604_v54 = vadd.f32 %v1601_v46, %v1597_v58  ;;  %v5348_v31 = vld [vmem:[#allocation13_spill] sm:$0xff]  ;;  %v5349_v12 = vld [vmem:[#allocation28_spill] sm:$0xff]  ;;  %v5354_v58 = vld [vmem:[#allocation30_spill] sm:$0xff] }
 0x4ac   :  { %v1605_v3 = vadd.f32 %v1602_v38, %v3920_v43  ;;  %v1606_v47 = vadd.f32 %v1603_v36, %v3912_v24  ;;  %v5346_v38 = vld [vmem:[#allocation18_spill] sm:$0xff]  ;;  %v5352_v36 = vld [vmem:[#allocation12_spill] sm:$0xff] }
 0x4ad   :  { %v1607_v19 = vadd.f32 %v1604_v54, %v3926_v15  ;;  %v5353_v46 = vld [vmem:[#allocation32_spill] sm:$0xff] }
 0x4ae   :  { %1610 = vst [vmem:[#allocation4 + $0xf8] sm:$0xff] %v1605_v3  ;;  %v1618_v6 = vadd.f32 %v3263_v18, %v1605_v3  ;;  %v5350_v18 = vld [vmem:[#allocation27_spill] sm:$0xff]  ;;  %v5357_v54 = vld [vmem:[#allocation36_spill] sm:$0xff] }
 0x4af   :  { %1611 = vst [vmem:[#allocation4 + $0x100] sm:$0xff] %v1606_v47 }
 0x4b0   :  { %3425 = vrcp.f32 %v1618_v6  ;;  %1612 = vst [vmem:[#allocation4 + $0x108] sm:$0xff] %v1607_v19  ;;  %v1630_v53 = vand.u32 2147483648, %v1618_v6  ;;  %v1628_v17 = vand.u32 2147483647, %v1618_v6  ;;  %vm1624_vm10 = vweird.f32 %v1618_v6 }
 0x4b2   :  { %v1631_v22 = vor.u32 1.1754944e-38, %v1630_v53  ;;  %vm1629_vm12 = vcmp.eq.f32.partialorder %v1628_v17, 8.507059e+37 }
 0x4b6   :  { %v3426_v26 = vpop.eup %3425 }
 0x4b7   :  { %v1620_v30 = vmul.f32 %v3426_v26, %v1618_v6  ;;  %vm1625_vm9 = vweird.f32 %v3426_v26  ;;  %v5355_v6 = vld [vmem:[#allocation34_spill] sm:$0xff] }
 0x4b8   :  { %vm1626_vm11 = vmor %vm1624_vm10, %vm1625_vm9 }
 0x4b9   :  { %v1621_v25 = vsub.f32 1.0, %v1620_v30  ;;  %v5361_v30 = vld [vmem:[#allocation38_spill] sm:$0xff] }
 0x4bb   :  { %v1622_v61 = vmul.f32 %v3426_v26, %v1621_v25  ;;  %v5362_v25 = vld [vmem:[#allocation40_spill] sm:$0xff] }
 0x4bd   :  { %v1623_v44 = vadd.f32 %v3426_v26, %v1622_v61 }
 0x4bf   :  { %v1627_v14 = vsel %vm1626_vm11, %v3426_v26, %v1623_v44  ;;  %v5360_v26 = vld [vmem:[#allocation39_spill] sm:$0xff] }
 0x4c0   :  { %v1632_v51 = vsel %vm1629_vm12, %v1631_v22, %v1627_v14  ;;  %v5363_v14 = vld [vmem:[#allocation10_spill] sm:$0xff] }
 0x4c1   :  { %v1635_v29 = vmul.f32 %v1632_v51, %v1606_v47  ;;  %v1634_v23 = vmul.f32 %v1632_v51, %v1605_v3 }
 0x4c3   :  { %v1638_v20 = vmul.f32 %v1636_v60, %v1635_v29  ;;  %v1655_v11 = vsel %vm4455_vm13, %v1635_v29, 0.0  ;;  %v1644_v59 = vmul.f32 %v1635_v29, %v1606_v47  ;;  %v1637_v7 = vmul.f32 %v1636_v60, %v1634_v23 }
 0x4c4   :  { %1663 = vst [vmem:[#allocation4 + $0x178] sm:$0xff] %v1655_v11  ;;  %v1654_v50 = vsel %vm4455_vm13, %v1634_v23, 0.0  ;;  %v1641_v21 = vsub.f32 1.0, %v1634_v23 }
 0x4c5   :  { %v1640_v63 = vadd.f32 %v1638_v20, %v4434_v28  ;;  %v1645_v9 = vsub.f32 %v1607_v19, %v1644_v59  ;;  %v1639_v55 = vadd.f32 %v1637_v7, %v4430_v33  ;;  %1662 = vst [vmem:[#allocation4 + $0x170] sm:$0xff] %v1654_v50  ;;  %v5365_v20 = vld [vmem:[#allocation33_spill] sm:$0xff] }
 0x4c6   :  { %v1643_v39 = vmul.f32 %v1641_v21, %v1606_v47  ;;  %v1642_v35 = vmul.f32 %v1641_v21, %v1605_v3 }
 0x4c7   :  { %v1650_v56 = vsel %vm4455_vm13, %v1640_v63, %v4434_v28  ;;  %v1653_v5 = vsel %vm4455_vm13, %v1645_v9, %v1607_v19  ;;  %v1649_v49 = vsel %vm4455_vm13, %v1639_v55, %v4430_v33  ;;  %v5333_v33 = vld [vmem:[#allocation21_spill] sm:$0xff]  ;;  %v5335_v28 = vld [vmem:[#allocation19_spill] sm:$0xff] }
 0x4c8   :  { %1658 = vst [vmem:[#allocation4 + $0x128] sm:$0xff] %v1650_v56  ;;  %1702 = vmatpush.msra.mxu0 %v1650_v56  ;;  %1853 = vmatpush.msra.mxu1 %v1653_v5  ;;  %v1652_v57 = vsel %vm4455_vm13, %v1643_v39, %v1606_v47  ;;  %v1651_v45 = vsel %vm4455_vm13, %v1642_v35, %v1605_v3  ;;  %v5351_v3 = vld [vmem:[#allocation29_spill] sm:$0xff]  ;;  %v5358_v19 = vld [vmem:[#allocation35_spill] sm:$0xff] }
 0x4c9   :  { %1661 = vst [vmem:[#allocation4 + $0x140] sm:$0xff] %v1653_v5  ;;  %1959 = vmatpush.msrb.mxu2 %v1653_v5  ;;  %2059 = vmatpush.msra.mxu3 %v1653_v5  ;;  %v5356_v47 = vld [vmem:[#allocation17_spill] sm:$0xff]  ;;  %v5366_v39 = vld [vmem:[#allocation31_spill] sm:$0xff] }
 0x4ca   :  { %1657 = vst [vmem:[#allocation4 + $0x120] sm:$0xff] %v1649_v49  ;;  %1703 = vmatpush.msra.mxu0 %v1649_v49  ;;  %1854 = vmatpush.msra.mxu1 %v1652_v57 }
 0x4cb   :  { %1660 = vst [vmem:[#allocation4 + $0x138] sm:$0xff] %v1652_v57  ;;  %1960 = vmatpush.msrb.mxu2 %v1652_v57  ;;  %2060 = vmatpush.msra.mxu3 %v1652_v57 }
 0x4cc   :  { %3265 = vmatmul.msk.f32.vlgmr.msra.gmra.mxu0 %vm116_vm6, %v4132_v0  ;;  %1659 = vst [vmem:[#allocation4 + $0x130] sm:$0xff] %v1651_v45  ;;  %1855 = vmatpush.msra.mxu1 %v1651_v45  ;;  %v5334_v0 = vld [vmem:[#allocation15_spill] sm:$0xff] }
 0x4cd   :  { %1737 = vmatpush.msrb.mxu0 %v1650_v56  ;;  %1961 = vmatpush.msrb.mxu2 %v1651_v45 }
 0x4ce   :  { %2061 = vmatpush.msra.mxu3 %v1651_v45  ;;  %3283 = vmatmul.msk.f32.vlgmr.msrb.gmra.mxu2 %vm285_vm7, %v4202_v40  ;;  %v5336_v40 = vld [vmem:[#allocation11_spill] sm:$0xff] }
 0x4cf   :  { %1738 = vmatpush.msrb.mxu0 %v1649_v49  ;;  %3292 = vmatmul.msk.f32.vlgmr.msra.gmra.mxu3 %vm285_vm7, %v4197_v10  ;;  %v5338_v10 = vld [vmem:[#allocation24_spill] sm:$0xff] }
 0x4d0   :  { %3274 = vmatmul.msk.f32.vlgmr.msra.gmra.mxu1 %vm285_vm7, %v4213_v62  ;;  %v5339_v62 = vld [vmem:[#allocation26_spill] sm:$0xff] }
 0x4d4   :  { %3266 = vmatmul.msk.f32.gmra.mxu0 %vm116_vm6, %v4142_v4  ;;  %v5340_v4 = vld [vmem:[#allocation9_spill] sm:$0xff] }
 0x4d6   :  { %3284 = vmatmul.msk.f32.gmra.mxu2 %vm285_vm7, %v5333_v33 }
 0x4d7   :  { %3293 = vmatmul.msk.f32.gmra.mxu3 %vm285_vm7, %v5334_v0 }
 0x4d8   :  { %3275 = vmatmul.msk.f32.gmra.mxu1 %vm285_vm7, %v5335_v28 }
 0x4dc   :  { %3267 = vmatmul.msk.f32.gmra.mxu0 %vm116_vm6, %v5336_v40 }
 0x4de   :  { %3285 = vmatmul.msk.f32.gmra.mxu2 %vm285_vm7, %v5337_v42 }
 0x4df   :  { %3294 = vmatmul.msk.f32.gmra.mxu3 %vm285_vm7, %v5338_v10 }
 0x4e0   :  { %3276 = vmatmul.msk.f32.gmra.mxu1 %vm285_vm7, %v5339_v62 }
 0x4e4   :  { %3268 = vmatmul.msk.f32.gmra.mxu0 %vm116_vm6, %v5340_v4 }
 0x4e6   :  { %3286 = vmatmul.msk.f32.gmra.mxu2 %vm285_vm7, %v5341_v48 }
 0x4e7   :  { %3295 = vmatmul.msk.f32.gmra.mxu3 %vm285_vm7, %v5342_v34 }
 0x4e8   :  { %3277 = vmatmul.msk.f32.gmra.mxu1 %vm285_vm7, %v5343_v32 }
 0x4ec   :  { %3269 = vmatmul.msk.f32.gmra.mxu0 %vm116_vm6, %v5344_v27 }
 0x4ee   :  { %3287 = vmatmul.msk.f32.gmra.mxu2 %vm285_vm7, %v5345_v41 }
 0x4ef   :  { %3296 = vmatmul.msk.f32.gmra.mxu3 %vm285_vm7, %v5346_v38 }
 0x4f0   :  { %3278 = vmatmul.msk.f32.gmra.mxu1 %vm285_vm7, %v5347_v16 }
 0x4f4   :  { %3270 = vmatmul.msk.f32.gmra.mxu0 %vm116_vm6, %v5348_v31 }
 0x4f6   :  { %3288 = vmatmul.msk.f32.gmra.mxu2 %vm285_vm7, %v5349_v12 }
 0x4f7   :  { %3297 = vmatmul.msk.f32.gmra.mxu3 %vm285_vm7, %v5350_v18 }
 0x4f8   :  { %3279 = vmatmul.msk.f32.gmra.mxu1 %vm285_vm7, %v5351_v3 }
 0x4fc   :  { %3271 = vmatmul.msk.f32.vlgmr.msrb.gmra.mxu0 %vm116_vm6, %v5352_v36 }
 0x4fe   :  { %3289 = vmatmul.msk.f32.gmra.mxu2 %vm285_vm7, %v5353_v46 }
 0x4ff   :  { %3298 = vmatmul.msk.f32.gmra.mxu3 %vm285_vm7, %v5354_v58 }
 0x500   :  { %3280 = vmatmul.msk.f32.gmra.mxu1 %vm285_vm7, %v5355_v6 }
 0x504   :  { %3272 = vmatmul.msk.f32.gmra.mxu0 %vm116_vm6, %v5356_v47 }
 0x506   :  { %3290 = vmatmul.msk.f32.gmra.mxu2 %vm285_vm7, %v5357_v54 }
 0x507   :  { %3299 = vmatmul.msk.f32.gmra.mxu3 %vm285_vm7, %v5358_v19 }
 0x508   :  { %3281 = vmatmul.msk.f32.gmra.mxu1 %vm285_vm7, %v5359_v13 }
 0x50e   :  { %3291 = vmatmul.msk.f32.gmra.mxu2 %vm285_vm7, %v5360_v26 }
 0x50f   :  { %3300 = vmatmul.msk.f32.gmra.mxu3 %vm285_vm7, %v5361_v30 }
 0x510   :  { %3282 = vmatmul.msk.f32.gmra.mxu1 %vm285_vm7, %v5362_v25 }
 0x549   :  { %v4548_v8 = vpop.f32.mrf.mxu0 }
 0x54d   :  { %v1857_v11 = vpop.f32.mrf.mxu1 }
 0x551   :  { %v4550_v53 = vpop.f32.mrf.mxu0  ;;  %v4564_v59 = vpop.f32.mrf.mxu2 }
 0x552   :  { %v4566_v50 = vpop.f32.mrf.mxu3 }
 0x555   :  { %v1860_v7 = vpop.f32.mrf.mxu1 }
 0x559   :  { %v4552_v61 = vpop.f32.mrf.mxu0  ;;  %v4568_v21 = vpop.f32.mrf.mxu2 }
 0x55a   :  { %v4570_v55 = vpop.f32.mrf.mxu3 }
 0x55d   :  { %v1863_v63 = vpop.f32.mrf.mxu1 }
 0x561   :  { %v4554_v17 = vpop.f32.mrf.mxu0  ;;  %v4573_v57 = vpop.f32.mrf.mxu2 }
 0x562   :  { %v4575_v40 = vpop.f32.mrf.mxu3 }
 0x565   :  { %v1866_v0 = vpop.f32.mrf.mxu1 }
 0x569   :  { %v4556_v1 = vpop.f32.mrf.mxu0  ;;  %v1972_v10 = vpop.f32.mrf.mxu2 }
 0x56a   :  { %v4577_v48 = vpop.f32.mrf.mxu3 }
 0x56d   :  { %v1869_v62 = vpop.f32.mrf.mxu1 }
 0x571   :  { %v4558_v44 = vpop.f32.mrf.mxu0  ;;  %v1975_v41 = vpop.f32.mrf.mxu2 }
 0x572   :  { %v4580_v18 = vpop.f32.mrf.mxu3 }
 0x575   :  { %v1872_v31 = vpop.f32.mrf.mxu1 }
 0x579   :  { %v1740_v37 = vpop.f32.mrf.mxu0  ;;  %v1978_v36 = vpop.f32.mrf.mxu2 }
 0x57a   :  { %v1741_v51 = vadd.f32 %v1740_v37, %v5363_v14  ;;  %v4582_v6 = vpop.f32.mrf.mxu3 }
 0x57d   :  { %v1875_v46 = vpop.f32.mrf.mxu1 }
 0x581   :  { %v1743_v22 = vpop.f32.mrf.mxu0  ;;  %v1981_v19 = vpop.f32.mrf.mxu2 }
 0x582   :  { %v1744_v29 = vadd.f32 %v1743_v22, %v5364_v52 }
 0x584   :  { %3427 = vtanh.f32 %v1744_v29 }
 0x585   :  { %3429 = vtanh.f32 %v1741_v51  ;;  %v1878_v30 = vpop.f32.mrf.mxu1  ;;  %v4584_v51 = vpop.f32.mrf.mxu3 }
 0x58a   :  { %v3428_v60 = vpop.eup %3427 }
 0x58b   :  { %1762 = vmatpush.msra.mxu0 %v3428_v60  ;;  %v3430_v23 = vpop.eup %3429 }
 0x58d   :  { %1763 = vmatpush.msra.mxu0 %v3430_v23 }
 0x58e   :  { %3273 = vmatmul.msk.f32.vlgmr.msra.gmra.mxu0 %vm116_vm6, %v5365_v20 }
 0x60b   :  { %v1765_v9 = vpop.f32.mrf.mxu0 }
 0x60c   :  { %v1766_v35 = vadd.f32 %v1765_v9, %v5366_v39 }
 0x60e   :  { %v1769_v56 = vrot.slane %v1766_v35, 1  ;;  %v1772_v49 = vrot.slane %v1766_v35, 2 }
 0x610   :  { %v1771_v5 = vmax.f32 %v1766_v35, %v1769_v56 }
 0x612   :  { %v1774_v45 = vmax.f32 %v1771_v5, %v1772_v49 }
 0x614   :  { %v1775_v33 = vperm.slane %v1774_v45, 0 }
 0x616   :  { %v1776_v28 = vsub.f32 %v1766_v35, %v1775_v33  ;;  %v1984_v35 = vpop.f32.mrf.mxu2 }
 0x618   :  { %v1777_v42 = vmul.f32 1.442695, %v1776_v28 }
 0x61a   :  { %3431 = vpow2.f32 %v1777_v42 }
 0x620   :  { %v3432_v4 = vpop.eup %3431 }
 0x621   :  { %v1779_v34 = vsel %vm250_vm8, %v3432_v4, 0.0 }
 0x622   :  { %v1780_v32 = vrot.slane %v1779_v34, 4 }
 0x624   :  { %v1781_v27 = vadd.f32 %v1780_v32, %v1779_v34 }
 0x626   :  { %v1782_v38 = vrot.slane %v1781_v27, 2 }
 0x628   :  { %v1783_v16 = vadd.f32 %v1782_v38, %v1781_v27 }
 0x62a   :  { %v1784_v12 = vrot.slane %v1783_v16, 1 }
 0x62c   :  { %v1785_v3 = vadd.f32 %v1784_v12, %v1783_v16 }
 0x62e   :  { %3433 = vrcp.f32 %v1785_v3 }
 0x634   :  { %v3434_v58 = vpop.eup %3433 }
 0x635   :  { %v1787_v47 = vmul.f32 %v3434_v58, %v1785_v3 }
 0x637   :  { %v1788_v54 = vsub.f32 2.0, %v1787_v47 }
 0x639   :  { %v1789_v13 = vmul.f32 %v3434_v58, %v1788_v54  ;;  %v1881_v58 = vpop.f32.mrf.mxu1 }
 0x63b   :  { %v1790_v26 = vmul.f32 %v3432_v4, %v1789_v13 }
 0x63d   :  { %v1900_v25 = vrot.slane %v1790_v26, 2  ;;  %v1884_v37 = vmul.f32 %v1790_v26, %v1790_v26  ;;  %v1890_v22 = vrot.slane %v1790_v26, 1  ;;  %v1791_v56 = vperm.slane %v1790_v26, 0 }
 0x63e   :  { %v1794_v5 = vperm.slane %v1790_v26, 1  ;;  %v1799_v33 = vperm.slane %v1790_v26, 2 }
 0x63f   :  { %v1902_v29 = vmul.f32 %v1900_v25, %v1790_v26  ;;  %v1885_v60 = vperm.slane %v1884_v37, 0  ;;  %v1892_v23 = vmul.f32 %v1890_v22, %v1790_v26  ;;  %v1996_v28 = vperm.slane %v1884_v37, 1 }
 0x640   :  { %v2102_v38 = vperm.slane %v1884_v37, 2  ;;  %v1792_v47 = vmul.f32 %v1791_v56, %v4548_v8  ;;  %v1795_v54 = vmul.f32 %v1794_v5, %v4552_v61  ;;  %v1793_v26 = vmul.f32 %v1791_v56, %v4550_v53 }
 0x641   :  { %v1903_v20 = vperm.slane %v1902_v29, 0  ;;  %v1893_v9 = vperm.slane %v1892_v23, 0  ;;  %v1886_v49 = vmul.f32 %v1885_v60, %v1857_v11  ;;  %v1887_v42 = vmul.f32 %v1885_v60, %v1860_v7 }
 0x642   :  { %v1888_v32 = vmul.f32 %v1885_v60, %v1863_v63  ;;  %v2003_v12 = vperm.slane %v1892_v23, 1  ;;  %v2084_v63 = vpop.f32.mrf.mxu3  ;;  %v1999_v8 = vmul.f32 %v1996_v28, %v1978_v36  ;;  %v1796_v61 = vmul.f32 %v1794_v5, %v4554_v17 }
 0x643   :  { %v1894_v45 = vmul.f32 %v1893_v9, %v1866_v0  ;;  %v1895_v4 = vmul.f32 %v1893_v9, %v1869_v62  ;;  %v1896_v34 = vmul.f32 %v1893_v9, %v1872_v31  ;;  %v1904_v16 = vmul.f32 %v1903_v20, %v1875_v46 }
 0x644   :  { %v1990_v11 = vmul.f32 %v4564_v59, %v1893_v9  ;;  %v1905_v0 = vmul.f32 %v1903_v20, %v1878_v30  ;;  %v1992_v7 = vmul.f32 %v4573_v57, %v1893_v9  ;;  %v1997_v62 = vmul.f32 %v1996_v28, %v1972_v10 }
 0x645   :  { %v1897_v27 = vadd.f32 %v1894_v45, %v1886_v49  ;;  %v1898_v3 = vadd.f32 %v1895_v4, %v1887_v42  ;;  %v1899_v13 = vadd.f32 %v1896_v34, %v1888_v32  ;;  %v1998_v31 = vmul.f32 %v1996_v28, %v1975_v41  ;;  %v1987_v41 = vpop.f32.mrf.mxu2 }
 0x646   :  { %v1991_v22 = vmul.f32 %v4568_v21, %v1893_v9  ;;  %v1906_v29 = vmul.f32 %v1903_v20, %v1881_v58  ;;  %v1797_v60 = vadd.f32 %v1795_v54, %v1792_v47  ;;  %v1800_v23 = vmul.f32 %v1799_v33, %v4556_v1 }
 0x647   :  { %v1907_v25 = vadd.f32 %v1904_v16, %v1897_v27  ;;  %v1908_v37 = vadd.f32 %v1905_v0, %v1898_v3  ;;  %v2004_v30 = vmul.f32 %v2003_v12, %v1981_v19  ;;  %v2090_v10 = vmul.f32 %v4566_v50, %v1903_v20 }
 0x648   :  { %v1909_v57 = vadd.f32 %v1906_v29, %v1899_v13  ;;  %v1798_v45 = vadd.f32 %v1796_v61, %v1793_v26  ;;  %v1801_v53 = vmul.f32 %v1799_v33, %v4558_v44  ;;  %v4596_v56 = vadd.f32 %v1800_v23, %v1797_v60 }
 0x649   :  { %v1993_v46 = vadd.f32 %v1990_v11, %v1907_v25  ;;  %v1994_v49 = vadd.f32 %v1991_v22, %v1908_v37  ;;  %v2005_v36 = vmul.f32 %v2003_v12, %v1984_v35  ;;  %v2096_v17 = vmul.f32 %v4577_v48, %v2003_v12  ;;  %v3301_v22 = vld [vmem:[%s5135_s0 + $0x60] sm:$0xff] }
 0x64a   :  { %v1995_v28 = vadd.f32 %v1992_v7, %v1909_v57  ;;  %v2091_v1 = vmul.f32 %v4570_v55, %v1903_v20  ;;  %v4600_v5 = vadd.f32 %v1801_v53, %v1798_v45  ;;  %2112 = vst [vmem:[#allocation4 + $0x148] sm:$0xff] %v4596_v56  ;;  %v2006_v4 = vmul.f32 %v2003_v12, %v1987_v41  ;;  %v2087_v27 = vpop.f32.mrf.mxu3 }
 0x64b   :  { %v2000_v59 = vadd.f32 %v1997_v62, %v1993_v46  ;;  %v2001_v9 = vadd.f32 %v1998_v31, %v1994_v49  ;;  %v2092_v44 = vmul.f32 %v4575_v40, %v1903_v20  ;;  %v2097_v33 = vmul.f32 %v4580_v18, %v2003_v12  ;;  %v3302_v40 = vld [vmem:[%s5135_s0 + $0x68] sm:$0xff] }
 0x64c   :  { %v2002_v42 = vadd.f32 %v1999_v8, %v1995_v28  ;;  %2113 = vst [vmem:[#allocation4 + $0x150] sm:$0xff] %v4600_v5  ;;  %v2103_v35 = vmul.f32 %v2102_v38, %v4584_v51  ;;  %v2098_v55 = vmul.f32 %v4582_v6, %v2003_v12  ;;  %v2104_v3 = vmul.f32 %v2102_v38, %v2084_v63  ;;  %v3303_v12 = vld [vmem:[%s5135_s0 + $0x70] sm:$0xff] }
 0x64d   :  { %v2007_v21 = vadd.f32 %v2004_v30, %v2000_v59  ;;  %v2008_v50 = vadd.f32 %v2005_v36, %v2001_v9  ;;  %v2105_v54 = vmul.f32 %v2102_v38, %v2087_v27  ;;  %vm2121_vm14 = vcmp.gt.f32.partialorder %v3303_v12, 0.5  ;;  %v4776_v12 = vld [vmem:[%s5142_s7 + $0xa8] sm:$0xff] }
 0x64e   :  { %v2009_v32 = vadd.f32 %v2006_v4, %v2002_v42  ;;  %v2150_v38 = vsel %vm2121_vm14, 1, %v5270_v2  ;;  %v2140_v59 = vsub.f32 %v3301_v22, %v4596_v56  ;;  %5381 = vst [vmem:[#allocation22_spill] sm:$0xff] %v4776_v12  ;;  %v4820_v22 = vld [vmem:[%s5142_s7 + $0xb8] sm:$0xff] }
 0x64f   :  { %v2093_v19 = vadd.f32 %v2090_v10, %v2007_v21  ;;  %v2094_v48 = vadd.f32 %v2091_v1, %v2008_v50  ;;  %v2151_v46 = vperm.slane %v2150_v38, 0  ;;  %v4797_v38 = vld [vmem:[%s5142_s7 + $0xb0] sm:$0xff]  ;;  %5387 = vst [vmem:[#allocation29_spill] sm:$0xff] %v4820_v22 }
 0x650   :  { %v2095_v47 = vadd.f32 %v2092_v44, %v2009_v32  ;;  %v4661_v44 = vld [vmem:[%s5141_s6 + $0x10] sm:$0xff]  ;;  %v4696_v32 = vld [vmem:[%s5137_s2 + $0x8] sm:$0xff]  ;;  %5384 = vst [vmem:[#allocation13_spill] sm:$0xff] %v4797_v38 }
 0x651   :  { %v2099_v34 = vadd.f32 %v2096_v17, %v2093_v19  ;;  %v2100_v58 = vadd.f32 %v2097_v33, %v2094_v48  ;;  %vm4621_vm3 = vcmp.eq.s32.totalorder %v2151_v46, 1  ;;  %5369 = vst [vmem:[#allocation21_spill] sm:$0xff] %v4661_v44  ;;  %v4668_v33 = vld [vmem:[%s5141_s6 + $0x18] sm:$0xff]  ;;  %v4689_v48 = vld [vmem:[%s5137_s2] sm:$0xff] }
 0x652   :  { %v2101_v13 = vadd.f32 %v2098_v55, %v2095_v47  ;;  %5370 = vst [vmem:[#allocation15_spill] sm:$0xff] %v4668_v33 }
 0x653   :  { %v2106_v16 = vadd.f32 %v2103_v35, %v2099_v34  ;;  %v2107_v20 = vadd.f32 %v2104_v3, %v2100_v58  ;;  %v4675_v35 = vld [vmem:[%s5141_s6 + $0x20] sm:$0xff]  ;;  %v4682_v34 = vld [vmem:[%s5141_s6 + $0x28] sm:$0xff]  ;;  %5373 = vst [vmem:[#allocation23_spill] sm:$0xff] %v4689_v48  ;;  %v4709_v3 = vld [vmem:[%s5142_s7 + $0x90] sm:$0xff] }
 0x654   :  { %v2108_v11 = vadd.f32 %v2105_v54, %v2101_v13  ;;  %5371 = vst [vmem:[#allocation19_spill] sm:$0xff] %v4675_v35  ;;  %v4714_v58 = vld [vmem:[%s5142_s7 + $0x48] sm:$0xff] }
 0x655   :  { %v2109_v18 = vadd.f32 %v2106_v16, %v3920_v43  ;;  %v2110_v25 = vadd.f32 %v2107_v20, %v3912_v24  ;;  %5372 = vst [vmem:[#allocation11_spill] sm:$0xff] %v4682_v34  ;;  %v4735_v20 = vld [vmem:[%s5142_s7 + $0x50] sm:$0xff]  ;;  %v4748_v13 = vld [vmem:[%s5142_s7 + $0x8] sm:$0xff] }
 0x656   :  { %v2111_v6 = vadd.f32 %v2108_v11, %v3926_v15  ;;  %5374 = vst [vmem:[#allocation24_spill] sm:$0xff] %v4696_v32 }
 0x657   :  { %2114 = vst [vmem:[#allocation4 + $0x158] sm:$0xff] %v2109_v18  ;;  %v2122_v51 = vadd.f32 %v3302_v40, %v2109_v18  ;;  %v4725_v40 = vld [vmem:[%s5142_s7] sm:$0xff] }
 0x658   :  { %2115 = vst [vmem:[#allocation4 + $0x160] sm:$0xff] %v2110_v25 }
 0x659   :  { %3435 = vrcp.f32 %v2122_v51  ;;  %2116 = vst [vmem:[#allocation4 + $0x168] sm:$0xff] %v2111_v6  ;;  %v2134_v31 = vand.u32 2147483648, %v2122_v51  ;;  %v2132_v26 = vand.u32 2147483647, %v2122_v51  ;;  %vm2128_vm0 = vweird.f32 %v2122_v51 }
 0x65a   :  { %5376 = vst [vmem:[#allocation9_spill] sm:$0xff] %v4735_v20 }
 0x65b   :  { %v2135_v29 = vor.u32 1.1754944e-38, %v2134_v31  ;;  %vm2133_vm2 = vcmp.eq.f32.partialorder %v2132_v26, 8.507059e+37  ;;  %5377 = vst [vmem:[#allocation16_spill] sm:$0xff] %v4748_v13  ;;  %v4802_v31 = vld [vmem:[%s5142_s7 + $0x68] sm:$0xff] }
 0x65c   :  { %5385 = vst [vmem:[#allocation28_spill] sm:$0xff] %v4802_v31 }
 0x65f   :  { %v3436_v0 = vpop.eup %3435 }
 0x660   :  { %v2124_v7 = vmul.f32 %v3436_v0, %v2122_v51  ;;  %vm2129_vm15 = vweird.f32 %v3436_v0  ;;  %v4753_v51 = vld [vmem:[%s5142_s7 + $0xa0] sm:$0xff] }
 0x661   :  { %vm2130_vm1 = vmor %vm2128_vm0, %vm2129_vm15  ;;  %5378 = vst [vmem:[#allocation14_spill] sm:$0xff] %v4753_v51 }
 0x662   :  { %v2125_v62 = vsub.f32 1.0, %v2124_v7 }
 0x664   :  { %v2126_v63 = vmul.f32 %v3436_v0, %v2125_v62  ;;  %v4792_v62 = vld [vmem:[%s5142_s7 + $0x18] sm:$0xff] }
 0x665   :  { %5383 = vst [vmem:[#allocation25_spill] sm:$0xff] %v4792_v62 }
 0x666   :  { %v2127_v37 = vadd.f32 %v3436_v0, %v2126_v63 }
 0x668   :  { %v2131_v8 = vsel %vm2130_vm1, %v3436_v0, %v2127_v37  ;;  %v4781_v0 = vld [vmem:[%s5142_s7 + $0x60] sm:$0xff] }
 0x669   :  { %v2136_v61 = vsel %vm2133_vm2, %v2135_v29, %v2131_v8  ;;  %5382 = vst [vmem:[#allocation18_spill] sm:$0xff] %v4781_v0  ;;  %v4815_v37 = vld [vmem:[%s5142_s7 + $0x20] sm:$0xff]  ;;  %v4825_v29 = vld [vmem:[%s5142_s7 + $0x70] sm:$0xff] }
 0x66a   :  { %v2139_v23 = vmul.f32 %v2136_v61, %v2110_v25  ;;  %v2138_v30 = vmul.f32 %v2136_v61, %v2109_v18  ;;  %5386 = vst [vmem:[#allocation27_spill] sm:$0xff] %v4815_v37  ;;  %v4836_v61 = vld [vmem:[%s5142_s7 + $0x28] sm:$0xff] }
 0x66b   :  { %5388 = vst [vmem:[#allocation12_spill] sm:$0xff] %v4825_v29 }
 0x66c   :  { %v2142_v49 = vmul.f32 %v2140_v59, %v2139_v23  ;;  %v2159_v57 = vsel %vm4621_vm3, %v2139_v23, 0.0  ;;  %v2148_v10 = vmul.f32 %v2139_v23, %v2110_v25  ;;  %v2141_v41 = vmul.f32 %v2140_v59, %v2138_v30  ;;  %5389 = vst [vmem:[#allocation32_spill] sm:$0xff] %v4836_v61  ;;  %v4841_v23 = vld [vmem:[%s5142_s7 + $0xc0] sm:$0xff]  ;;  %v4846_v59 = vld [vmem:[%s5142_s7 + $0x78] sm:$0xff] }
 0x66d   :  { %2167 = vst [vmem:[#allocation4 + $0x1d8] sm:$0xff] %v2159_v57  ;;  %v2158_v45 = vsel %vm4621_vm3, %v2138_v30, 0.0  ;;  %v2145_v53 = vsub.f32 1.0, %v2138_v30  ;;  %v4851_v30 = vld [vmem:[%s5139_s4] sm:$0x7]  ;;  %v4869_v57 = vld [vmem:[%s5142_s7 + $0xc8] sm:$0xff] }
 0x66e   :  { %v2144_v21 = vadd.f32 %v2142_v49, %v4600_v5  ;;  %v2149_v9 = vsub.f32 %v2111_v6, %v2148_v10  ;;  %v2143_v36 = vadd.f32 %v2141_v41, %v4596_v56  ;;  %2166 = vst [vmem:[#allocation4 + $0x1d0] sm:$0xff] %v2158_v45  ;;  %v4864_v49 = vld [vmem:[%s5142_s7 + $0x30] sm:$0xff]  ;;  %v4874_v10 = vld [vmem:[%s5142_s7 + $0x80] sm:$0xff]  ;;  %v4885_v41 = vld [vmem:[%s5142_s7 + $0x38] sm:$0xff] }
 0x66f   :  { %v2147_v28 = vmul.f32 %v2145_v53, %v2110_v25  ;;  %v2146_v17 = vmul.f32 %v2145_v53, %v2109_v18  ;;  %5390 = vst [vmem:[#allocation30_spill] sm:$0xff] %v4841_v23  ;;  %v4890_v45 = vld [vmem:[%s5142_s7 + $0xd0] sm:$0xff]  ;;  %v4895_v53 = vld [vmem:[%s5142_s7 + $0x88] sm:$0xff] }
 0x670   :  { %v2154_v1 = vsel %vm4621_vm3, %v2144_v21, %v4600_v5  ;;  %v2157_v19 = vsel %vm4621_vm3, %v2149_v9, %v2111_v6  ;;  %v2153_v50 = vsel %vm4621_vm3, %v2143_v36, %v4596_v56  ;;  %v4645_v5 = vld [vmem:[%s5141_s6] sm:$0xff]  ;;  %v4654_v56 = vld [vmem:[%s5141_s6 + $0x8] sm:$0xff]  ;;  %v4771_v6 = vld [vmem:[%s5142_s7 + $0x10] sm:$0xff]  ;;  %5391 = vst [vmem:[#allocation34_spill] sm:$0xff] %v4846_v59 }
 0x671   :  { %2162 = vst [vmem:[#allocation4 + $0x188] sm:$0xff] %v2154_v1  ;;  %2206 = vmatpush.msrb.mxu0 %v2154_v1  ;;  %2357 = vmatpush.msrb.mxu1 %v2157_v19  ;;  %v2156_v42 = vsel %vm4621_vm3, %v2147_v28, %v2110_v25  ;;  %v2155_v4 = vsel %vm4621_vm3, %v2146_v17, %v2109_v18  ;;  %v4730_v18 = vld [vmem:[%s5142_s7 + $0x98] sm:$0xff]  ;;  %v4906_v21 = vld [vmem:[%s5142_s7 + $0x40] sm:$0xff] }
 0x672   :  { %2165 = vst [vmem:[#allocation4 + $0x1a0] sm:$0xff] %v2157_v19  ;;  %2463 = vmatpush.msra.mxu2 %v2157_v19  ;;  %2563 = vmatpush.msrb.mxu3 %v2157_v19  ;;  %v4762_v25 = vld [vmem:[%s5142_s7 + $0x58] sm:$0xff] }
 0x673   :  { %2161 = vst [vmem:[#allocation4 + $0x180] sm:$0xff] %v2153_v50  ;;  %2207 = vmatpush.msrb.mxu0 %v2153_v50  ;;  %2358 = vmatpush.msrb.mxu1 %v2156_v42 }
 0x674   :  { %2164 = vst [vmem:[#allocation4 + $0x198] sm:$0xff] %v2156_v42  ;;  %2464 = vmatpush.msra.mxu2 %v2156_v42  ;;  %2564 = vmatpush.msrb.mxu3 %v2156_v42 }
 0x675   :  { %3304 = vmatmul.msk.f32.vlgmr.msrb.gmra.mxu0 %vm116_vm6, %v4645_v5  ;;  %2163 = vst [vmem:[#allocation4 + $0x190] sm:$0xff] %v2155_v4  ;;  %2359 = vmatpush.msrb.mxu1 %v2155_v4 }
 0x676   :  { %2241 = vmatpush.msra.mxu0 %v2154_v1  ;;  %2465 = vmatpush.msra.mxu2 %v2155_v4  ;;  %5375 = vst [vmem:[#allocation26_spill] sm:$0xff] %v4730_v18 }
 0x677   :  { %2565 = vmatpush.msrb.mxu3 %v2155_v4  ;;  %3322 = vmatmul.msk.f32.vlgmr.msra.gmra.mxu2 %vm285_vm7, %v4714_v58  ;;  %5379 = vst [vmem:[#allocation20_spill] sm:$0xff] %v4762_v25 }
 0x678   :  { %2242 = vmatpush.msra.mxu0 %v2153_v50  ;;  %3331 = vmatmul.msk.f32.vlgmr.msrb.gmra.mxu3 %vm285_vm7, %v4709_v3  ;;  %5380 = vst [vmem:[#allocation8_spill] sm:$0xff] %v4771_v6 }
 0x679   :  { %3313 = vmatmul.msk.f32.vlgmr.msrb.gmra.mxu1 %vm285_vm7, %v4725_v40  ;;  %5392 = vst [vmem:[#allocation17_spill] sm:$0xff] %v4851_v30 }
 0x67a   :  { %5393 = vst [vmem:[#allocation36_spill] sm:$0xff] %v4864_v49 }
 0x67b   :  { %5394 = vst [vmem:[#allocation35_spill] sm:$0xff] %v4869_v57 }
 0x67c   :  { %5395 = vst [vmem:[#allocation37_spill] sm:$0xff] %v4874_v10 }
 0x67d   :  { %3305 = vmatmul.msk.f32.gmra.mxu0 %vm116_vm6, %v4654_v56  ;;  %5396 = vst [vmem:[#allocation39_spill] sm:$0xff] %v4885_v41 }
 0x67e   :  { %5397 = vst [vmem:[#allocation38_spill] sm:$0xff] %v4890_v45 }
 0x67f   :  { %3323 = vmatmul.msk.f32.gmra.mxu2 %vm285_vm7, %v4735_v20  ;;  %5398 = vst [vmem:[#allocation40_spill] sm:$0xff] %v4895_v53 }
 0x680   :  { %3332 = vmatmul.msk.f32.gmra.mxu3 %vm285_vm7, %v4730_v18  ;;  %5399 = vst [vmem:[#allocation33_spill] sm:$0xff] %v4906_v21 }
 0x681   :  { %3314 = vmatmul.msk.f32.gmra.mxu1 %vm285_vm7, %v4748_v13 }
 0x685   :  { %3306 = vmatmul.msk.f32.gmra.mxu0 %vm116_vm6, %v4661_v44 }
 0x687   :  { %3324 = vmatmul.msk.f32.gmra.mxu2 %vm285_vm7, %v4762_v25 }
 0x688   :  { %3333 = vmatmul.msk.f32.gmra.mxu3 %vm285_vm7, %v4753_v51 }
 0x689   :  { %3315 = vmatmul.msk.f32.gmra.mxu1 %vm285_vm7, %v4771_v6 }
 0x68d   :  { %3307 = vmatmul.msk.f32.gmra.mxu0 %vm116_vm6, %v4668_v33 }
 0x68f   :  { %3325 = vmatmul.msk.f32.gmra.mxu2 %vm285_vm7, %v4781_v0 }
 0x690   :  { %3334 = vmatmul.msk.f32.gmra.mxu3 %vm285_vm7, %v4776_v12 }
 0x691   :  { %3316 = vmatmul.msk.f32.gmra.mxu1 %vm285_vm7, %v4792_v62 }
 0x695   :  { %3308 = vmatmul.msk.f32.gmra.mxu0 %vm116_vm6, %v4675_v35 }
 0x697   :  { %3326 = vmatmul.msk.f32.gmra.mxu2 %vm285_vm7, %v4802_v31 }
 0x698   :  { %3335 = vmatmul.msk.f32.gmra.mxu3 %vm285_vm7, %v4797_v38 }
 0x699   :  { %3317 = vmatmul.msk.f32.gmra.mxu1 %vm285_vm7, %v4815_v37 }
 0x69d   :  { %3309 = vmatmul.msk.f32.gmra.mxu0 %vm116_vm6, %v4682_v34 }
 0x69f   :  { %3327 = vmatmul.msk.f32.gmra.mxu2 %vm285_vm7, %v4825_v29 }
 0x6a0   :  { %3336 = vmatmul.msk.f32.gmra.mxu3 %vm285_vm7, %v4820_v22 }
 0x6a1   :  { %3318 = vmatmul.msk.f32.gmra.mxu1 %vm285_vm7, %v4836_v61 }
 0x6a5   :  { %3310 = vmatmul.msk.f32.vlgmr.msra.gmra.mxu0 %vm116_vm6, %v4689_v48 }
 0x6a7   :  { %3328 = vmatmul.msk.f32.gmra.mxu2 %vm285_vm7, %v4846_v59 }
 0x6a8   :  { %3337 = vmatmul.msk.f32.gmra.mxu3 %vm285_vm7, %v4841_v23 }
 0x6a9   :  { %3319 = vmatmul.msk.f32.gmra.mxu1 %vm285_vm7, %v4864_v49 }
 0x6ad   :  { %3311 = vmatmul.msk.f32.gmra.mxu0 %vm116_vm6, %v4696_v32 }
 0x6af   :  { %3329 = vmatmul.msk.f32.gmra.mxu2 %vm285_vm7, %v4874_v10 }
 0x6b0   :  { %3338 = vmatmul.msk.f32.gmra.mxu3 %vm285_vm7, %v4869_v57 }
 0x6b1   :  { %3320 = vmatmul.msk.f32.gmra.mxu1 %vm285_vm7, %v4885_v41 }
 0x6b7   :  { %3330 = vmatmul.msk.f32.gmra.mxu2 %vm285_vm7, %v4895_v53 }
 0x6b8   :  { %3339 = vmatmul.msk.f32.gmra.mxu3 %vm285_vm7, %v4890_v45 }
 0x6b9   :  { %3321 = vmatmul.msk.f32.gmra.mxu1 %vm285_vm7, %v4906_v21 }
 0x6f2   :  { %v4700_v55 = vpop.f32.mrf.mxu0 }
 0x6f6   :  { %v2361_v9 = vpop.f32.mrf.mxu1 }
 0x6fa   :  { %v4702_v27 = vpop.f32.mrf.mxu0  ;;  %v4910_v36 = vpop.f32.mrf.mxu2 }
 0x6fb   :  { %v4912_v17 = vpop.f32.mrf.mxu3 }
 0x6fe   :  { %v2364_v28 = vpop.f32.mrf.mxu1 }
 0x702   :  { %v4704_v16 = vpop.f32.mrf.mxu0  ;;  %v4914_v1 = vpop.f32.mrf.mxu2 }
 0x703   :  { %v4916_v42 = vpop.f32.mrf.mxu3 }
 0x706   :  { %v2367_v19 = vpop.f32.mrf.mxu1 }
 0x70a   :  { %v4720_v47 = vpop.f32.mrf.mxu0 }
 0x712   :  { %v4743_v54 = vpop.f32.mrf.mxu0 }
 0x71a   :  { %v4766_v11 = vpop.f32.mrf.mxu0 }
 0x722   :  { %v2244_v7 = vpop.f32.mrf.mxu0 }
 0x723   :  { %v2245_v26 = vadd.f32 %v2244_v7, %v5363_v14  ;;  %v4921_v14 = vpop.f32.mrf.mxu3 }
 0x72a   :  { %v2247_v63 = vpop.f32.mrf.mxu0 }
 0x72b   :  { %v2248_v46 = vadd.f32 %v2247_v63, %v5364_v52  ;;  %v4923_v57 = vpop.f32.mrf.mxu3 }
 0x72d   :  { %3437 = vtanh.f32 %v2248_v46  ;;  %v4919_v46 = vpop.f32.mrf.mxu2 }
 0x72e   :  { %3439 = vtanh.f32 %v2245_v26 }
 0x733   :  { %v3438_v8 = vpop.eup %3437 }
 0x734   :  { %2266 = vmatpush.msrb.mxu0 %v3438_v8  ;;  %v3440_v60 = vpop.eup %3439 }
 0x735   :  { %v2476_v45 = vpop.f32.mrf.mxu2 }
 0x736   :  { %2267 = vmatpush.msrb.mxu0 %v3440_v60 }
 0x737   :  { %3312 = vmatmul.msk.f32.vlgmr.msrb.gmra.mxu0 %vm116_vm6, %v4851_v30  ;;  %v2370_v30 = vpop.f32.mrf.mxu1 }
 0x73d   :  { %v2479_v10 = vpop.f32.mrf.mxu2 }
 0x73f   :  { %v2373_v53 = vpop.f32.mrf.mxu1 }
 0x7b4   :  { %v2269_v50 = vpop.f32.mrf.mxu0 }
 0x7b5   :  { %v2270_v4 = vadd.f32 %v2269_v50, %v5366_v39 }
 0x7b7   :  { %v2273_v7 = vrot.slane %v2270_v4, 1  ;;  %v2276_v26 = vrot.slane %v2270_v4, 2 }
 0x7b9   :  { %v2275_v63 = vmax.f32 %v2270_v4, %v2273_v7 }
 0x7bb   :  { %v2278_v8 = vmax.f32 %v2275_v63, %v2276_v26  ;;  %v2376_v63 = vpop.f32.mrf.mxu1 }
 0x7bd   :  { %v2279_v60 = vperm.slane %v2278_v8, 0  ;;  %v4926_v8 = vpop.f32.mrf.mxu3 }
 0x7bf   :  { %v2280_v52 = vsub.f32 %v2270_v4, %v2279_v60 }
 0x7c1   :  { %v2281_v21 = vmul.f32 1.442695, %v2280_v52  ;;  %v2482_v52 = vpop.f32.mrf.mxu2 }
 0x7c3   :  { %3441 = vpow2.f32 %v2281_v21  ;;  %v2379_v21 = vpop.f32.mrf.mxu1 }
 0x7c5   :  { %v4928_v23 = vpop.f32.mrf.mxu3 }
 0x7c9   :  { %v3442_v41 = vpop.eup %3441  ;;  %v2485_v61 = vpop.f32.mrf.mxu2 }
 0x7ca   :  { %v2283_v50 = vsel %vm250_vm8, %v3442_v41, 0.0 }
 0x7cb   :  { %v2284_v39 = vrot.slane %v2283_v50, 4 }
 0x7cd   :  { %v2285_v7 = vadd.f32 %v2284_v39, %v2283_v50  ;;  %v2382_v39 = vpop.f32.mrf.mxu1 }
 0x7cf   :  { %v2286_v32 = vrot.slane %v2285_v7, 2 }
 0x7d1   :  { %v2287_v49 = vadd.f32 %v2286_v32, %v2285_v7  ;;  %v4930_v7 = vpop.f32.mrf.mxu3  ;;  %v2488_v35 = vpop.f32.mrf.mxu2 }
 0x7d3   :  { %v2288_v26 = vrot.slane %v2287_v49, 1 }
 0x7d5   :  { %v2289_v4 = vadd.f32 %v2288_v26, %v2287_v49  ;;  %v2385_v13 = vpop.f32.mrf.mxu1 }
 0x7d7   :  { %3443 = vrcp.f32 %v2289_v4 }
 0x7dd   :  { %v3444_v60 = vpop.eup %3443 }
 0x7de   :  { %v2291_v59 = vmul.f32 %v3444_v60, %v2289_v4 }
 0x7e0   :  { %v2292_v48 = vsub.f32 2.0, %v2291_v59 }
 0x7e2   :  { %v2293_v22 = vmul.f32 %v3444_v60, %v2292_v48 }
 0x7e4   :  { %v2294_v29 = vmul.f32 %v3442_v41, %v2293_v22 }
 0x7e6   :  { %v2404_v50 = vrot.slane %v2294_v29, 2  ;;  %v2388_v34 = vmul.f32 %v2294_v29, %v2294_v29  ;;  %v2394_v32 = vrot.slane %v2294_v29, 1  ;;  %v2295_v62 = vperm.slane %v2294_v29, 0 }
 0x7e7   :  { %v2298_v12 = vperm.slane %v2294_v29, 1  ;;  %v2303_v59 = vperm.slane %v2294_v29, 2 }
 0x7e8   :  { %v2406_v37 = vmul.f32 %v2404_v50, %v2294_v29  ;;  %v2389_v38 = vperm.slane %v2388_v34, 0  ;;  %v2396_v49 = vmul.f32 %v2394_v32, %v2294_v29  ;;  %v2500_v33 = vperm.slane %v2388_v34, 1 }
 0x7e9   :  { %v2606_v51 = vperm.slane %v2388_v34, 2  ;;  %v2299_v32 = vmul.f32 %v2298_v12, %v4704_v16  ;;  %v2297_v34 = vmul.f32 %v2295_v62, %v4702_v27  ;;  %v2300_v16 = vmul.f32 %v2298_v12, %v4720_v47 }
 0x7ea   :  { %v2407_v26 = vperm.slane %v2406_v37, 0  ;;  %v2397_v31 = vperm.slane %v2396_v49, 0  ;;  %v2390_v0 = vmul.f32 %v2389_v38, %v2361_v9  ;;  %v2391_v48 = vmul.f32 %v2389_v38, %v2364_v28 }
 0x7eb   :  { %v2392_v60 = vmul.f32 %v2389_v38, %v2367_v19  ;;  %v2507_v44 = vperm.slane %v2396_v49, 1  ;;  %v2296_v37 = vmul.f32 %v2295_v62, %v4700_v55  ;;  %v2502_v28 = vmul.f32 %v2500_v33, %v2479_v10  ;;  %v2588_v38 = vpop.f32.mrf.mxu3 }
 0x7ec   :  { %v2398_v4 = vmul.f32 %v2397_v31, %v2370_v30  ;;  %v2399_v22 = vmul.f32 %v2397_v31, %v2373_v53  ;;  %v2400_v41 = vmul.f32 %v2397_v31, %v2376_v63  ;;  %v2408_v25 = vmul.f32 %v2407_v26, %v2379_v21 }
 0x7ed   :  { %v2494_v30 = vmul.f32 %v4910_v36, %v2397_v31  ;;  %v2409_v29 = vmul.f32 %v2407_v26, %v2382_v39  ;;  %v2496_v9 = vmul.f32 %v4919_v46, %v2397_v31  ;;  %v2501_v53 = vmul.f32 %v2500_v33, %v2476_v45  ;;  %v2491_v45 = vpop.f32.mrf.mxu2 }
 0x7ee   :  { %v2401_v6 = vadd.f32 %v2398_v4, %v2390_v0  ;;  %v2402_v50 = vadd.f32 %v2399_v22, %v2391_v48  ;;  %v2403_v18 = vadd.f32 %v2400_v41, %v2392_v60  ;;  %v2495_v63 = vmul.f32 %v4914_v1, %v2397_v31 }
 0x7ef   :  { %v2410_v21 = vmul.f32 %v2407_v26, %v2385_v13  ;;  %v2503_v55 = vmul.f32 %v2500_v33, %v2482_v52  ;;  %v2301_v49 = vadd.f32 %v2299_v32, %v2296_v37  ;;  %v2508_v36 = vmul.f32 %v2507_v44, %v2485_v61 }
 0x7f0   :  { %v2411_v20 = vadd.f32 %v2408_v25, %v2401_v6  ;;  %v2412_v19 = vadd.f32 %v2409_v29, %v2402_v50  ;;  %v2304_v25 = vmul.f32 %v2303_v59, %v4743_v54  ;;  %v2594_v10 = vmul.f32 %v4912_v17, %v2407_v26 }
 0x7f1   :  { %v2413_v46 = vadd.f32 %v2410_v21, %v2403_v18  ;;  %v2302_v4 = vadd.f32 %v2300_v16, %v2297_v34  ;;  %v2305_v27 = vmul.f32 %v2303_v59, %v4766_v11  ;;  %v2509_v33 = vmul.f32 %v2507_v44, %v2488_v35 }
 0x7f2   :  { %v2497_v0 = vadd.f32 %v2494_v30, %v2411_v20  ;;  %v2498_v39 = vadd.f32 %v2495_v63, %v2412_v19  ;;  %v4942_v20 = vadd.f32 %v2304_v25, %v2301_v49  ;;  %v2600_v47 = vmul.f32 %v4923_v57, %v2507_v44 }
 0x7f3   :  { %v2499_v31 = vadd.f32 %v2496_v9, %v2413_v46  ;;  %v2595_v54 = vmul.f32 %v4916_v42, %v2407_v26  ;;  %v4946_v12 = vadd.f32 %v2305_v27, %v2302_v4  ;;  %v2510_v1 = vmul.f32 %v2507_v44, %v2491_v45  ;;  %v2591_v22 = vpop.f32.mrf.mxu3 }
 0x7f4   :  { %v2504_v6 = vadd.f32 %v2501_v53, %v2497_v0  ;;  %v2505_v13 = vadd.f32 %v2502_v28, %v2498_v39  ;;  %2616 = vst [vmem:[#allocation4 + $0x1a8] sm:$0xff] %v4942_v20  ;;  %v2596_v11 = vmul.f32 %v4921_v14, %v2407_v26  ;;  %v2601_v52 = vmul.f32 %v4926_v8, %v2507_v44  ;;  %v3341_v14 = vld [vmem:[%s5135_s0 + $0x80] sm:$0xff] }
 0x7f5   :  { %v2506_v17 = vadd.f32 %v2503_v55, %v2499_v31  ;;  %2617 = vst [vmem:[#allocation4 + $0x1b0] sm:$0xff] %v4946_v12  ;;  %v2607_v35 = vmul.f32 %v2606_v51, %v4930_v7  ;;  %v2602_v42 = vmul.f32 %v4928_v23, %v2507_v44  ;;  %v2608_v60 = vmul.f32 %v2606_v51, %v2588_v38  ;;  %v3342_v23 = vld [vmem:[%s5135_s0 + $0x88] sm:$0xff]  ;;  %v3340_v55 = vld [vmem:[%s5135_s0 + $0x78] sm:$0xff]  ;;  %s3488_s0 = smov [#allocation4]  }
 0x7f6   :  { %v2511_v62 = vadd.f32 %v2508_v36, %v2504_v6  ;;  %v2512_v61 = vadd.f32 %v2509_v33, %v2505_v13  ;;  %v2609_v32 = vmul.f32 %v2606_v51, %v2591_v22  ;;  %vm2625_vm4 = vcmp.gt.f32.partialorder %v3342_v23, 0.5  ;;  %v5415_v22 = vld [vmem:[#allocation13_spill] sm:$0xff]  ;;  %v5429_v23 = vld [vmem:[#allocation40_spill] sm:$0xff]  ;;  %s3134_s5 = sshll.u32 %s3488_s0, 4  ;;  %s3135_s5 = int_to_ptr.vmem [resolvable:$true] %s3134_s5 }
 0x7f7   :  { %v2513_v48 = vadd.f32 %v2510_v1, %v2506_v17  ;;  %v2654_v51 = vsel %vm2625_vm4, 1, %v5270_v2  ;;  %v2644_v36 = vsub.f32 %v3340_v55, %v4942_v20 }
 0x7f8   :  { %v2597_v18 = vadd.f32 %v2594_v10, %v2511_v62  ;;  %v2598_v57 = vadd.f32 %v2595_v54, %v2512_v61  ;;  %v2655_v63 = vperm.slane %v2654_v51, 0 }
 0x7f9   :  { %v2599_v37 = vadd.f32 %v2596_v11, %v2513_v48  ;;  %v5413_v48 = vld [vmem:[#allocation19_spill] sm:$0xff] }
 0x7fa   :  { %v2603_v59 = vadd.f32 %v2600_v47, %v2597_v18  ;;  %v2604_v50 = vadd.f32 %v2601_v52, %v2598_v57  ;;  %vm4967_vm12 = vcmp.eq.s32.totalorder %v2655_v63, 1  ;;  %v5406_v52 = vld [vmem:[#allocation20_spill] sm:$0xff]  ;;  %v5412_v57 = vld [vmem:[#allocation25_spill] sm:$0xff] }
 0x7fb   :  { %v2605_v30 = vadd.f32 %v2602_v42, %v2599_v37  ;;  %v5414_v42 = vld [vmem:[#allocation28_spill] sm:$0xff]  ;;  %v5419_v37 = vld [vmem:[#allocation29_spill] sm:$0xff] }
 0x7fc   :  { %v2610_v41 = vadd.f32 %v2607_v35, %v2603_v59  ;;  %v2611_v26 = vadd.f32 %v2608_v60, %v2604_v50  ;;  %v5410_v35 = vld [vmem:[#allocation18_spill] sm:$0xff]  ;;  %v5417_v60 = vld [vmem:[#allocation11_spill] sm:$0xff]  ;;  %v5418_v50 = vld [vmem:[#allocation12_spill] sm:$0xff] }
 0x7fd   :  { %v2612_v9 = vadd.f32 %v2609_v32, %v2605_v30  ;;  %v5411_v59 = vld [vmem:[#allocation22_spill] sm:$0xff]  ;;  %v5424_v30 = vld [vmem:[#allocation36_spill] sm:$0xff] }
 0x7fe   :  { %v2613_v8 = vadd.f32 %v2610_v41, %v3920_v43  ;;  %v2614_v29 = vadd.f32 %v2611_v26, %v3912_v24  ;;  %v5416_v41 = vld [vmem:[#allocation27_spill] sm:$0xff]  ;;  %v5422_v26 = vld [vmem:[#allocation34_spill] sm:$0xff] }
 0x7ff   :  { %v2615_v44 = vadd.f32 %v2612_v9, %v3926_v15  ;;  %v5423_v32 = vld [vmem:[#allocation30_spill] sm:$0xff]  ;;  %v5427_v9 = vld [vmem:[#allocation35_spill] sm:$0xff] }
 0x800   :  { %2618 = vst [vmem:[#allocation4 + $0x1b8] sm:$0xff] %v2613_v8  ;;  %v2626_v7 = vadd.f32 %v3341_v14, %v2613_v8  ;;  %v5420_v14 = vld [vmem:[#allocation32_spill] sm:$0xff] }
 0x801   :  { %2619 = vst [vmem:[#allocation4 + $0x1c0] sm:$0xff] %v2614_v29 }
 0x802   :  { %3445 = vrcp.f32 %v2626_v7  ;;  %2620 = vst [vmem:[#allocation4 + $0x1c8] sm:$0xff] %v2615_v44  ;;  %v2638_v34 = vand.u32 2147483648, %v2626_v7  ;;  %v2636_v19 = vand.u32 2147483647, %v2626_v7  ;;  %vm2632_vm9 = vweird.f32 %v2626_v7 }
 0x804   :  { %v2639_v16 = vor.u32 1.1754944e-38, %v2638_v34  ;;  %vm2637_vm11 = vcmp.eq.f32.partialorder %v2636_v19, 8.507059e+37 }
 0x808   :  { %v3446_v53 = vpop.eup %3445 }
 0x809   :  { %v2628_v28 = vmul.f32 %v3446_v53, %v2626_v7  ;;  %vm2633_vm5 = vweird.f32 %v3446_v53  ;;  %v5425_v7 = vld [vmem:[#allocation24_spill] sm:$0xff] }
 0x80a   :  { %vm2634_vm10 = vmor %vm2632_vm9, %vm2633_vm5 }
 0x80b   :  { %v2629_v38 = vsub.f32 1.0, %v2628_v28  ;;  %v5431_v28 = vld [vmem:[#allocation33_spill] sm:$0xff] }
 0x80d   :  { %v2630_v0 = vmul.f32 %v3446_v53, %v2629_v38 }
 0x80f   :  { %v2631_v21 = vadd.f32 %v3446_v53, %v2630_v0 }
 0x811   :  { %v2635_v49 = vsel %vm2634_vm10, %v3446_v53, %v2631_v21  ;;  %v5430_v53 = vld [vmem:[#allocation38_spill] sm:$0xff] }
 0x812   :  { %v2640_v25 = vsel %vm2637_vm11, %v2639_v16, %v2635_v49  ;;  %v5432_v16 = vld [vmem:[#allocation10_spill] sm:$0xff] }
 0x813   :  { %v2643_v2 = vmul.f32 %v2640_v25, %v2614_v29  ;;  %v2642_v39 = vmul.f32 %v2640_v25, %v2613_v8  ;;  %v5433_v25 = vld [vmem:[#allocation7_spill] sm:$0xff] }
 0x815   :  { %v2646_v46 = vmul.f32 %v2644_v36, %v2643_v2  ;;  %v2663_v10 = vsel %vm4967_vm12, %v2643_v2, 0.0  ;;  %v2652_v45 = vmul.f32 %v2643_v2, %v2614_v29  ;;  %v2645_v4 = vmul.f32 %v2644_v36, %v2642_v39 }
 0x816   :  { %2671 = vst [vmem:[#allocation4 + $0x238] sm:$0xff] %v2663_v10  ;;  %v2662_v27 = vsel %vm4967_vm12, %v2642_v39, 0.0  ;;  %v2649_v62 = vsub.f32 1.0, %v2642_v39  ;;  %v5434_v39 = vld [vmem:[#allocation17_spill] sm:$0xff] }
 0x817   :  { %v2648_v13 = vadd.f32 %v2646_v46, %v4946_v12  ;;  %v2653_v33 = vsub.f32 %v2615_v44, %v2652_v45  ;;  %v2647_v31 = vadd.f32 %v2645_v4, %v4942_v20  ;;  %2670 = vst [vmem:[#allocation4 + $0x230] sm:$0xff] %v2662_v27 }
 0x818   :  { %v2651_v47 = vmul.f32 %v2649_v62, %v2614_v29  ;;  %v2650_v54 = vmul.f32 %v2649_v62, %v2613_v8 }
 0x819   :  { %v2658_v18 = vsel %vm4967_vm12, %v2648_v13, %v4946_v12  ;;  %v2661_v61 = vsel %vm4967_vm12, %v2653_v33, %v2615_v44  ;;  %v2657_v17 = vsel %vm4967_vm12, %v2647_v31, %v4942_v20  ;;  %v5402_v20 = vld [vmem:[#allocation9_spill] sm:$0xff]  ;;  %v5404_v12 = vld [vmem:[#allocation16_spill] sm:$0xff]  ;;  %v5428_v44 = vld [vmem:[#allocation39_spill] sm:$0xff] }
 0x81a   :  { %2666 = vst [vmem:[#allocation4 + $0x1e8] sm:$0xff] %v2658_v18  ;;  %2710 = vmatpush.msra.mxu0 %v2658_v18  ;;  %2861 = vmatpush.msra.mxu1 %v2661_v61  ;;  %v2660_v1 = vsel %vm4967_vm12, %v2651_v47, %v2614_v29  ;;  %v2659_v11 = vsel %vm4967_vm12, %v2650_v54, %v2613_v8  ;;  %v5421_v8 = vld [vmem:[#allocation23_spill] sm:$0xff]  ;;  %v5426_v29 = vld [vmem:[#allocation37_spill] sm:$0xff] }
 0x81b   :  { %2669 = vst [vmem:[#allocation4 + $0x200] sm:$0xff] %v2661_v61  ;;  %2967 = vmatpush.msrb.mxu2 %v2661_v61  ;;  %3067 = vmatpush.msra.mxu3 %v2661_v61  ;;  %v5435_v33 = vld [vmem:[#allocation31_spill] sm:$0xff] }
 0x81c   :  { %2665 = vst [vmem:[#allocation4 + $0x1e0] sm:$0xff] %v2657_v17  ;;  %2711 = vmatpush.msra.mxu0 %v2657_v17  ;;  %2862 = vmatpush.msra.mxu1 %v2660_v1 }
 0x81d   :  { %2668 = vst [vmem:[#allocation4 + $0x1f8] sm:$0xff] %v2660_v1  ;;  %2968 = vmatpush.msrb.mxu2 %v2660_v1  ;;  %3068 = vmatpush.msra.mxu3 %v2660_v1 }
 0x81e   :  { %3343 = vmatmul.msk.f32.vlgmr.msra.gmra.mxu0 %vm116_vm6, %v4645_v5  ;;  %2667 = vst [vmem:[#allocation4 + $0x1f0] sm:$0xff] %v2659_v11  ;;  %2863 = vmatpush.msra.mxu1 %v2659_v11  ;;  %v5403_v5 = vld [vmem:[#allocation26_spill] sm:$0xff] }
 0x81f   :  { %2745 = vmatpush.msrb.mxu0 %v2658_v18  ;;  %2969 = vmatpush.msrb.mxu2 %v2659_v11 }
 0x820   :  { %3069 = vmatpush.msra.mxu3 %v2659_v11  ;;  %3361 = vmatmul.msk.f32.vlgmr.msrb.gmra.mxu2 %vm285_vm7, %v4714_v58  ;;  %v5405_v58 = vld [vmem:[#allocation21_spill] sm:$0xff] }
 0x821   :  { %2746 = vmatpush.msrb.mxu0 %v2657_v17  ;;  %3370 = vmatmul.msk.f32.vlgmr.msra.gmra.mxu3 %vm285_vm7, %v4709_v3  ;;  %v5407_v3 = vld [vmem:[#allocation14_spill] sm:$0xff] }
 0x822   :  { %3352 = vmatmul.msk.f32.vlgmr.msra.gmra.mxu1 %vm285_vm7, %v4725_v40  ;;  %v5408_v40 = vld [vmem:[#allocation8_spill] sm:$0xff] }
 0x826   :  { %3344 = vmatmul.msk.f32.gmra.mxu0 %vm116_vm6, %v4654_v56  ;;  %v5409_v56 = vld [vmem:[#allocation15_spill] sm:$0xff] }
 0x828   :  { %3362 = vmatmul.msk.f32.gmra.mxu2 %vm285_vm7, %v5402_v20 }
 0x829   :  { %3371 = vmatmul.msk.f32.gmra.mxu3 %vm285_vm7, %v5403_v5 }
 0x82a   :  { %3353 = vmatmul.msk.f32.gmra.mxu1 %vm285_vm7, %v5404_v12 }
 0x82e   :  { %3345 = vmatmul.msk.f32.gmra.mxu0 %vm116_vm6, %v5405_v58 }
 0x830   :  { %3363 = vmatmul.msk.f32.gmra.mxu2 %vm285_vm7, %v5406_v52 }
 0x831   :  { %3372 = vmatmul.msk.f32.gmra.mxu3 %vm285_vm7, %v5407_v3 }
 0x832   :  { %3354 = vmatmul.msk.f32.gmra.mxu1 %vm285_vm7, %v5408_v40 }
 0x836   :  { %3346 = vmatmul.msk.f32.gmra.mxu0 %vm116_vm6, %v5409_v56 }
 0x838   :  { %3364 = vmatmul.msk.f32.gmra.mxu2 %vm285_vm7, %v5410_v35 }
 0x839   :  { %3373 = vmatmul.msk.f32.gmra.mxu3 %vm285_vm7, %v5411_v59 }
 0x83a   :  { %3355 = vmatmul.msk.f32.gmra.mxu1 %vm285_vm7, %v5412_v57 }
 0x83e   :  { %3347 = vmatmul.msk.f32.gmra.mxu0 %vm116_vm6, %v5413_v48 }
 0x840   :  { %3365 = vmatmul.msk.f32.gmra.mxu2 %vm285_vm7, %v5414_v42 }
 0x841   :  { %3374 = vmatmul.msk.f32.gmra.mxu3 %vm285_vm7, %v5415_v22 }
 0x842   :  { %3356 = vmatmul.msk.f32.gmra.mxu1 %vm285_vm7, %v5416_v41 }
 0x846   :  { %3348 = vmatmul.msk.f32.gmra.mxu0 %vm116_vm6, %v5417_v60 }
 0x848   :  { %3366 = vmatmul.msk.f32.gmra.mxu2 %vm285_vm7, %v5418_v50 }
 0x849   :  { %3375 = vmatmul.msk.f32.gmra.mxu3 %vm285_vm7, %v5419_v37 }
 0x84a   :  { %3357 = vmatmul.msk.f32.gmra.mxu1 %vm285_vm7, %v5420_v14 }
 0x84e   :  { %3349 = vmatmul.msk.f32.vlgmr.msrb.gmra.mxu0 %vm116_vm6, %v5421_v8 }
 0x850   :  { %3367 = vmatmul.msk.f32.gmra.mxu2 %vm285_vm7, %v5422_v26 }
 0x851   :  { %3376 = vmatmul.msk.f32.gmra.mxu3 %vm285_vm7, %v5423_v32 }
 0x852   :  { %3358 = vmatmul.msk.f32.gmra.mxu1 %vm285_vm7, %v5424_v30 }
 0x856   :  { %3350 = vmatmul.msk.f32.gmra.mxu0 %vm116_vm6, %v5425_v7 }
 0x858   :  { %3368 = vmatmul.msk.f32.gmra.mxu2 %vm285_vm7, %v5426_v29 }
 0x859   :  { %3377 = vmatmul.msk.f32.gmra.mxu3 %vm285_vm7, %v5427_v9 }
 0x85a   :  { %3359 = vmatmul.msk.f32.gmra.mxu1 %vm285_vm7, %v5428_v44 }
 0x860   :  { %3369 = vmatmul.msk.f32.gmra.mxu2 %vm285_vm7, %v5429_v23 }
 0x861   :  { %3378 = vmatmul.msk.f32.gmra.mxu3 %vm285_vm7, %v5430_v53 }
 0x862   :  { %3360 = vmatmul.msk.f32.gmra.mxu1 %vm285_vm7, %v5431_v28 }
 0x89b   :  { %v5060_v38 = vpop.f32.mrf.mxu0 }
 0x89f   :  { %v5076_v46 = vpop.f32.mrf.mxu1 }
 0x8a3   :  { %v5062_v51 = vpop.f32.mrf.mxu0  ;;  %v5078_v10 = vpop.f32.mrf.mxu2 }
 0x8a4   :  { %v5082_v4 = vpop.f32.mrf.mxu3 }
 0x8a7   :  { %v5080_v45 = vpop.f32.mrf.mxu1 }
 0x8ab   :  { %v5064_v34 = vpop.f32.mrf.mxu0  ;;  %v5084_v27 = vpop.f32.mrf.mxu2 }
 0x8ac   :  { %v5089_v47 = vpop.f32.mrf.mxu3 }
 0x8af   :  { %v5086_v13 = vpop.f32.mrf.mxu1 }
 0x8b3   :  { %v5066_v0 = vpop.f32.mrf.mxu0  ;;  %v5091_v17 = vpop.f32.mrf.mxu2 }
 0x8b4   :  { %v5093_v12 = vpop.f32.mrf.mxu3 }
 0x8b7   :  { %v2874_v20 = vpop.f32.mrf.mxu1 }
 0x8bb   :  { %v5068_v19 = vpop.f32.mrf.mxu0  ;;  %v5095_v52 = vpop.f32.mrf.mxu2 }
 0x8bc   :  { %v5098_v35 = vpop.f32.mrf.mxu3 }
 0x8bf   :  { %v2877_v3 = vpop.f32.mrf.mxu1 }
 0x8c3   :  { %v5070_v63 = vpop.f32.mrf.mxu0  ;;  %v5100_v48 = vpop.f32.mrf.mxu2 }
 0x8c4   :  { %v5102_v50 = vpop.f32.mrf.mxu3 }
 0x8c7   :  { %v2880_v41 = vpop.f32.mrf.mxu1 }
 0x8cb   :  { %v2748_v21 = vpop.f32.mrf.mxu0  ;;  %v5104_v14 = vpop.f32.mrf.mxu2 }
 0x8cc   :  { %v2749_v49 = vadd.f32 %v2748_v21, %v5432_v16  ;;  %v5106_v30 = vpop.f32.mrf.mxu3 }
 0x8cf   :  { %v2883_v8 = vpop.f32.mrf.mxu1 }
 0x8d3   :  { %v2751_v55 = vpop.f32.mrf.mxu0  ;;  %v2989_v9 = vpop.f32.mrf.mxu2 }
 0x8d4   :  { %v2752_v6 = vadd.f32 %v2751_v55, %v5433_v25 }
 0x8d6   :  { %3447 = vtanh.f32 %v2752_v6 }
 0x8d7   :  { %3449 = vtanh.f32 %v2749_v49  ;;  %v2886_v55 = vpop.f32.mrf.mxu1 }
 0x8dc   :  { %v3448_v2 = vpop.eup %3447 }
 0x8dd   :  { %2770 = vmatpush.msra.mxu0 %v3448_v2  ;;  %v3450_v36 = vpop.eup %3449 }
 0x8df   :  { %2771 = vmatpush.msra.mxu0 %v3450_v36 }
 0x8e0   :  { %3351 = vmatmul.msk.f32.vlgmr.msra.gmra.mxu0 %vm116_vm6, %v5434_v39  ;;  %v3089_v39 = vpop.f32.mrf.mxu3 }
 0x95d   :  { %v2773_v62 = vpop.f32.mrf.mxu0 }
 0x95e   :  { %v2774_v31 = vadd.f32 %v2773_v62, %v5435_v33 }
 0x960   :  { %v2777_v54 = vrot.slane %v2774_v31, 1  ;;  %v2780_v61 = vrot.slane %v2774_v31, 2 }
 0x962   :  { %v2779_v18 = vmax.f32 %v2774_v31, %v2777_v54 }
 0x964   :  { %v2782_v1 = vmax.f32 %v2779_v18, %v2780_v61 }
 0x966   :  { %v2783_v11 = vperm.slane %v2782_v1, 0 }
 0x968   :  { %v2784_v5 = vsub.f32 %v2774_v31, %v2783_v11 }
 0x96a   :  { %v2785_v58 = vmul.f32 1.442695, %v2784_v5 }
 0x96c   :  { %3451 = vpow2.f32 %v2785_v58 }
 0x972   :  { %v3452_v40 = vpop.eup %3451 }
 0x973   :  { %v2787_v56 = vsel %vm250_vm8, %v3452_v40, 0.0 }
 0x974   :  { %v2788_v59 = vrot.slane %v2787_v56, 4 }
 0x976   :  { %v2789_v57 = vadd.f32 %v2788_v59, %v2787_v56 }
 0x978   :  { %v2790_v42 = vrot.slane %v2789_v57, 2 }
 0x97a   :  { %v2791_v22 = vadd.f32 %v2790_v42, %v2789_v57 }
 0x97c   :  { %v2792_v60 = vrot.slane %v2791_v22, 1 }
 0x97e   :  { %v2793_v37 = vadd.f32 %v2792_v60, %v2791_v22  ;;  %v2889_v22 = vpop.f32.mrf.mxu1 }
 0x980   :  { %3453 = vrcp.f32 %v2793_v37 }
 0x986   :  { %v3454_v26 = vpop.eup %3453 }
 0x987   :  { %v2795_v32 = vmul.f32 %v3454_v26, %v2793_v37 }
 0x989   :  { %v2796_v7 = vsub.f32 2.0, %v2795_v32 }
 0x98b   :  { %v2797_v29 = vmul.f32 %v3454_v26, %v2796_v7 }
 0x98d   :  { %v2798_v44 = vmul.f32 %v3452_v40, %v2797_v29  ;;  %v2992_v40 = vpop.f32.mrf.mxu2  ;;  %v3092_v29 = vpop.f32.mrf.mxu3 }
 0x98f   :  { %v2799_v23 = vperm.slane %v2798_v44, 0  ;;  %v2802_v53 = vperm.slane %v2798_v44, 1  ;;  %v2807_v28 = vperm.slane %v2798_v44, 2  ;;  %v2908_v21 = vrot.slane %v2798_v44, 2 }
 0x990   :  { %v2892_v16 = vmul.f32 %v2798_v44, %v2798_v44  ;;  %v2898_v49 = vrot.slane %v2798_v44, 1 }
 0x991   :  { %v2800_v25 = vmul.f32 %v2799_v23, %v5060_v38  ;;  %v2801_v6 = vmul.f32 %v2799_v23, %v5062_v51  ;;  %v2803_v2 = vmul.f32 %v2802_v53, %v5064_v34  ;;  %v2804_v36 = vmul.f32 %v2802_v53, %v5066_v0 }
 0x992   :  { %v2808_v62 = vmul.f32 %v2807_v28, %v5068_v19  ;;  %v2809_v33 = vmul.f32 %v2807_v28, %v5070_v63  ;;  %v2910_v31 = vmul.f32 %v2908_v21, %v2798_v44  ;;  %v2893_v61 = vperm.slane %v2892_v16, 0 }
 0x993   :  { %v2805_v54 = vadd.f32 %v2803_v2, %v2800_v25  ;;  %v2806_v18 = vadd.f32 %v2804_v36, %v2801_v6  ;;  %v2900_v1 = vmul.f32 %v2898_v49, %v2798_v44  ;;  %v3004_v57 = vperm.slane %v2892_v16, 1 }
 0x994   :  { %v2911_v58 = vperm.slane %v2910_v31, 0  ;;  %v2894_v51 = vmul.f32 %v2893_v61, %v5076_v46  ;;  %v2896_v0 = vmul.f32 %v2893_v61, %v5086_v13  ;;  %v2895_v19 = vmul.f32 %v2893_v61, %v5080_v45 }
 0x995   :  { %v2810_v11 = vadd.f32 %v2808_v62, %v2805_v54  ;;  %v2811_v5 = vadd.f32 %v2809_v33, %v2806_v18  ;;  %v2901_v38 = vperm.slane %v2900_v1, 0  ;;  %v3011_v26 = vperm.slane %v2900_v1, 1  ;;  %v2995_v49 = vpop.f32.mrf.mxu2  ;;  %v3095_v1 = vpop.f32.mrf.mxu3 }
 0x996   :  { %v2912_v42 = vmul.f32 %v2911_v58, %v2883_v8  ;;  %v2913_v46 = vmul.f32 %v2911_v58, %v2886_v55  ;;  %v3005_v44 = vmul.f32 %v3004_v57, %v5095_v52  ;;  %v3006_v8 = vmul.f32 %v3004_v57, %v5100_v48 }
 0x997   :  { %3120 = vst [vmem:[#allocation4 + $0x208] sm:$0xff] %v2810_v11  ;;  %v2902_v34 = vmul.f32 %v2901_v38, %v2874_v20  ;;  %v2903_v63 = vmul.f32 %v2901_v38, %v2877_v3  ;;  %v2904_v56 = vmul.f32 %v2901_v38, %v2880_v41  ;;  %v2998_v7 = vmul.f32 %v5078_v10, %v2901_v38 }
 0x998   :  { %3121 = vst [vmem:[#allocation4 + $0x210] sm:$0xff] %v2811_v5  ;;  %v2914_v20 = vmul.f32 %v2911_v58, %v2889_v22  ;;  %v2999_v45 = vmul.f32 %v5084_v27, %v2901_v38  ;;  %v3000_v3 = vmul.f32 %v5091_v17, %v2901_v38  ;;  %v3012_v28 = vmul.f32 %v3011_v26, %v2989_v9 }
 0x999   :  { %v2905_v59 = vadd.f32 %v2902_v34, %v2894_v51  ;;  %v2906_v60 = vadd.f32 %v2903_v63, %v2895_v19  ;;  %v2907_v37 = vadd.f32 %v2904_v56, %v2896_v0  ;;  %v3007_v10 = vmul.f32 %v3004_v57, %v5104_v14 }
 0x99a   :  { %v3110_v25 = vperm.slane %v2892_v16, 2  ;;  %v3098_v52 = vmul.f32 %v5082_v4, %v2911_v58  ;;  %v3013_v36 = vmul.f32 %v3011_v26, %v2992_v40  ;;  %v3014_v27 = vmul.f32 %v3011_v26, %v2995_v49 }
 0x99b   :  { %v2915_v32 = vadd.f32 %v2912_v42, %v2905_v59  ;;  %v2916_v23 = vadd.f32 %v2913_v46, %v2906_v60  ;;  %v2917_v41 = vadd.f32 %v2914_v20, %v2907_v37  ;;  %v3104_v17 = vmul.f32 %v5098_v35, %v3011_v26 }
 0x99c   :  { %v3099_v48 = vmul.f32 %v5089_v47, %v2911_v58  ;;  %v3100_v9 = vmul.f32 %v5093_v12, %v2911_v58  ;;  %v3105_v14 = vmul.f32 %v5102_v50, %v3011_v26  ;;  %v3111_v16 = vmul.f32 %v3110_v25, %v3089_v39 }
 0x99d   :  { %v3001_v13 = vadd.f32 %v2998_v7, %v2915_v32  ;;  %v3002_v21 = vadd.f32 %v2999_v45, %v2916_v23  ;;  %v3003_v55 = vadd.f32 %v3000_v3, %v2917_v41  ;;  %v3106_v4 = vmul.f32 %v5106_v30, %v3011_v26 }
 0x99e   :  { %v3112_v38 = vmul.f32 %v3110_v25, %v3092_v29  ;;  %v3113_v35 = vmul.f32 %v3110_v25, %v3095_v1 }
 0x99f   :  { %v3008_v53 = vadd.f32 %v3005_v44, %v3001_v13  ;;  %v3009_v2 = vadd.f32 %v3006_v8, %v3002_v21  ;;  %v3010_v62 = vadd.f32 %v3007_v10, %v3003_v55 }
 0x9a1   :  { %v3015_v6 = vadd.f32 %v3012_v28, %v3008_v53  ;;  %v3016_v31 = vadd.f32 %v3013_v36, %v3009_v2  ;;  %v3017_v54 = vadd.f32 %v3014_v27, %v3010_v62 }
 0x9a3   :  { %v3101_v33 = vadd.f32 %v3098_v52, %v3015_v6  ;;  %v3102_v61 = vadd.f32 %v3099_v48, %v3016_v31  ;;  %v3103_v11 = vadd.f32 %v3100_v9, %v3017_v54 }
 0x9a5   :  { %v3107_v18 = vadd.f32 %v3104_v17, %v3101_v33  ;;  %v3108_v40 = vadd.f32 %v3105_v14, %v3102_v61  ;;  %v3109_v51 = vadd.f32 %v3106_v4, %v3103_v11 }
 0x9a7   :  { %v3114_v5 = vadd.f32 %v3111_v16, %v3107_v18  ;;  %v3115_v12 = vadd.f32 %v3112_v38, %v3108_v40  ;;  %v3116_v50 = vadd.f32 %v3113_v35, %v3109_v51 }
 0x9a9   :  { %v3117_v47 = vadd.f32 %v3114_v5, %v3920_v43  ;;  %v3118_v39 = vadd.f32 %v3115_v12, %v3912_v24  ;;  %v3119_v30 = vadd.f32 %v3116_v50, %v3926_v15 }
 0x9ab   :  { %3122 = vst [vmem:[#allocation4 + $0x218] sm:$0xff] %v3117_v47 }
 0x9ac   :  { %3123 = vst [vmem:[#allocation4 + $0x220] sm:$0xff] %v3118_v39 }
 0x9ad   :  { %3124 = vst [vmem:[#allocation4 + $0x228] sm:$0xff] %v3119_v30 }
 0x9ae   :  { %3142 = dma.vmem_to_hbm [thread:$0]  %s3135_s5, 9216, %s3137_s30, [#allocation5], %s3489_s10, %s3489_s10, %s3490_s11  }
 0x9af   :  { %3485 = dma.done.wait [#allocation5], 9216  }
 0x9b0   :  { %3486 = vsyncadd [#allocation5], 4294958080 }
 0x9b1   :  { %3147 = vsyncpa [#allocation5], 1 }

</bundles_post_ra>
